<compile_context>
chip_gen: v7x
topology: tpu7x:2x2x1
jax: 0.10.0
libtpu: 0.0.40
codegen_flags: <defaults>
</compile_context>

<pallas_src>
import functools

import jax
import jax.numpy as jnp
import numpy as np
from jax import lax
from jax.experimental import pallas as pl
from jax.experimental.pallas import tpu as pltpu


# ------------------------------ fused kernel ------------------------------- #

def _lenet_kernel(x_ref, g1_ref, c1b_ref, g2_ref, c2b_ref,
                  w1p_ref, b1_ref, w2_ref, b2_ref, w3_ref, b3_ref,
                  o_ref):
    tb = x_ref.shape[0]
    # Assemble LHS in f32 so the sublane-offset slices / flattens stay on the
    # cheap (8,128)-aligned layout; cast to bf16 only right before each dot.
    x = x_ref[...].astype(jnp.float32)                       # (tb, 28, 28)

    # conv1 + bias + relu: ONE fused-K bf16 MXU matmul.
    # LHS rows = (b, oh); cols = tap*28 + w  (K = 140).
    # Output cols = ow*6 + co (144 wide, lane-dense).
    lhs1 = jnp.concatenate([x[:, i:i + 24, :] for i in range(5)], axis=-1)
    lhs1 = lhs1.reshape(tb * 24, 5 * 28).astype(jnp.bfloat16)
    c1 = jnp.dot(lhs1, g1_ref[...], preferred_element_type=jnp.float32)
    c1 = jnp.maximum(c1 + c1b_ref[...], 0.0)                 # (tb*24, 144) f32

    # pool1.  Width: compare each even-ow column block with its right
    # neighbour via a 6-lane shift (no selection matmul); valid results live
    # at even-ow columns, the odd/junk columns are killed by g2's zero rows.
    shift1 = jnp.concatenate([c1[:, 6:], c1[:, :6]], axis=1)
    pw1 = jnp.maximum(c1, shift1)
    # Height: pair adjacent output rows.
    pw1 = pw1.reshape(tb, 12, 2, 144)
    y1 = jnp.maximum(pw1[:, :, 0, :], pw1[:, :, 1, :])       # (tb, 12, 144) f32

    # conv2 + bias + relu: ONE fused-K bf16 matmul over (tap, un-compacted
    # width*ci) = 5*144 = 720.  Output cols = ow*12 + co (96 wide).
    lhs2 = jnp.concatenate([y1[:, i:i + 8, :] for i in range(5)], axis=-1)
    lhs2 = lhs2.reshape(tb * 8, 5 * 144).astype(jnp.bfloat16)
    c2 = jnp.dot(lhs2, g2_ref[...], preferred_element_type=jnp.float32)
    c2 = jnp.maximum(c2 + c2b_ref[...], 0.0)                 # (tb*8, 96) f32

    # pool2 (same structure, 12-lane shift).
    shift2 = jnp.concatenate([c2[:, 12:], c2[:, :12]], axis=1)
    qw = jnp.maximum(c2, shift2)
    qw = qw.reshape(tb, 4, 2, 96)
    y2 = jnp.maximum(qw[:, :, 0, :], qw[:, :, 1, :])         # (tb, 4, 96) f32

    # fc1 (PyTorch (C,H,W) flatten order AND even-column selection folded into
    # w1p), fc2, fc3 (padded to 128 lane-dense output columns).
    # No activations after the FC layers, exactly as in the torch module.
    h = jnp.zeros((tb, 120), jnp.float32) + b1_ref[...]
    for ph in range(4):
        h = h + jnp.dot(y2[:, ph, :].astype(jnp.bfloat16), w1p_ref[ph],
                        preferred_element_type=jnp.float32)
    h = jnp.dot(h.astype(jnp.bfloat16), w2_ref[...],
                preferred_element_type=jnp.float32) + b2_ref[...]
    out = jnp.dot(h.astype(jnp.bfloat16), w3_ref[...],
                  preferred_element_type=jnp.float32) + b3_ref[...]
    o_ref[...] = out                                         # (tb, 128); cols 10.. pad


def _const_spec(a):
    nd = a.ndim
    return pl.BlockSpec(a.shape, lambda b, _nd=nd: (0,) * _nd)


def _pick_tb(batch):
    # Largest tile that still leaves >= 2 grid steps (v7x megacore), capped at
    # 256 (v7x 64 MiB VMEM).  Batches are zero-padded to a tile multiple in the
    # wrapper, so there is no whole-batch fallback.
    for tb in (256, 128, 64, 32, 16, 8):
        if batch >= 2 * tb:
            return tb
    return 8


@functools.partial(jax.jit, static_argnames=("tb",))
def network_forward(x, kparams, tb):
    """x: (B, 1, 28, 28) NCHW float -> (B, 10) float32 logits."""
    batch = x.shape[0]
    x3 = x.reshape(batch, 28, 28).astype(jnp.bfloat16)       # C_in == 1; halve HBM
    pad = (-batch) % tb
    if pad:
        x3 = jnp.pad(x3, ((0, pad), (0, 0), (0, 0)))
    bp = batch + pad

    in_specs = ([pl.BlockSpec((tb, 28, 28), lambda b: (b, 0, 0))]
                + [_const_spec(a) for a in kparams])
    out = pl.pallas_call(
        _lenet_kernel,
        grid=(bp // tb,),
        in_specs=in_specs,
        out_specs=pl.BlockSpec((tb, 128), lambda b: (b, 0)),
        out_shape=jax.ShapeDtypeStruct((bp, 128), jnp.float32),
        compiler_params=pltpu.CompilerParams(
            dimension_semantics=("parallel",),
            vmem_limit_bytes=64 * 1024 * 1024),
    )(x3, *kparams)
    return out[:batch, :10]


# ------------------ one-time weight repacking (outside jit) ----------------- #

def prepare_params(params):
    """Repack PyTorch-layout weights into the operands the fused kernel uses."""
    w1, b1, w2, b2, wf1, bf1, wf2, bf2, wf3, bf3 = [
        np.asarray(p, np.float32) for p in params]

    # conv1 fused-K weights (140, 144): g1[i*28 + ow + j, ow*6 + co] = w1[co,0,i,j]
    g1 = np.zeros((5 * 28, 24 * 6), np.float32)
    for i in range(5):
        for ow in range(24):
            for j in range(5):
                g1[i * 28 + ow + j, ow * 6:(ow + 1) * 6] = w1[:, 0, i, j]
    c1b = np.tile(b1, 24)[None, :]                    # (1, 144), col = ow*6+co

    # conv2 fused-K weights in UN-compacted pool1 coordinates (720, 96):
    #   g2[i*144 + (2*(ow+j))*6 + ci, ow*12 + co] = w2[co, ci, i, j]
    # Odd-width rows stay zero -> pool1 junk columns contribute nothing.
    g2 = np.zeros((5 * 144, 8 * 12), np.float32)
    for i in range(5):
        for ow in range(8):
            for j in range(5):
                for ci in range(6):
                    g2[i * 144 + 2 * (ow + j) * 6 + ci,
                       ow * 12:(ow + 1) * 12] = w2[:, ci, i, j]
    c2b = np.tile(b2, 8)[None, :]                     # (1, 96), col = ow*12+co

    # fc1 split per pooled row ph, in UN-compacted pool2 coordinates (96 wide);
    # maps the kernel's (2*pw)*12+co feature layout onto PyTorch's flatten
    # order co*16 + ph*4 + pw.  Odd-width rows stay zero.
    w1p = np.zeros((4, 96, 120), np.float32)
    for ph in range(4):
        for pw in range(4):
            for co in range(12):
                w1p[ph, 2 * pw * 12 + co, :] = wf1[:, co * 16 + ph * 4 + pw]

    # fc3 padded to a lane-dense 128-wide output.
    w3p = np.zeros((60, 128), np.float32); w3p[:, :10] = wf3.T
    b3p = np.zeros((1, 128), np.float32);  b3p[0, :10] = bf3

    bf16 = jnp.bfloat16
    f32 = jnp.float32
    kparams = (
        jnp.asarray(g1, bf16), jnp.asarray(c1b, f32),
        jnp.asarray(g2, bf16), jnp.asarray(c2b, f32),
        jnp.asarray(w1p, bf16), jnp.asarray(bf1[None, :], f32),
        jnp.asarray(wf2.T.copy(), bf16), jnp.asarray(bf2[None, :], f32),
        jnp.asarray(w3p, bf16), jnp.asarray(b3p, f32),
    )
    return kparams


# ----------------------- deterministic parameter init ---------------------- #

def init_params(key):
    ks = jax.random.split(key, 10)

    def u(k, shape, fan_in):
        bound = 1.0 / (fan_in ** 0.5)
        return jax.random.uniform(k, shape, jnp.float32, -bound, bound)

    w1 = u(ks[0], (6, 1, 5, 5), 25);    b1 = u(ks[1], (6,), 25)
    w2 = u(ks[2], (12, 6, 5, 5), 150);  b2 = u(ks[3], (12,), 150)
    wf1 = u(ks[4], (120, 192), 192);    bf1 = u(ks[5], (120,), 192)
    wf2 = u(ks[6], (60, 120), 120);     bf2 = u(ks[7], (60,), 120)
    wf3 = u(ks[8], (10, 60), 60);       bf3 = u(ks[9], (10,), 60)
    return (w1, b1, w2, b2, wf1, bf1, wf2, bf2, wf3, bf3)


# ------------------------- plain-JAX reference check ----------------------- #

def ref_forward(x, params):
    w1, b1, w2, b2, wf1, bf1, wf2, bf2, wf3, bf3 = params
    dn = ("NCHW", "OIHW", "NCHW")
    y = lax.conv_general_dilated(x, w1, (1, 1), "VALID", dimension_numbers=dn)
    y = jnp.maximum(y + b1.reshape(1, -1, 1, 1), 0.0)
    y = lax.reduce_window(y, -jnp.inf, lax.max, (1, 1, 2, 2), (1, 1, 2, 2), "VALID")
    y = lax.conv_general_dilated(y, w2, (1, 1), "VALID", dimension_numbers=dn)
    y = jnp.maximum(y + b2.reshape(1, -1, 1, 1), 0.0)
    y = lax.reduce_window(y, -jnp.inf, lax.max, (1, 1, 2, 2), (1, 1, 2, 2), "VALID")
    y = y.reshape(y.shape[0], -1)
    y = y @ wf1.T + bf1
    y = y @ wf2.T + bf2
    y = y @ wf3.T + bf3
    return y


# ----------------------------------- main ----------------------------------- #

if __name__ == "__main__":
    key = jax.random.PRNGKey(0)
    kx, kp = jax.random.split(key)
    params = init_params(kp)
    kparams = prepare_params(params)        # one-time repack, outside jit
    x = jax.random.normal(kx, (2, 1, 28, 28), jnp.float32)

    tb = _pick_tb(x.shape[0])
    out = network_forward(x, kparams, tb=tb)
    out = jax.block_until_ready(out)

    ref = ref_forward(x, params)
    assert out.shape == (2, 10), out.shape
    # bf16 MXU path vs. f32 reference: loosened tolerance per review.
    err = float(jnp.max(jnp.abs(out - ref)))
    assert err < 5e-2, err

    print("KERNEL_OK")
</pallas_src>

<mosaic_0001>
module attributes {stable_mosaic.version = 11 : i64} {
  func.func @_lenet_kernel(%arg0: i32, %arg1: memref<8x28x28xbf16, #tpu.memory_space<vmem>>, %arg2: memref<140x144xbf16, #tpu.memory_space<vmem>>, %arg3: memref<1x144xf32, #tpu.memory_space<vmem>>, %arg4: memref<720x96xbf16, #tpu.memory_space<vmem>>, %arg5: memref<1x96xf32, #tpu.memory_space<vmem>>, %arg6: memref<4x96x120xbf16, #tpu.memory_space<vmem>>, %arg7: memref<1x120xf32, #tpu.memory_space<vmem>>, %arg8: memref<120x60xbf16, #tpu.memory_space<vmem>>, %arg9: memref<1x60xf32, #tpu.memory_space<vmem>>, %arg10: memref<60x128xbf16, #tpu.memory_space<vmem>>, %arg11: memref<1x128xf32, #tpu.memory_space<vmem>>, %arg12: memref<8x128xf32, #tpu.memory_space<vmem>>) attributes {dimension_semantics = [#tpu.dimension_semantics<parallel>], iteration_bounds = array<i64: 1>, scalar_prefetch = 0 : i64, scratch_operands = 0 : i64, tpu.core_type = #tpu.core_type<tc>, window_params = [{transform_indices = @transform_0, window_bounds = array<i64: 8, 28, 28>}, {pipeline_mode = #tpu.pipeline_mode<synchronous>, transform_indices = @transform_1, window_bounds = array<i64: 140, 144>}, {pipeline_mode = #tpu.pipeline_mode<synchronous>, transform_indices = @transform_2, window_bounds = array<i64: 1, 144>}, {pipeline_mode = #tpu.pipeline_mode<synchronous>, transform_indices = @transform_3, window_bounds = array<i64: 720, 96>}, {pipeline_mode = #tpu.pipeline_mode<synchronous>, transform_indices = @transform_4, window_bounds = array<i64: 1, 96>}, {pipeline_mode = #tpu.pipeline_mode<synchronous>, transform_indices = @transform_5, window_bounds = array<i64: 4, 96, 120>}, {pipeline_mode = #tpu.pipeline_mode<synchronous>, transform_indices = @transform_6, window_bounds = array<i64: 1, 120>}, {pipeline_mode = #tpu.pipeline_mode<synchronous>, transform_indices = @transform_7, window_bounds = array<i64: 120, 60>}, {pipeline_mode = #tpu.pipeline_mode<synchronous>, transform_indices = @transform_8, window_bounds = array<i64: 1, 60>}, {pipeline_mode = #tpu.pipeline_mode<synchronous>, transform_indices = @transform_9, window_bounds = array<i64: 60, 128>}, {pipeline_mode = #tpu.pipeline_mode<synchronous>, transform_indices = @transform_10, window_bounds = array<i64: 1, 128>}, {transform_indices = @transform_11, window_bounds = array<i64: 8, 128>}]} {
    %c0 = arith.constant 0 : index
    %c0_0 = arith.constant 0 : index
    %c0_1 = arith.constant 0 : index
    %0 = vector.load %arg1[%c0, %c0_0, %c0_1] : memref<8x28x28xbf16, #tpu.memory_space<vmem>>, vector<8x28x28xbf16>
    %1 = arith.extf %0 : vector<8x28x28xbf16> to vector<8x28x28xf32>
    %2 = vector.extract_strided_slice %1 {offsets = [0, 0, 0], sizes = [8, 24, 28], strides = [1, 1, 1]} : vector<8x28x28xf32> to vector<8x24x28xf32>
    %3 = vector.extract_strided_slice %1 {offsets = [0, 1, 0], sizes = [8, 24, 28], strides = [1, 1, 1]} : vector<8x28x28xf32> to vector<8x24x28xf32>
    %4 = vector.extract_strided_slice %1 {offsets = [0, 2, 0], sizes = [8, 24, 28], strides = [1, 1, 1]} : vector<8x28x28xf32> to vector<8x24x28xf32>
    %5 = vector.extract_strided_slice %1 {offsets = [0, 3, 0], sizes = [8, 24, 28], strides = [1, 1, 1]} : vector<8x28x28xf32> to vector<8x24x28xf32>
    %6 = vector.extract_strided_slice %1 {offsets = [0, 4, 0], sizes = [8, 24, 28], strides = [1, 1, 1]} : vector<8x28x28xf32> to vector<8x24x28xf32>
    %7 = tpu.concatenate %2, %3, %4, %5, %6 in 2 : vector<8x24x28xf32>, vector<8x24x28xf32>, vector<8x24x28xf32>, vector<8x24x28xf32>, vector<8x24x28xf32> -> vector<8x24x140xf32>
    %8 = vector.shape_cast %7 : vector<8x24x140xf32> to vector<192x140xf32>
    %9 = arith.truncf %8 : vector<192x140xf32> to vector<192x140xbf16>
    %c0_2 = arith.constant 0 : index
    %c0_3 = arith.constant 0 : index
    %10 = vector.load %arg2[%c0_2, %c0_3] : memref<140x144xbf16, #tpu.memory_space<vmem>>, vector<140x144xbf16>
    %cst = arith.constant dense<0.000000e+00> : vector<192x144xf32>
    %11 = tpu.matmul %9, %10, %cst {dimension_numbers = #tpu.dot_dimension_numbers<[1], [0], [0], [1], [0, 0, 1, 1], [], []>} : vector<192x140xbf16>, vector<140x144xbf16>, vector<192x144xf32> -> vector<192x144xf32>
    %c0_4 = arith.constant 0 : index
    %c0_5 = arith.constant 0 : index
    %12 = vector.load %arg3[%c0_4, %c0_5] : memref<1x144xf32, #tpu.memory_space<vmem>>, vector<1x144xf32>
    %13 = vector.broadcast %12 : vector<1x144xf32> to vector<192x144xf32>
    %14 = arith.addf %11, %13 : vector<192x144xf32>
    %cst_6 = arith.constant 0.000000e+00 : f32
    %15 = vector.broadcast %cst_6 : f32 to vector<192x144xf32>
    %16 = arith.maximumf %14, %15 : vector<192x144xf32>
    %17 = vector.extract_strided_slice %16 {offsets = [0, 6], sizes = [192, 138], strides = [1, 1]} : vector<192x144xf32> to vector<192x138xf32>
    %18 = vector.extract_strided_slice %16 {offsets = [0, 0], sizes = [192, 6], strides = [1, 1]} : vector<192x144xf32> to vector<192x6xf32>
    %19 = tpu.concatenate %17, %18 in 1 : vector<192x138xf32>, vector<192x6xf32> -> vector<192x144xf32>
    %20 = arith.maximumf %16, %19 : vector<192x144xf32>
    %21 = vector.shape_cast %20 : vector<192x144xf32> to vector<8x12x2x144xf32>
    %22 = vector.extract_strided_slice %21 {offsets = [0, 0, 0, 0], sizes = [8, 12, 1, 144], strides = [1, 1, 1, 1]} : vector<8x12x2x144xf32> to vector<8x12x1x144xf32>
    %23 = vector.shape_cast %22 : vector<8x12x1x144xf32> to vector<8x12x144xf32>
    %24 = vector.extract_strided_slice %21 {offsets = [0, 0, 1, 0], sizes = [8, 12, 1, 144], strides = [1, 1, 1, 1]} : vector<8x12x2x144xf32> to vector<8x12x1x144xf32>
    %25 = vector.shape_cast %24 : vector<8x12x1x144xf32> to vector<8x12x144xf32>
    %26 = arith.maximumf %23, %25 : vector<8x12x144xf32>
    %27 = vector.extract_strided_slice %26 {offsets = [0, 0, 0], sizes = [8, 8, 144], strides = [1, 1, 1]} : vector<8x12x144xf32> to vector<8x8x144xf32>
    %28 = vector.extract_strided_slice %26 {offsets = [0, 1, 0], sizes = [8, 8, 144], strides = [1, 1, 1]} : vector<8x12x144xf32> to vector<8x8x144xf32>
    %29 = vector.extract_strided_slice %26 {offsets = [0, 2, 0], sizes = [8, 8, 144], strides = [1, 1, 1]} : vector<8x12x144xf32> to vector<8x8x144xf32>
    %30 = vector.extract_strided_slice %26 {offsets = [0, 3, 0], sizes = [8, 8, 144], strides = [1, 1, 1]} : vector<8x12x144xf32> to vector<8x8x144xf32>
    %31 = vector.extract_strided_slice %26 {offsets = [0, 4, 0], sizes = [8, 8, 144], strides = [1, 1, 1]} : vector<8x12x144xf32> to vector<8x8x144xf32>
    %32 = tpu.concatenate %27, %28, %29, %30, %31 in 2 : vector<8x8x144xf32>, vector<8x8x144xf32>, vector<8x8x144xf32>, vector<8x8x144xf32>, vector<8x8x144xf32> -> vector<8x8x720xf32>
    %33 = vector.shape_cast %32 : vector<8x8x720xf32> to vector<64x720xf32>
    %34 = arith.truncf %33 : vector<64x720xf32> to vector<64x720xbf16>
    %c0_7 = arith.constant 0 : index
    %c0_8 = arith.constant 0 : index
    %35 = vector.load %arg4[%c0_7, %c0_8] : memref<720x96xbf16, #tpu.memory_space<vmem>>, vector<720x96xbf16>
    %cst_9 = arith.constant dense<0.000000e+00> : vector<64x96xf32>
    %36 = tpu.matmul %34, %35, %cst_9 {dimension_numbers = #tpu.dot_dimension_numbers<[1], [0], [0], [1], [0, 0, 1, 1], [], []>} : vector<64x720xbf16>, vector<720x96xbf16>, vector<64x96xf32> -> vector<64x96xf32>
    %c0_10 = arith.constant 0 : index
    %c0_11 = arith.constant 0 : index
    %37 = vector.load %arg5[%c0_10, %c0_11] : memref<1x96xf32, #tpu.memory_space<vmem>>, vector<1x96xf32>
    %38 = vector.broadcast %37 : vector<1x96xf32> to vector<64x96xf32>
    %39 = arith.addf %36, %38 : vector<64x96xf32>
    %cst_12 = arith.constant 0.000000e+00 : f32
    %40 = vector.broadcast %cst_12 : f32 to vector<64x96xf32>
    %41 = arith.maximumf %39, %40 : vector<64x96xf32>
    %42 = vector.extract_strided_slice %41 {offsets = [0, 12], sizes = [64, 84], strides = [1, 1]} : vector<64x96xf32> to vector<64x84xf32>
    %43 = vector.extract_strided_slice %41 {offsets = [0, 0], sizes = [64, 12], strides = [1, 1]} : vector<64x96xf32> to vector<64x12xf32>
    %44 = tpu.concatenate %42, %43 in 1 : vector<64x84xf32>, vector<64x12xf32> -> vector<64x96xf32>
    %45 = arith.maximumf %41, %44 : vector<64x96xf32>
    %46 = vector.shape_cast %45 : vector<64x96xf32> to vector<8x4x2x96xf32>
    %47 = vector.extract_strided_slice %46 {offsets = [0, 0, 0, 0], sizes = [8, 4, 1, 96], strides = [1, 1, 1, 1]} : vector<8x4x2x96xf32> to vector<8x4x1x96xf32>
    %48 = vector.shape_cast %47 : vector<8x4x1x96xf32> to vector<8x4x96xf32>
    %49 = vector.extract_strided_slice %46 {offsets = [0, 0, 1, 0], sizes = [8, 4, 1, 96], strides = [1, 1, 1, 1]} : vector<8x4x2x96xf32> to vector<8x4x1x96xf32>
    %50 = vector.shape_cast %49 : vector<8x4x1x96xf32> to vector<8x4x96xf32>
    %51 = arith.maximumf %48, %50 : vector<8x4x96xf32>
    %cst_13 = arith.constant 0.000000e+00 : f32
    %52 = vector.broadcast %cst_13 : f32 to vector<8x120xf32>
    %c0_14 = arith.constant 0 : index
    %c0_15 = arith.constant 0 : index
    %53 = vector.load %arg7[%c0_14, %c0_15] : memref<1x120xf32, #tpu.memory_space<vmem>>, vector<1x120xf32>
    %54 = vector.broadcast %53 : vector<1x120xf32> to vector<8x120xf32>
    %55 = arith.addf %52, %54 : vector<8x120xf32>
    %56 = vector.extract_strided_slice %51 {offsets = [0, 0, 0], sizes = [8, 1, 96], strides = [1, 1, 1]} : vector<8x4x96xf32> to vector<8x1x96xf32>
    %57 = vector.shape_cast %56 : vector<8x1x96xf32> to vector<8x96xf32>
    %58 = arith.truncf %57 : vector<8x96xf32> to vector<8x96xbf16>
    %c0_16 = arith.constant 0 : index
    %c0_17 = arith.constant 0 : index
    %c0_18 = arith.constant 0 : index
    %59 = vector.load %arg6[%c0_16, %c0_17, %c0_18] : memref<4x96x120xbf16, #tpu.memory_space<vmem>>, vector<1x96x120xbf16>
    %60 = vector.shape_cast %59 : vector<1x96x120xbf16> to vector<96x120xbf16>
    %cst_19 = arith.constant dense<0.000000e+00> : vector<8x120xf32>
    %61 = tpu.matmul %58, %60, %cst_19 {dimension_numbers = #tpu.dot_dimension_numbers<[1], [0], [0], [1], [0, 0, 1, 1], [], []>} : vector<8x96xbf16>, vector<96x120xbf16>, vector<8x120xf32> -> vector<8x120xf32>
    %62 = arith.addf %55, %61 : vector<8x120xf32>
    %63 = vector.extract_strided_slice %51 {offsets = [0, 1, 0], sizes = [8, 1, 96], strides = [1, 1, 1]} : vector<8x4x96xf32> to vector<8x1x96xf32>
    %64 = vector.shape_cast %63 : vector<8x1x96xf32> to vector<8x96xf32>
    %65 = arith.truncf %64 : vector<8x96xf32> to vector<8x96xbf16>
    %c1 = arith.constant 1 : index
    %c0_20 = arith.constant 0 : index
    %c0_21 = arith.constant 0 : index
    %66 = vector.load %arg6[%c1, %c0_20, %c0_21] : memref<4x96x120xbf16, #tpu.memory_space<vmem>>, vector<1x96x120xbf16>
    %67 = vector.shape_cast %66 : vector<1x96x120xbf16> to vector<96x120xbf16>
    %cst_22 = arith.constant dense<0.000000e+00> : vector<8x120xf32>
    %68 = tpu.matmul %65, %67, %cst_22 {dimension_numbers = #tpu.dot_dimension_numbers<[1], [0], [0], [1], [0, 0, 1, 1], [], []>} : vector<8x96xbf16>, vector<96x120xbf16>, vector<8x120xf32> -> vector<8x120xf32>
    %69 = arith.addf %62, %68 : vector<8x120xf32>
    %70 = vector.extract_strided_slice %51 {offsets = [0, 2, 0], sizes = [8, 1, 96], strides = [1, 1, 1]} : vector<8x4x96xf32> to vector<8x1x96xf32>
    %71 = vector.shape_cast %70 : vector<8x1x96xf32> to vector<8x96xf32>
    %72 = arith.truncf %71 : vector<8x96xf32> to vector<8x96xbf16>
    %c2 = arith.constant 2 : index
    %c0_23 = arith.constant 0 : index
    %c0_24 = arith.constant 0 : index
    %73 = vector.load %arg6[%c2, %c0_23, %c0_24] : memref<4x96x120xbf16, #tpu.memory_space<vmem>>, vector<1x96x120xbf16>
    %74 = vector.shape_cast %73 : vector<1x96x120xbf16> to vector<96x120xbf16>
    %cst_25 = arith.constant dense<0.000000e+00> : vector<8x120xf32>
    %75 = tpu.matmul %72, %74, %cst_25 {dimension_numbers = #tpu.dot_dimension_numbers<[1], [0], [0], [1], [0, 0, 1, 1], [], []>} : vector<8x96xbf16>, vector<96x120xbf16>, vector<8x120xf32> -> vector<8x120xf32>
    %76 = arith.addf %69, %75 : vector<8x120xf32>
    %77 = vector.extract_strided_slice %51 {offsets = [0, 3, 0], sizes = [8, 1, 96], strides = [1, 1, 1]} : vector<8x4x96xf32> to vector<8x1x96xf32>
    %78 = vector.shape_cast %77 : vector<8x1x96xf32> to vector<8x96xf32>
    %79 = arith.truncf %78 : vector<8x96xf32> to vector<8x96xbf16>
    %c3 = arith.constant 3 : index
    %c0_26 = arith.constant 0 : index
    %c0_27 = arith.constant 0 : index
    %80 = vector.load %arg6[%c3, %c0_26, %c0_27] : memref<4x96x120xbf16, #tpu.memory_space<vmem>>, vector<1x96x120xbf16>
    %81 = vector.shape_cast %80 : vector<1x96x120xbf16> to vector<96x120xbf16>
    %cst_28 = arith.constant dense<0.000000e+00> : vector<8x120xf32>
    %82 = tpu.matmul %79, %81, %cst_28 {dimension_numbers = #tpu.dot_dimension_numbers<[1], [0], [0], [1], [0, 0, 1, 1], [], []>} : vector<8x96xbf16>, vector<96x120xbf16>, vector<8x120xf32> -> vector<8x120xf32>
    %83 = arith.addf %76, %82 : vector<8x120xf32>
    %84 = arith.truncf %83 : vector<8x120xf32> to vector<8x120xbf16>
    %c0_29 = arith.constant 0 : index
    %c0_30 = arith.constant 0 : index
    %85 = vector.load %arg8[%c0_29, %c0_30] : memref<120x60xbf16, #tpu.memory_space<vmem>>, vector<120x60xbf16>
    %cst_31 = arith.constant dense<0.000000e+00> : vector<8x60xf32>
    %86 = tpu.matmul %84, %85, %cst_31 {dimension_numbers = #tpu.dot_dimension_numbers<[1], [0], [0], [1], [0, 0, 1, 1], [], []>} : vector<8x120xbf16>, vector<120x60xbf16>, vector<8x60xf32> -> vector<8x60xf32>
    %c0_32 = arith.constant 0 : index
    %c0_33 = arith.constant 0 : index
    %87 = vector.load %arg9[%c0_32, %c0_33] : memref<1x60xf32, #tpu.memory_space<vmem>>, vector<1x60xf32>
    %88 = vector.broadcast %87 : vector<1x60xf32> to vector<8x60xf32>
    %89 = arith.addf %86, %88 : vector<8x60xf32>
    %90 = arith.truncf %89 : vector<8x60xf32> to vector<8x60xbf16>
    %c0_34 = arith.constant 0 : index
    %c0_35 = arith.constant 0 : index
    %91 = vector.load %arg10[%c0_34, %c0_35] : memref<60x128xbf16, #tpu.memory_space<vmem>>, vector<60x128xbf16>
    %cst_36 = arith.constant dense<0.000000e+00> : vector<8x128xf32>
    %92 = tpu.matmul %90, %91, %cst_36 {dimension_numbers = #tpu.dot_dimension_numbers<[1], [0], [0], [1], [0, 0, 1, 1], [], []>} : vector<8x60xbf16>, vector<60x128xbf16>, vector<8x128xf32> -> vector<8x128xf32>
    %c0_37 = arith.constant 0 : index
    %c0_38 = arith.constant 0 : index
    %93 = vector.load %arg11[%c0_37, %c0_38] : memref<1x128xf32, #tpu.memory_space<vmem>>, vector<1x128xf32>
    %94 = vector.broadcast %93 : vector<1x128xf32> to vector<8x128xf32>
    %95 = arith.addf %92, %94 : vector<8x128xf32>
    %c0_39 = arith.constant 0 : index
    %c0_40 = arith.constant 0 : index
    %96 = vector.load %arg12[%c0_39, %c0_40] : memref<8x128xf32, #tpu.memory_space<vmem>>, vector<8x128xf32>
    tpu.vector_store %arg12[%c0_39, %c0_40], %95 {strides = array<i32>} : memref<8x128xf32, #tpu.memory_space<vmem>>, vector<8x128xf32>,
    return
  }
  func.func @transform_0(%arg0: i32) -> (i32, i32, i32) {
    %c0_i32 = arith.constant 0 : i32
    %c0_i32_0 = arith.constant 0 : i32
    %c0_i32_1 = arith.constant 0 : i32
    return %arg0, %c0_i32, %c0_i32_0 : i32, i32, i32
  }
  func.func @transform_1(%arg0: i32) -> (i32, i32) {
    %c0_i32 = arith.constant 0 : i32
    %c0_i32_0 = arith.constant 0 : i32
    %c0_i32_1 = arith.constant 0 : i32
    return %c0_i32, %c0_i32_0 : i32, i32
  }
  func.func @transform_2(%arg0: i32) -> (i32, i32) {
    %c0_i32 = arith.constant 0 : i32
    %c0_i32_0 = arith.constant 0 : i32
    %c0_i32_1 = arith.constant 0 : i32
    return %c0_i32, %c0_i32_0 : i32, i32
  }
  func.func @transform_3(%arg0: i32) -> (i32, i32) {
    %c0_i32 = arith.constant 0 : i32
    %c0_i32_0 = arith.constant 0 : i32
    %c0_i32_1 = arith.constant 0 : i32
    return %c0_i32, %c0_i32_0 : i32, i32
  }
  func.func @transform_4(%arg0: i32) -> (i32, i32) {
    %c0_i32 = arith.constant 0 : i32
    %c0_i32_0 = arith.constant 0 : i32
    %c0_i32_1 = arith.constant 0 : i32
    return %c0_i32, %c0_i32_0 : i32, i32
  }
  func.func @transform_5(%arg0: i32) -> (i32, i32, i32) {
    %c0_i32 = arith.constant 0 : i32
    %c0_i32_0 = arith.constant 0 : i32
    %c0_i32_1 = arith.constant 0 : i32
    %c0_i32_2 = arith.constant 0 : i32
    return %c0_i32, %c0_i32_0, %c0_i32_1 : i32, i32, i32
  }
  func.func @transform_6(%arg0: i32) -> (i32, i32) {
    %c0_i32 = arith.constant 0 : i32
    %c0_i32_0 = arith.constant 0 : i32
    %c0_i32_1 = arith.constant 0 : i32
    return %c0_i32, %c0_i32_0 : i32, i32
  }
  func.func @transform_7(%arg0: i32) -> (i32, i32) {
    %c0_i32 = arith.constant 0 : i32
    %c0_i32_0 = arith.constant 0 : i32
    %c0_i32_1 = arith.constant 0 : i32
    return %c0_i32, %c0_i32_0 : i32, i32
  }
  func.func @transform_8(%arg0: i32) -> (i32, i32) {
    %c0_i32 = arith.constant 0 : i32
    %c0_i32_0 = arith.constant 0 : i32
    %c0_i32_1 = arith.constant 0 : i32
    return %c0_i32, %c0_i32_0 : i32, i32
  }
  func.func @transform_9(%arg0: i32) -> (i32, i32) {
    %c0_i32 = arith.constant 0 : i32
    %c0_i32_0 = arith.constant 0 : i32
    %c0_i32_1 = arith.constant 0 : i32
    return %c0_i32, %c0_i32_0 : i32, i32
  }
  func.func @transform_10(%arg0: i32) -> (i32, i32) {
    %c0_i32 = arith.constant 0 : i32
    %c0_i32_0 = arith.constant 0 : i32
    %c0_i32_1 = arith.constant 0 : i32
    return %c0_i32, %c0_i32_0 : i32, i32
  }
  func.func @transform_11(%arg0: i32) -> (i32, i32) {
    %c0_i32 = arith.constant 0 : i32
    %c0_i32_0 = arith.constant 0 : i32
    return %arg0, %c0_i32 : i32, i32
  }
}

</mosaic_0001>

<bundles_post_ra>
// kernel: network_forward.1
= control target key start
LH: loop header
LB: loop body
LE: loop exit
PB: predicated region body
PF: predicated region fallthrough
CT: control target
= control target key end

     0   :  { %16 = vsyncpa [#allocation3], 0  ;;  %s10998_s0 = inlined_call_operand.hbm [shape: bf16[8,28,28], index: 0, kind: input, shape index: {}]   ;;  %s10999_s1 = inlined_call_operand.hbm [shape: bf16[140,144], index: 1, kind: input, shape index: {}]   ;;  %s11000_s2 = inlined_call_operand.hbm [shape: f32[1,144], index: 2, kind: input, shape index: {}]   ;;  %s11001_s3 = inlined_call_operand.hbm [shape: bf16[720,96], index: 3, kind: input, shape index: {}]   ;;  %s11002_s4 = inlined_call_operand.hbm [shape: f32[1,96], index: 4, kind: input, shape index: {}]   ;;  %s11003_s5 = inlined_call_operand.hbm [shape: bf16[4,96,120], index: 5, kind: input, shape index: {}]   ;;  %s11004_s6 = inlined_call_operand.hbm [shape: f32[1,120], index: 6, kind: input, shape index: {}]   ;;  %s11005_s7 = inlined_call_operand.hbm [shape: bf16[120,60], index: 7, kind: input, shape index: {}]   ;;  %s11006_s8 = inlined_call_operand.hbm [shape: f32[1,60], index: 8, kind: input, shape index: {}]   ;;  %s11007_s9 = inlined_call_operand.hbm [shape: bf16[60,128], index: 9, kind: input, shape index: {}]   ;;  %s11008_s10 = inlined_call_operand.hbm [shape: f32[1,128], index: 10, kind: input, shape index: {}]   ;;  %s11009_s11 = inlined_call_operand.hbm [shape: f32[8,128], index: 11, kind: output, shape index: {}]  }
   0x1   :  { %17 = vsyncpa [#allocation6], 0 }
   0x2   :  { %18 = vsyncpa [#allocation9], 0 }
   0x3   :  { %19 = vsyncpa [#allocation12], 0 }
   0x4   :  { %20 = vsyncpa [#allocation15], 0 }
   0x5   :  { %21 = vsyncpa [#allocation18], 0 }
   0x6   :  { %22 = vsyncpa [#allocation4], 0  ;;  %s7384_s17 = smov [#allocation5]   ;;  %s7106_s21 = scalar_lea.hbm %s10999_s1, 2304 }
   0x7   :  { %s40_s18 = sshll.u32 %s7384_s17, 4  ;;  %p7107_p0 = scmp.ne.s32.totalorder %s10999_s1, %s7106_s21  ;;  %s41_s18 = int_to_ptr.vmem [resolvable:$true] %s40_s18 }
   0x8   :  { %p7110_p1 = scmp.lt.u32.totalorder %s7106_s21, %s10999_s1 }
   0xa   :  { %p7112_p2 = pnand %p7110_p1, %p7107_p0 }
   0xc   :  { %7115 = shalt.err (!%p7112_p2)
}
   0xd   :  { %s7116_s26 = scalar_lea.vmem %s41_s18, 2304  ;;  %p7121_p4 = scmp.lt.s32.totalorder %s41_s18, %s41_s18 }
   0xe   :  { %p7117_p3 = scmp.ne.s32.totalorder %s41_s18, %s7116_s26  ;;  %p7122_p5 = scmp.lt.s32.totalorder %s7116_s26, %s7116_s26 }
  0x10   :  { %p7123_p6 = por %p7122_p5, %p7121_p4 }
  0x12   :  { %p7124_p7 = pnand %p7123_p6, %p7117_p3 }
  0x14   :  { %7127 = shalt.err (!%p7124_p7)
}
  0x15   :  { %s7385_s27 = smov 128   ;;  %s7386_s28 = smov 8  }
  0x16   :  { %46 = dma.hbm_to_vmem [thread:$0]  %s10999_s1, 2304, %s41_s18, [#allocation6], %s7385_s27, %s7385_s27, %s7386_s28  }
  0x17   :  { %s7387_s12 = smov [#allocation8]   ;;  %s7388_s14 = smov [#allocation11]  }
  0x18   :  { %s62_s13 = sshll.u32 %s7387_s12, 4  ;;  %s84_s15 = sshll.u32 %s7388_s14, 4  ;;  %s63_s13 = int_to_ptr.vmem [resolvable:$true] %s62_s13  ;;  %s85_s15 = int_to_ptr.vmem [resolvable:$true] %s84_s15 }
  0x19   :  { %s7128_s19 = scalar_lea.hbm %s11001_s3, 5760 }
  0x1a   :  { %p7129_p8 = scmp.ne.s32.totalorder %s11001_s3, %s7128_s19  ;;  %p7132_p9 = scmp.lt.u32.totalorder %s7128_s19, %s11001_s3 }
  0x1c   :  { %p7134_p10 = pnand %p7132_p9, %p7129_p8 }
  0x1e   :  { %7137 = shalt.err (!%p7134_p10)
}
  0x1f   :  { %s7138_s1 = scalar_lea.vmem %s63_s13, 5760  ;;  %p7143_p12 = scmp.lt.s32.totalorder %s63_s13, %s63_s13 }
  0x20   :  { %p7139_p11 = scmp.ne.s32.totalorder %s63_s13, %s7138_s1  ;;  %p7144_p13 = scmp.lt.s32.totalorder %s7138_s1, %s7138_s1 }
  0x22   :  { %p7145_p0 = por %p7144_p13, %p7143_p12 }
  0x24   :  { %p7146_p1 = pnand %p7145_p0, %p7139_p11 }
  0x26   :  { %7149 = shalt.err (!%p7146_p1)
}
  0x27   :  { %s7389_s18 = smov 64   ;;  %s7390_s24 = smov 4  }
  0x28   :  { %68 = dma.hbm_to_vmem [thread:$0]  %s11001_s3, 5760, %s63_s13, [#allocation9], %s7389_s18, %s7389_s18, %s7390_s24  }
  0x29   :  { %s7150_s29 = scalar_lea.hbm %s11003_s5, 3072 }
  0x2a   :  { %p7151_p2 = scmp.ne.s32.totalorder %s11003_s5, %s7150_s29  ;;  %p7154_p3 = scmp.lt.u32.totalorder %s7150_s29, %s11003_s5 }
  0x2c   :  { %p7156_p4 = pnand %p7154_p3, %p7151_p2 }
  0x2e   :  { %7159 = shalt.err (!%p7156_p4)
}
  0x2f   :  { %s7160_s17 = scalar_lea.vmem %s85_s15, 3072  ;;  %p7165_p6 = scmp.lt.s32.totalorder %s85_s15, %s85_s15 }
  0x30   :  { %p7161_p5 = scmp.ne.s32.totalorder %s85_s15, %s7160_s17  ;;  %p7166_p7 = scmp.lt.s32.totalorder %s7160_s17, %s7160_s17 }
  0x32   :  { %p7167_p8 = por %p7166_p7, %p7165_p6 }
  0x34   :  { %p7168_p9 = pnand %p7167_p8, %p7161_p5 }
  0x36   :  { %7171 = shalt.err (!%p7168_p9)
}
  0x37   :  { %90 = dma.hbm_to_vmem [thread:$0]  %s11003_s5, 3072, %s85_s15, [#allocation12], %s7389_s18, %s7389_s18, %s7390_s24  }
  0x38   :  { %s7391_s19 = smov [#allocation14]   ;;  %s7392_s21 = smov [#allocation17]  }
  0x39   :  { %s106_s20 = sshll.u32 %s7391_s19, 4  ;;  %s128_s22 = sshll.u32 %s7392_s21, 4  ;;  %s107_s20 = int_to_ptr.vmem [resolvable:$true] %s106_s20  ;;  %s129_s22 = int_to_ptr.vmem [resolvable:$true] %s128_s22 }
  0x3a   :  { %s7172_s25 = scalar_lea.hbm %s11005_s7, 960 }
  0x3b   :  { %p7173_p10 = scmp.ne.s32.totalorder %s11005_s7, %s7172_s25  ;;  %p7176_p11 = scmp.lt.u32.totalorder %s7172_s25, %s11005_s7 }
  0x3d   :  { %p7178_p12 = pnand %p7176_p11, %p7173_p10 }
  0x3f   :  { %7181 = shalt.err (!%p7178_p12)
}
  0x40   :  { %s7182_s5 = scalar_lea.vmem %s107_s20, 960  ;;  %p7187_p0 = scmp.lt.s32.totalorder %s107_s20, %s107_s20 }
  0x41   :  { %p7183_p13 = scmp.ne.s32.totalorder %s107_s20, %s7182_s5  ;;  %p7188_p1 = scmp.lt.s32.totalorder %s7182_s5, %s7182_s5 }
  0x43   :  { %p7189_p2 = por %p7188_p1, %p7187_p0 }
  0x45   :  { %p7190_p3 = pnand %p7189_p2, %p7183_p13 }
  0x47   :  { %7193 = shalt.err (!%p7190_p3)
}
  0x48   :  { %112 = dma.hbm_to_vmem [thread:$0]  %s11005_s7, 960, %s107_s20, [#allocation15], %s7389_s18, %s7389_s18, %s7390_s24  }
  0x49   :  { %s7194_s16 = scalar_lea.hbm %s11007_s9, 512 }
  0x4a   :  { %p7195_p4 = scmp.ne.s32.totalorder %s11007_s9, %s7194_s16  ;;  %p7198_p5 = scmp.lt.u32.totalorder %s7194_s16, %s11007_s9 }
  0x4c   :  { %p7200_p6 = pnand %p7198_p5, %p7195_p4 }
  0x4e   :  { %7203 = shalt.err (!%p7200_p6)
}
  0x4f   :  { %s7204_s21 = scalar_lea.vmem %s129_s22, 512  ;;  %p7209_p8 = scmp.lt.s32.totalorder %s129_s22, %s129_s22 }
  0x50   :  { %p7205_p7 = scmp.ne.s32.totalorder %s129_s22, %s7204_s21  ;;  %p7210_p9 = scmp.lt.s32.totalorder %s7204_s21, %s7204_s21 }
  0x52   :  { %p7211_p10 = por %p7210_p9, %p7209_p8 }
  0x54   :  { %p7212_p11 = pnand %p7211_p10, %p7205_p7 }
  0x56   :  { %7215 = shalt.err (!%p7212_p11)
}
  0x57   :  { %134 = dma.hbm_to_vmem [thread:$0]  %s11007_s9, 512, %s129_s22, [#allocation18], %s7389_s18, %s7389_s18, %s7390_s24  }
  0x58   :  { %s7393_s23 = smov [#allocation2]   ;;  %s7394_s25 = smov [#allocation7]  }
  0x59   :  { %s28_s1 = sshll.u32 %s7393_s23, 4  ;;  %s53_s26 = sshll.u32 %s7394_s25, 4  ;;  %s29_s1 = int_to_ptr.vmem [resolvable:$true] %s28_s1  ;;  %s54_s26 = int_to_ptr.vmem [resolvable:$true] %s53_s26 }
  0x5a   :  { %s7216_s29 = scalar_lea.hbm %s10998_s0, 2048 }
  0x5b   :  { %p7217_p12 = scmp.ne.s32.totalorder %s10998_s0, %s7216_s29  ;;  %p7220_p13 = scmp.lt.u32.totalorder %s7216_s29, %s10998_s0 }
  0x5d   :  { %p7222_p0 = pnand %p7220_p13, %p7217_p12 }
  0x5f   :  { %7225 = shalt.err (!%p7222_p0)
}
  0x60   :  { %s7226_s9 = scalar_lea.vmem %s29_s1, 2048  ;;  %p7231_p2 = scmp.lt.s32.totalorder %s29_s1, %s29_s1 }
  0x61   :  { %p7227_p1 = scmp.ne.s32.totalorder %s29_s1, %s7226_s9  ;;  %p7232_p3 = scmp.lt.s32.totalorder %s7226_s9, %s7226_s9 }
  0x63   :  { %p7233_p4 = por %p7232_p3, %p7231_p2 }
  0x65   :  { %p7234_p5 = pnand %p7233_p4, %p7227_p1 }
  0x67   :  { %7237 = shalt.err (!%p7234_p5)
}
  0x68   :  { %34 = dma.hbm_to_vmem [thread:$0]  %s10998_s0, 2048, %s29_s1, [#allocation3], %s7389_s18, %s7389_s18, %s7390_s24  }
  0x69   :  { %s7238_s3 = scalar_lea.hbm %s11000_s2, 32 }
  0x6a   :  { %p7239_p6 = scmp.ne.s32.totalorder %s11000_s2, %s7238_s3  ;;  %p7242_p7 = scmp.lt.u32.totalorder %s7238_s3, %s11000_s2 }
  0x6c   :  { %p7244_p8 = pnand %p7242_p7, %p7239_p6 }
  0x6e   :  { %7247 = shalt.err (!%p7244_p8)
}
  0x6f   :  { %s7248_s20 = scalar_lea.vmem %s54_s26, 32  ;;  %p7253_p10 = scmp.lt.s32.totalorder %s54_s26, %s54_s26 }
  0x70   :  { %p7249_p9 = scmp.ne.s32.totalorder %s54_s26, %s7248_s20  ;;  %p7254_p11 = scmp.lt.s32.totalorder %s7248_s20, %s7248_s20 }
  0x72   :  { %p7255_p12 = por %p7254_p11, %p7253_p10 }
  0x74   :  { %p7256_p13 = pnand %p7255_p12, %p7249_p9 }
  0x76   :  { %7259 = shalt.err (!%p7256_p13)
}
  0x77   :  { %56 = dma.hbm_to_vmem [thread:$0]  %s11000_s2, 32, %s54_s26, [#allocation6]  }
  0x78   :  { %s7395_s23 = smov [#allocation10]   ;;  %s7396_s25 = smov [#allocation13]  }
  0x79   :  { %s75_s1 = sshll.u32 %s7395_s23, 4  ;;  %s97_s27 = sshll.u32 %s7396_s25, 4  ;;  %s76_s1 = int_to_ptr.vmem [resolvable:$true] %s75_s1  ;;  %s98_s27 = int_to_ptr.vmem [resolvable:$true] %s97_s27 }
  0x7a   :  { %s7260_s5 = scalar_lea.hbm %s11002_s4, 16 }
  0x7b   :  { %p7261_p0 = scmp.ne.s32.totalorder %s11002_s4, %s7260_s5  ;;  %p7264_p1 = scmp.lt.u32.totalorder %s7260_s5, %s11002_s4 }
  0x7d   :  { %p7266_p2 = pnand %p7264_p1, %p7261_p0 }
  0x7f   :  { %7269 = shalt.err (!%p7266_p2)
}
  0x80   :  { %s7270_s2 = scalar_lea.vmem %s76_s1, 16  ;;  %s7274_s26 = scalar_lea.vmem %s76_s1, 32 }
  0x81   :  { %p7271_p3 = scmp.ne.s32.totalorder %s76_s1, %s7270_s2  ;;  %p7275_p4 = scmp.lt.s32.totalorder %s76_s1, %s76_s1 }
  0x82   :  { %p7276_p5 = scmp.lt.s32.totalorder %s7274_s26, %s7270_s2 }
  0x84   :  { %p7277_p6 = por %p7276_p5, %p7275_p4 }
  0x86   :  { %p7278_p7 = pnand %p7277_p6, %p7271_p3 }
  0x88   :  { %7281 = shalt.err (!%p7278_p7)
}
  0x89   :  { %78 = dma.hbm_to_vmem [thread:$0]  %s11002_s4, 16, %s76_s1, [#allocation9]  }
  0x8a   :  { %s7282_s3 = scalar_lea.hbm %s11004_s6, 16 }
  0x8b   :  { %p7283_p8 = scmp.ne.s32.totalorder %s11004_s6, %s7282_s3  ;;  %p7286_p9 = scmp.lt.u32.totalorder %s7282_s3, %s11004_s6 }
  0x8d   :  { %p7288_p10 = pnand %p7286_p9, %p7283_p8 }
  0x8f   :  { %7291 = shalt.err (!%p7288_p10)
}
  0x90   :  { %s7292_s20 = scalar_lea.vmem %s98_s27, 16  ;;  %s7296_s0 = scalar_lea.vmem %s98_s27, 32 }
  0x91   :  { %p7293_p11 = scmp.ne.s32.totalorder %s98_s27, %s7292_s20  ;;  %p7297_p12 = scmp.lt.s32.totalorder %s98_s27, %s98_s27 }
  0x92   :  { %p7298_p13 = scmp.lt.s32.totalorder %s7296_s0, %s7292_s20 }
  0x94   :  { %p7299_p0 = por %p7298_p13, %p7297_p12 }
  0x96   :  { %p7300_p1 = pnand %p7299_p0, %p7293_p11 }
  0x98   :  { %7303 = shalt.err (!%p7300_p1)
}
  0x99   :  { %100 = dma.hbm_to_vmem [thread:$0]  %s11004_s6, 16, %s98_s27, [#allocation12]  }
  0x9a   :  { %s7397_s23 = smov [#allocation16]   ;;  %s7398_s25 = smov [#allocation19]  }
  0x9b   :  { %s119_s1 = sshll.u32 %s7397_s23, 4  ;;  %s141_s28 = sshll.u32 %s7398_s25, 4  ;;  %s120_s1 = int_to_ptr.vmem [resolvable:$true] %s119_s1  ;;  %s142_s28 = int_to_ptr.vmem [resolvable:$true] %s141_s28 }
  0x9c   :  { %s7304_s15 = scalar_lea.hbm %s11006_s8, 16 }
  0x9d   :  { %p7305_p2 = scmp.ne.s32.totalorder %s11006_s8, %s7304_s15  ;;  %p7308_p3 = scmp.lt.u32.totalorder %s7304_s15, %s11006_s8 }
  0x9f   :  { %p7310_p4 = pnand %p7308_p3, %p7305_p2 }
  0xa1   :  { %7313 = shalt.err (!%p7310_p4)
}
  0xa2   :  { %s7314_s6 = scalar_lea.vmem %s120_s1, 16  ;;  %s7318_s27 = scalar_lea.vmem %s120_s1, 32 }
  0xa3   :  { %p7315_p5 = scmp.ne.s32.totalorder %s120_s1, %s7314_s6  ;;  %p7319_p6 = scmp.lt.s32.totalorder %s120_s1, %s120_s1 }
  0xa4   :  { %p7320_p7 = scmp.lt.s32.totalorder %s7318_s27, %s7314_s6 }
  0xa6   :  { %p7321_p8 = por %p7320_p7, %p7319_p6 }
  0xa8   :  { %p7322_p9 = pnand %p7321_p8, %p7315_p5 }
  0xaa   :  { %7325 = shalt.err (!%p7322_p9)
}
  0xab   :  { %122 = dma.hbm_to_vmem [thread:$0]  %s11006_s8, 16, %s120_s1, [#allocation15]  }
  0xac   :  { %s7326_s17 = scalar_lea.hbm %s11008_s10, 16 }
  0xad   :  { %p7327_p10 = scmp.ne.s32.totalorder %s11008_s10, %s7326_s17  ;;  %p7330_p11 = scmp.lt.u32.totalorder %s7326_s17, %s11008_s10 }
  0xaf   :  { %p7332_p12 = pnand %p7330_p11, %p7327_p10 }
  0xb1   :  { %7335 = shalt.err (!%p7332_p12)
}
  0xb2   :  { %s7336_s7 = scalar_lea.vmem %s142_s28, 16  ;;  %s7340_s20 = scalar_lea.vmem %s142_s28, 32 }
  0xb3   :  { %p7337_p13 = scmp.ne.s32.totalorder %s142_s28, %s7336_s7  ;;  %p7341_p0 = scmp.lt.s32.totalorder %s142_s28, %s142_s28 }
  0xb4   :  { %p7342_p1 = scmp.lt.s32.totalorder %s7340_s20, %s7336_s7 }
  0xb6   :  { %p7343_p2 = por %p7342_p1, %p7341_p0 }
  0xb8   :  { %p7344_p3 = pnand %p7343_p2, %p7337_p13 }
  0xba   :  { %7347 = shalt.err (!%p7344_p3)
}
  0xbb   :  { %144 = dma.hbm_to_vmem [thread:$0]  %s11008_s10, 16, %s142_s28, [#allocation18]  }
  0xbc   :  { %7370 = dma.done.wait [#allocation3], 2048  }
  0xbd   :  { %7371 = vsyncadd [#allocation3], 4294965248 }
  0xbe   :  { %7372 = dma.done.wait [#allocation6], 2336  }
  0xbf   :  { %7373 = vsyncadd [#allocation6], 4294964960 }
  0xc0   :  { %7374 = dma.done.wait [#allocation9], 5776  }
  0xc1   :  { %7375 = vsyncadd [#allocation9], 4294961520 }
  0xc2   :  { %7376 = dma.done.wait [#allocation12], 3088  }
  0xc3   :  { %7377 = vsyncadd [#allocation12], 4294964208 }
  0xc4   :  { %7378 = dma.done.wait [#allocation15], 976  }
  0xc5   :  { %7379 = vsyncadd [#allocation15], 4294966320 }
  0xc6   :  { %7380 = dma.done.wait [#allocation18], 528  }
  0xc7   :  { %7381 = vsyncadd [#allocation18], 4294966768  ;;  %vm275_vm0 = vcmask 1046528   ;;  %vm533_vm1 = vcmask 1044480   ;;  %vm404_vm2 = vcmask 1045504   ;;  %v6302_v0 = vld [vmem:[#allocation2] sm:$0xff]  }
  0xc8   :  { %v181_v1 = vld [vmem:[#allocation2 + $0x8] ss:$16 sps:$4 sm:$0xff]   ;;  %vm662_vm3 = vcmask 1043456   ;;  %v182_v2 = vld [vmem:[#allocation2 + $0xc] sm:$0x3]  ;;  %v7621_v3 = vunpack.c.l.bf16 %v6302_v0  ;;  %v7623_v4 = vunpack.c.h.bf16 %v6302_v0  ;;  %v6333_v6 = vld [vmem:[#allocation2 + $0x10] sm:$0xff]  }
  0xc9   :  { %v7625_v5 = vunpack.c.l.bf16 %v181_v1  ;;  %v7627_v7 = vunpack.c.l.bf16 %v182_v2  ;;  %v186_v8 = vld [vmem:[#allocation2 + $0x1c] sm:$0x3]  ;;  %v7629_v9 = vunpack.c.l.bf16 %v6333_v6  ;;  %v7631_v10 = vunpack.c.h.bf16 %v6333_v6  ;;  %v6998_v33 = vld [vmem:[#allocation5 + $0x4] ss:$8 sps:$4 sm:$0xff]   ;;  %v7000_v34 = vld [vmem:[#allocation5] ss:$8 sps:$4 sm:$0xff]  }
  0xca   :  { %v7633_v11 = vunpack.c.h.bf16 %v181_v1  ;;  %v7635_v12 = vunpack.c.l.bf16 %v186_v8  ;;  %v276_v13 = vrot.slane %v7621_v3, 1  ;;  %v277_v14 = vrot.slane %v7623_v4, 1  ;;  %s7399_s10 = smov 28   ;;  %s7400_s4 = smov 84   ;;  %1076 = vmatprep.subr.bf16.mxu0 %v6998_v33  ;;  %v7001_v43 = vld [vmem:[#allocation5 + $0x14] ss:$8 sps:$4 sm:$0xff]  }
  0xcb   :  { %v279_v15 = vrot.slane %v7625_v5, 1  ;;  %v534_v16 = vrot.slane %v7621_v3, 3  ;;  %v535_v17 = vrot.slane %v7623_v4, 3  ;;  %v537_v18 = vrot.slane %v7625_v5, 3  ;;  %1077 = vmatpush1.bf16.msra.mxu0 %v7000_v34  ;;  %v7003_v48 = vld [vmem:[#allocation5 + $0x10] ss:$8 sps:$4 sm:$0xff]  }
  0xcc   :  { %v405_v19 = vrot.slane %v7621_v3, 2  ;;  %v406_v20 = vrot.slane %v7623_v4, 2  ;;  %v278_v21 = vsel %vm275_vm0, %v276_v13, %v277_v14  ;;  %v408_v23 = vrot.slane %v7625_v5, 2  ;;  %1078 = vmatprep.subr.bf16.mxu0 %v7001_v43  ;;  %v7004_v53 = vld [vmem:[#allocation5 + $0x24] ss:$8 sps:$4 sm:$0xff]   ;;  %s7401_s24 = smov 56  }
  0xcd   :  { %v280_v22 = vsel %vm275_vm0, %v277_v14, %v279_v15  ;;  %v663_v24 = vrot.slane %v7621_v3, 4  ;;  %v536_v26 = vsel %vm533_vm1, %v534_v16, %v535_v17  ;;  %v538_v27 = vsel %vm533_vm1, %v535_v17, %v537_v18  ;;  %s7402_s23 = smov 112   ;;  %v6334_v2 = vld [vmem:[#allocation2 + $0x20] sm:$0xff]   ;;  %v7007_v14 = vld [vmem:[#allocation5 + $0x34] ss:$8 sps:$4 sm:$0xff]   ;;  %s7403_s1 = smov 122  }
  0xce   :  { %v6598_v25 = vpack.i.bf16 %v280_v22, %v278_v21  ;;  %v407_v28 = vsel %vm404_vm2, %v405_v19, %v406_v20  ;;  %v6608_v29 = vpack.i.bf16 %v538_v27, %v536_v26  ;;  %v409_v30 = vsel %vm404_vm2, %v406_v20, %v408_v23  ;;  %v7006_v6 = vld [vmem:[#allocation5 + $0x20] ss:$8 sps:$4 sm:$0xff]   ;;  %v7009_v26 = vld [vmem:[#allocation5 + $0x30] ss:$8 sps:$4 sm:$0xff]   ;;  %s7404_s25 = smov 10   ;;  %s7406_s28 = smov 16  }
  0xcf   :  { %v664_v31 = vrot.slane %v7623_v4, 4  ;;  %v666_v32 = vrot.slane %v7625_v5, 4  ;;  %v6603_v35 = vpack.i.bf16 %v409_v30, %v407_v28  ;;  %v281_v36 = vrot.slane %v7627_v7, 1  ;;  %1079 = vmatpush1.bf16.msra.mxu0 %v7003_v48  ;;  %v7690_v19 = vld [vmem:[#allocation2 + $0x28] ss:$16 sps:$4 sm:$0xff]   ;;  %s7407_s29 = smov 32  }
  0xd0   :  { %6599 = vrot.lane.b32.xlu0 %v6598_v25, %s7399_s10  ;;  %v283_v37 = vrot.slane %v7629_v9, 1  ;;  %v284_v38 = vrot.slane %v7631_v10, 1  ;;  %6609 = vrot.lane.b32.xlu1 %v6608_v29, %s7400_s4  ;;  %v410_v41 = vrot.slane %v7627_v7, 2  ;;  %v412_v42 = vrot.slane %v7629_v9, 2  ;;  %s7408_s5 = smov 48   ;;  %s7413_s15 = smov [#allocation20]  }
  0xd1   :  { %v665_v39 = vsel %vm662_vm3, %v663_v24, %v664_v31  ;;  %v667_v40 = vsel %vm662_vm3, %v664_v31, %v666_v32  ;;  %v282_v45 = vsel %vm275_vm0, %v279_v15, %v281_v36  ;;  %v413_v47 = vrot.slane %v7631_v10, 2  ;;  %1080 = vmatprep.subr.bf16.mxu0 %v7004_v53  ;;  %v7010_v31 = vld [vmem:[#allocation5 + $0x44] ss:$8 sps:$4 sm:$0xff]   ;;  %s6033_s30 = sshll.u32 %s7413_s15, 4  ;;  %s6034_s30 = int_to_ptr.vmem [resolvable:$true] %s6033_s30 }
  0xd2   :  { %v6613_v44 = vpack.i.bf16 %v667_v40, %v665_v39  ;;  %v285_v46 = vsel %vm275_vm0, %v283_v37, %v284_v38  ;;  %v411_v50 = vsel %vm404_vm2, %v408_v23, %v410_v41  ;;  %v539_v51 = vrot.slane %v7627_v7, 3  ;;  %v190_v39 = vld [vmem:[#allocation2 + $0x2c] sm:$0x3]  ;;  %v7012_v40 = vld [vmem:[#allocation5 + $0x40] ss:$8 sps:$4 sm:$0xff]   ;;  %s7348_s12 = scalar_lea.vmem %s6034_s30, 128  ;;  %p7353_p5 = scmp.lt.s32.totalorder %s6034_s30, %s6034_s30 }
  0xd3   :  { %v6618_v49 = vpack.i.bf16 %v285_v46, %v282_v45  ;;  %v541_v52 = vrot.slane %v7629_v9, 3  ;;  %v414_v54 = vsel %vm404_vm2, %v412_v42, %v413_v47  ;;  %v542_v55 = vrot.slane %v7631_v10, 3  ;;  %1081 = vmatpush1.bf16.msra.mxu0 %v7006_v6  ;;  %v6335_v45 = vld [vmem:[#allocation2 + $0x30] sm:$0xff]   ;;  %p7349_p4 = scmp.ne.s32.totalorder %s6034_s30, %s7348_s12  ;;  %p7354_p6 = scmp.lt.s32.totalorder %s7348_s12, %s7348_s12 }
  0xd4   :  { %6604 = vrot.lane.b32.xlu0 %v6603_v35, %s7401_s24  ;;  %v668_v56 = vrot.slane %v7627_v7, 4  ;;  %v670_v57 = vrot.slane %v7629_v9, 4  ;;  %6614 = vrot.lane.b32.xlu1 %v6613_v44, %s7402_s23  ;;  %v6623_v58 = vpack.i.bf16 %v414_v54, %v411_v50  ;;  %v540_v59 = vsel %vm533_vm1, %v537_v18, %v539_v51  ;;  %v7013_v50 = vld [vmem:[#allocation5 + $0x54] ss:$8 sps:$4 sm:$0xff]   ;;  %v7015_v54 = vld [vmem:[#allocation5 + $0x50] ss:$8 sps:$4 sm:$0xff]  }
  0xd5   :  { %v671_v60 = vrot.slane %v7631_v10, 4  ;;  %v286_v61 = vrot.slane %v7633_v11, 1  ;;  %v543_v62 = vsel %vm533_vm1, %v541_v52, %v542_v55  ;;  %v288_v0 = vrot.slane %v7635_v12, 1  ;;  %1082 = vmatprep.subr.bf16.mxu0 %v7007_v14  ;;  %p7355_p7 = por %p7354_p6, %p7353_p5 }
  0xd6   :  { %v669_v63 = vsel %vm662_vm3, %v666_v32, %v668_v56  ;;  %v415_v1 = vrot.slane %v7633_v11, 2  ;;  %v6628_v7 = vpack.i.bf16 %v543_v62, %v540_v59  ;;  %v417_v13 = vrot.slane %v7635_v12, 2  ;;  %v7016_v59 = vld [vmem:[#allocation5 + $0x64] ss:$8 sps:$4 sm:$0xff]  }
  0xd7   :  { %v672_v8 = vsel %vm662_vm3, %v670_v57, %v671_v60  ;;  %v287_v15 = vsel %vm275_vm0, %v284_v38, %v286_v61  ;;  %v289_v16 = vsel %vm275_vm0, %v286_v61, %v288_v0  ;;  %v544_v18 = vrot.slane %v7633_v11, 3  ;;  %1083 = vmatpush1.bf16.msra.mxu0 %v7009_v26  ;;  %p7356_p8 = pnand %p7355_p7, %p7349_p4 }
  0xd8   :  { %6619 = vrot.lane.b32.xlu0 %v6618_v49, %s7399_s10  ;;  %v416_v17 = vsel %vm404_vm2, %v413_v47, %v415_v1  ;;  %6624 = vrot.lane.b32.xlu1 %v6623_v58, %s7401_s24  ;;  %v6633_v20 = vpack.i.bf16 %v672_v8, %v669_v63  ;;  %v418_v21 = vsel %vm404_vm2, %v415_v1, %v417_v13  ;;  %v546_v22 = vrot.slane %v7635_v12, 3  ;;  %v194_v58 = vld [vmem:[#allocation2 + $0x3c] sm:$0x3] }
  0xd9   :  { %v673_v23 = vrot.slane %v7633_v11, 4  ;;  %v675_v24 = vrot.slane %v7635_v12, 4  ;;  %v7697_v25 = vunpack.c.l.bf16 %v6334_v2  ;;  %v6638_v27 = vpack.i.bf16 %v289_v16, %v287_v15  ;;  %1084 = vmatprep.subr.bf16.mxu0 %v7010_v31  ;;  %v7018_v15 = vld [vmem:[#allocation5 + $0x60] ss:$8 sps:$4 sm:$0xff]  }
  0xda   :  { %v6643_v28 = vpack.i.bf16 %v418_v21, %v416_v17  ;;  %v7699_v29 = vunpack.c.h.bf16 %v6334_v2  ;;  %v7702_v30 = vunpack.c.l.bf16 %v7690_v19  ;;  %v545_v32 = vsel %vm533_vm1, %v542_v55, %v544_v18  ;;  %v7019_v21 = vld [vmem:[#allocation5 + $0x74] ss:$8 sps:$4 sm:$0xff]  }
  0xdb   :  { %v547_v33 = vsel %vm533_vm1, %v544_v18, %v546_v22  ;;  %v290_v12 = vrot.slane %v7697_v25, 1  ;;  %v419_v34 = vrot.slane %v7697_v25, 2  ;;  %v674_v35 = vsel %vm662_vm3, %v671_v60, %v673_v23  ;;  %1085 = vmatpush1.bf16.msra.mxu0 %v7012_v40 }
  0xdc   :  { %6629 = vrot.lane.b32.xlu0 %v6628_v7, %s7400_s4  ;;  %6634 = vrot.lane.b32.xlu1 %v6633_v20, %s7402_s23  ;;  %v291_v36 = vrot.slane %v7699_v29, 1  ;;  %v293_v37 = vrot.slane %v7702_v30, 1  ;;  %v420_v38 = vrot.slane %v7699_v29, 2  ;;  %v676_v41 = vsel %vm662_vm3, %v673_v23, %v675_v24 }
  0xdd   :  { %v422_v42 = vrot.slane %v7702_v30, 2  ;;  %v548_v43 = vrot.slane %v7697_v25, 3  ;;  %v549_v44 = vrot.slane %v7699_v29, 3  ;;  %v551_v48 = vrot.slane %v7702_v30, 3  ;;  %1086 = vmatprep.subr.bf16.mxu0 %v7013_v50 }
  0xde   :  { %v292_v46 = vsel %vm275_vm0, %v290_v12, %v291_v36  ;;  %v294_v47 = vsel %vm275_vm0, %v291_v36, %v293_v37  ;;  %v677_v49 = vrot.slane %v7697_v25, 4  ;;  %v6648_v51 = vpack.i.bf16 %v547_v33, %v545_v32 }
  0xdf   :  { %v421_v52 = vsel %vm404_vm2, %v419_v34, %v420_v38  ;;  %v423_v53 = vsel %vm404_vm2, %v420_v38, %v422_v42  ;;  %v6653_v55 = vpack.i.bf16 %v676_v41, %v674_v35  ;;  %v678_v56 = vrot.slane %v7699_v29, 4  ;;  %1087 = vmatpush1.bf16.msra.mxu0 %v7015_v54  ;;  %v7757_v38 = vld [vmem:[#allocation2 + $0x48] ss:$16 sps:$4 sm:$0xff]  }
  0xe0   :  { %6639 = vrot.lane.b32.xlu0 %v6638_v27, %s7399_s10  ;;  %6644 = vrot.lane.b32.xlu1 %v6643_v28, %s7401_s24  ;;  %v680_v57 = vrot.slane %v7702_v30, 4  ;;  %v6658_v60 = vpack.i.bf16 %v294_v47, %v292_v46  ;;  %v7728_v61 = vunpack.c.l.bf16 %v6335_v45  ;;  %v7730_v62 = vunpack.c.h.bf16 %v6335_v45  ;;  %v6336_v28 = vld [vmem:[#allocation2 + $0x40] sm:$0xff]  }
  0xe1   :  { %v222_v63 = vunpack.c.l.bf16 %v190_v39  ;;  %v6663_v0 = vpack.i.bf16 %v423_v53, %v421_v52  ;;  %v550_v1 = vsel %vm533_vm1, %v548_v43, %v549_v44  ;;  %v552_v2 = vsel %vm533_vm1, %v549_v44, %v551_v48  ;;  %1088 = vmatprep.subr.bf16.mxu0 %v7016_v59  ;;  %v7022_v39 = vld [vmem:[#allocation5 + $0x84] ss:$8 sps:$4 sm:$0x3f]   ;;  %v7021_v44 = vld [vmem:[#allocation5 + $0x70] ss:$8 sps:$4 sm:$0xff]  }
  0xe2   :  { %v679_v6 = vsel %vm662_vm3, %v677_v49, %v678_v56  ;;  %v681_v7 = vsel %vm662_vm3, %v678_v56, %v680_v57  ;;  %v297_v13 = vrot.slane %v7728_v61, 1  ;;  %v298_v14 = vrot.slane %v7730_v62, 1 }
  0xe3   :  { %v295_v8 = vrot.slane %v222_v63, 1  ;;  %v424_v16 = vrot.slane %v222_v63, 2  ;;  %v426_v17 = vrot.slane %v7728_v61, 2  ;;  %v427_v18 = vrot.slane %v7730_v62, 2  ;;  %1089 = vmatpush1.bf16.msra.mxu0 %v7018_v15 }
  0xe4   :  { %6649 = vrot.lane.b32.xlu0 %v6648_v51, %s7400_s4  ;;  %6654 = vrot.lane.b32.xlu1 %v6653_v55, %s7402_s23  ;;  %v553_v20 = vrot.slane %v222_v63, 3  ;;  %v555_v22 = vrot.slane %v7728_v61, 3  ;;  %v556_v23 = vrot.slane %v7730_v62, 3  ;;  %v7745_v24 = vunpack.c.h.bf16 %v7690_v19 }
  0xe5   :  { %v7747_v26 = vunpack.c.l.bf16 %v194_v58  ;;  %v6668_v27 = vpack.i.bf16 %v552_v2, %v550_v1  ;;  %v6673_v31 = vpack.i.bf16 %v681_v7, %v679_v6  ;;  %v296_v32 = vsel %vm275_vm0, %v293_v37, %v295_v8  ;;  %1090 = vmatprep.subr.bf16.mxu0 %v7019_v21  ;;  %v198_v2 = vld [vmem:[#allocation2 + $0x4c] sm:$0x3]  ;;  %v6337_v6 = vld [vmem:[#allocation2 + $0x50] sm:$0xff]  }
  0xe6   :  { %v682_v33 = vrot.slane %v222_v63, 4  ;;  %v684_v12 = vrot.slane %v7728_v61, 4  ;;  %v299_v34 = vsel %vm275_vm0, %v297_v13, %v298_v14  ;;  %v425_v19 = vsel %vm404_vm2, %v422_v42, %v424_v16 }
  0xe7   :  { %v428_v35 = vsel %vm404_vm2, %v426_v17, %v427_v18  ;;  %v685_v36 = vrot.slane %v7730_v62, 4  ;;  %v554_v40 = vsel %vm533_vm1, %v551_v48, %v553_v20  ;;  %v557_v37 = vsel %vm533_vm1, %v555_v22, %v556_v23  ;;  %1091 = vmatpush1.bf16.msra.mxu0 %v7021_v44 }
  0xe8   :  { %6659 = vrot.lane.b32.xlu0 %v6658_v60, %s7399_s10  ;;  %6664 = vrot.lane.b32.xlu1 %v6663_v0, %s7401_s24  ;;  %v300_v41 = vrot.slane %v7745_v24, 1  ;;  %v302_v43 = vrot.slane %v7747_v26, 1  ;;  %v429_v42 = vrot.slane %v7745_v24, 2  ;;  %v431_v45 = vrot.slane %v7747_v26, 2 }
  0xe9   :  { %v6678_v46 = vpack.i.bf16 %v299_v34, %v296_v32  ;;  %v683_v47 = vsel %vm662_vm3, %v680_v57, %v682_v33  ;;  %v686_v48 = vsel %vm662_vm3, %v684_v12, %v685_v36  ;;  %v7770_v49 = vunpack.c.l.bf16 %v6336_v28  ;;  %6065 = vmatprep.subr.msk.bf16.mxu0 %vm404_vm2, %v7022_v39  ;;  %v202_v33 = vld [vmem:[#allocation2 + $0x5c] sm:$0x3] }
  0xea   :  { %v6683_v50 = vpack.i.bf16 %v428_v35, %v425_v19  ;;  %v6688_v51 = vpack.i.bf16 %v557_v37, %v554_v40  ;;  %v301_v52 = vsel %vm275_vm0, %v298_v14, %v300_v41  ;;  %v558_v53 = vrot.slane %v7745_v24, 3 }
  0xeb   :  { %v7775_v54 = vunpack.c.h.bf16 %v6336_v28  ;;  %v7778_v55 = vunpack.c.l.bf16 %v7757_v38  ;;  %v6693_v56 = vpack.i.bf16 %v686_v48, %v683_v47  ;;  %v303_v57 = vsel %vm275_vm0, %v300_v41, %v302_v43 }
  0xec   :  { %6669 = vrot.lane.b32.xlu0 %v6668_v27, %s7400_s4  ;;  %6674 = vrot.lane.b32.xlu1 %v6673_v31, %s7402_s23  ;;  %v430_v58 = vsel %vm404_vm2, %v427_v18, %v429_v42  ;;  %v560_v59 = vrot.slane %v7747_v26, 3  ;;  %v432_v60 = vsel %vm404_vm2, %v429_v42, %v431_v45  ;;  %v687_v63 = vrot.slane %v7745_v24, 4 }
  0xed   :  { %v689_v0 = vrot.slane %v7747_v26, 4  ;;  %v304_v1 = vrot.slane %v7770_v49, 1  ;;  %v305_v7 = vrot.slane %v7775_v54, 1  ;;  %v307_v8 = vrot.slane %v7778_v55, 1 }
  0xee   :  { %v433_v13 = vrot.slane %v7770_v49, 2  ;;  %v562_v14 = vrot.slane %v7770_v49, 3  ;;  %v434_v15 = vrot.slane %v7775_v54, 2  ;;  %v436_v16 = vrot.slane %v7778_v55, 2 }
  0xef   :  { %v6698_v17 = vpack.i.bf16 %v303_v57, %v301_v52  ;;  %v6703_v18 = vpack.i.bf16 %v432_v60, %v430_v58  ;;  %v559_v20 = vsel %vm533_vm1, %v556_v23, %v558_v53  ;;  %v561_v21 = vsel %vm533_vm1, %v558_v53, %v560_v59 }
  0xf0   :  { %6679 = vrot.lane.b32.xlu0 %v6678_v46, %s7399_s10  ;;  %6684 = vrot.lane.b32.xlu1 %v6683_v50, %s7401_s24  ;;  %v563_v22 = vrot.slane %v7775_v54, 3  ;;  %v565_v26 = vrot.slane %v7778_v55, 3  ;;  %v688_v27 = vsel %vm662_vm3, %v685_v36, %v687_v63  ;;  %v7805_v28 = vunpack.c.l.bf16 %v6337_v6 }
  0xf1   :  { %v7807_v31 = vunpack.c.h.bf16 %v6337_v6  ;;  %v230_v32 = vunpack.c.l.bf16 %v198_v2  ;;  %v690_v12 = vsel %vm662_vm3, %v687_v63, %v689_v0  ;;  %v306_v23 = vsel %vm275_vm0, %v304_v1, %v305_v7  ;;  %v6338_v0 = vld [vmem:[#allocation2 + $0x60] sm:$0xff]  }
  0xf2   :  { %v308_v34 = vsel %vm275_vm0, %v305_v7, %v307_v8  ;;  %v435_v19 = vsel %vm404_vm2, %v433_v13, %v434_v15  ;;  %v437_v35 = vsel %vm404_vm2, %v434_v15, %v436_v16  ;;  %v691_v39 = vrot.slane %v7770_v49, 4 }
  0xf3   :  { %v692_v36 = vrot.slane %v7775_v54, 4  ;;  %v694_v40 = vrot.slane %v7778_v55, 4  ;;  %v6708_v37 = vpack.i.bf16 %v561_v21, %v559_v20  ;;  %v309_v41 = vrot.slane %v230_v32, 1 }
  0xf4   :  { %6689 = vrot.lane.b32.xlu0 %v6688_v51, %s7400_s4  ;;  %6694 = vrot.lane.b32.xlu1 %v6693_v56, %s7402_s23  ;;  %v311_v43 = vrot.slane %v7805_v28, 1  ;;  %v312_v44 = vrot.slane %v7807_v31, 1  ;;  %v6713_v42 = vpack.i.bf16 %v690_v12, %v688_v27  ;;  %v6718_v45 = vpack.i.bf16 %v308_v34, %v306_v23 }
  0xf5   :  { %v564_v46 = vsel %vm533_vm1, %v562_v14, %v563_v22  ;;  %v438_v47 = vrot.slane %v230_v32, 2  ;;  %v6723_v48 = vpack.i.bf16 %v437_v35, %v435_v19  ;;  %v566_v50 = vsel %vm533_vm1, %v563_v22, %v565_v26  ;;  %v205_v22 = vld [vmem:[#allocation2 + $0x68] ss:$16 sps:$4 sm:$0xff]  }
  0xf6   :  { %v7824_v51 = vunpack.c.h.bf16 %v7757_v38  ;;  %v7826_v52 = vunpack.c.l.bf16 %v202_v33  ;;  %v693_v53 = vsel %vm662_vm3, %v691_v39, %v692_v36  ;;  %v695_v56 = vsel %vm662_vm3, %v692_v36, %v694_v40 }
  0xf7   :  { %v440_v57 = vrot.slane %v7805_v28, 2  ;;  %v441_v58 = vrot.slane %v7807_v31, 2  ;;  %v310_v59 = vsel %vm275_vm0, %v307_v8, %v309_v41  ;;  %v313_v60 = vsel %vm275_vm0, %v311_v43, %v312_v44  ;;  %v7024_v41 = vld [vmem:[#allocation5 + $0x80] ss:$8 sps:$4 sm:$0x3f]  }
  0xf8   :  { %6699 = vrot.lane.b32.xlu0 %v6698_v17, %s7399_s10  ;;  %6704 = vrot.lane.b32.xlu1 %v6703_v18, %s7401_s24  ;;  %v567_v63 = vrot.slane %v230_v32, 3  ;;  %v569_v38 = vrot.slane %v7805_v28, 3  ;;  %v570_v1 = vrot.slane %v7807_v31, 3  ;;  %v696_v2 = vrot.slane %v230_v32, 4 }
  0xf9   :  { %v698_v6 = vrot.slane %v7805_v28, 4  ;;  %v699_v7 = vrot.slane %v7807_v31, 4  ;;  %v314_v13 = vrot.slane %v7824_v51, 1  ;;  %v316_v14 = vrot.slane %v7826_v52, 1 }
  0xfa   :  { %v6728_v8 = vpack.i.bf16 %v566_v50, %v564_v46  ;;  %v7842_v15 = vunpack.c.l.bf16 %v6338_v0  ;;  %v6733_v17 = vpack.i.bf16 %v695_v56, %v693_v53  ;;  %v6738_v18 = vpack.i.bf16 %v313_v60, %v310_v59 }
  0xfb   :  { %v439_v20 = vsel %vm404_vm2, %v436_v16, %v438_v47  ;;  %v442_v21 = vsel %vm404_vm2, %v440_v57, %v441_v58  ;;  %v568_v27 = vsel %vm533_vm1, %v565_v26, %v567_v63  ;;  %v571_v32 = vsel %vm533_vm1, %v569_v38, %v570_v1 }
  0xfc   :  { %6709 = vrot.lane.b32.xlu0 %v6708_v37, %s7400_s4  ;;  %6714 = vrot.lane.b32.xlu1 %v6713_v42, %s7402_s23  ;;  %v697_v33 = vsel %vm662_vm3, %v694_v40, %v696_v2  ;;  %v7851_v12 = vunpack.c.h.bf16 %v6338_v0  ;;  %v700_v23 = vsel %vm662_vm3, %v698_v6, %v699_v7  ;;  %v443_v34 = vrot.slane %v7824_v51, 2  ;;  %v206_v37 = vld [vmem:[#allocation2 + $0x6c] sm:$0x3]  ;;  %v6339_v40 = vld [vmem:[#allocation2 + $0x70] sm:$0xff]  }
  0xfd   :  { %v445_v19 = vrot.slane %v7826_v52, 2  ;;  %v572_v16 = vrot.slane %v7824_v51, 3  ;;  %v315_v35 = vsel %vm275_vm0, %v312_v44, %v314_v13  ;;  %v317_v39 = vsel %vm275_vm0, %v314_v13, %v316_v14 }
  0xfe   :  { %v574_v26 = vrot.slane %v7826_v52, 3  ;;  %v7860_v36 = vunpack.c.l.bf16 %v205_v22  ;;  %v701_v43 = vrot.slane %v7824_v51, 4  ;;  %v703_v42 = vrot.slane %v7826_v52, 4 }
  0xff   :  { %v447_v46 = vrot.slane %v7842_v15, 2  ;;  %v6743_v44 = vpack.i.bf16 %v442_v21, %v439_v20  ;;  %v319_v47 = vrot.slane %v7851_v12, 1  ;;  %v6748_v50 = vpack.i.bf16 %v571_v32, %v568_v27  ;;  %v210_v21 = vld [vmem:[#allocation2 + $0x7c] sm:$0x3] }
 0x100   :  { %6719 = vrot.lane.b32.xlu0 %v6718_v45, %s7399_s10  ;;  %6724 = vrot.lane.b32.xlu1 %v6723_v48, %s7401_s24  ;;  %v318_v45 = vrot.slane %v7842_v15, 1  ;;  %v576_v48 = vrot.slane %v7842_v15, 3  ;;  %v6753_v53 = vpack.i.bf16 %v700_v23, %v697_v33  ;;  %v6758_v56 = vpack.i.bf16 %v317_v39, %v315_v35 }
 0x101   :  { %v444_v57 = vsel %vm404_vm2, %v441_v58, %v443_v34  ;;  %v446_v59 = vsel %vm404_vm2, %v443_v34, %v445_v19  ;;  %v573_v52 = vsel %vm533_vm1, %v570_v1, %v572_v16  ;;  %v11010_v60 = vrot.slane %v7860_v36, 1 }
 0x102   :  { %v448_v63 = vrot.slane %v7851_v12, 2  ;;  %v7876_v38 = vunpack.c.l.bf16 %v6339_v40  ;;  %v7878_v0 = vunpack.c.h.bf16 %v6339_v40  ;;  %v7880_v2 = vunpack.c.l.bf16 %v206_v37 }
 0x103   :  { %v1071_v6 = vsel %vm404_vm2, %v7024_v41, 0  ;;  %v575_v58 = vsel %vm533_vm1, %v572_v16, %v574_v26  ;;  %v702_v1 = vsel %vm662_vm3, %v699_v7, %v701_v43  ;;  %v450_v13 = vrot.slane %v7860_v36, 2 }
 0x104   :  { %6729 = vrot.lane.b32.xlu0 %v6728_v8, %s7400_s4  ;;  %6734 = vrot.lane.b32.xlu1 %v6733_v17, %s7402_s23  ;;  %11304 = vst [vmem:[#allocation28_spill] sm:$0xff] %v7878_v0  ;;  %v577_v14 = vrot.slane %v7851_v12, 3  ;;  %v579_v8 = vrot.slane %v7860_v36, 3  ;;  %v705_v17 = vrot.slane %v7842_v15, 4  ;;  %v708_v20 = vrot.slane %v7860_v36, 4 }
 0x105   :  { %1093 = vmatpush1.bf16.msra.mxu0 %v1071_v6  ;;  %v323_v27 = vrot.slane %v7880_v2, 1  ;;  %v325_v32 = vrot.slane %v7876_v38, 1  ;;  %v326_v7 = vrot.slane %v7878_v0, 1  ;;  %v452_v33 = vrot.slane %v7880_v2, 2 }
 0x106   :  { %v704_v23 = vsel %vm662_vm3, %v701_v43, %v703_v42  ;;  %v454_v34 = vrot.slane %v7876_v38, 2  ;;  %v455_v19 = vrot.slane %v7878_v0, 2  ;;  %v7900_v16 = vunpack.c.h.bf16 %v205_v22 }
 0x107   :  { %v6763_v35 = vpack.i.bf16 %v446_v59, %v444_v57  ;;  %v6768_v39 = vpack.i.bf16 %v575_v58, %v573_v52  ;;  %v581_v26 = vrot.slane %v7880_v2, 3  ;;  %v583_v37 = vrot.slane %v7876_v38, 3 }
 0x108   :  { %6739 = vrot.lane.b32.xlu0 %v6738_v18, %s7399_s10  ;;  %6744 = vrot.lane.b32.xlu1 %v6743_v44, %s7401_s24  ;;  %v706_v18 = vrot.slane %v7851_v12, 4  ;;  %v6773_v40 = vpack.i.bf16 %v704_v23, %v702_v1  ;;  %v584_v41 = vrot.slane %v7878_v0, 3  ;;  %v710_v44 = vrot.slane %v7880_v2, 4 }
 0x109   :  { %v242_v43 = vunpack.c.l.bf16 %v210_v21  ;;  %v712_v42 = vrot.slane %v7876_v38, 4  ;;  %v713_v22 = vrot.slane %v7878_v0, 4  ;;  %v320_v57 = vsel %vm275_vm0, %v318_v45, %v319_v47 }
 0x10a   :  { %v322_v59 = vsel %vm275_vm0, %v319_v47, %v11010_v60  ;;  %v451_v6 = vsel %vm404_vm2, %v448_v63, %v450_v13  ;;  %v586_v58 = vrot.slane %v7900_v16, 3  ;;  %v715_v21 = vrot.slane %v7900_v16, 4 }
 0x10b   :  { %v330_v52 = vrot.slane %v242_v43, 1  ;;  %v459_v2 = vrot.slane %v242_v43, 2  ;;  %v588_v1 = vrot.slane %v242_v43, 3  ;;  %v717_v23 = vrot.slane %v242_v43, 4 }
 0x10c   :  { %6749 = vrot.lane.b32.xlu0 %v6748_v50, %s7400_s4  ;;  %6754 = vrot.lane.b32.xlu1 %v6753_v53, %s7402_s23  ;;  %v328_v50 = vrot.slane %v7900_v16, 1  ;;  %v457_v53 = vrot.slane %v7900_v16, 2  ;;  %v578_v47 = vsel %vm533_vm1, %v576_v48, %v577_v14  ;;  %v709_v60 = vsel %vm662_vm3, %v706_v18, %v708_v20 }
 0x10d   :  { %v11305_v43 = vrot.slane %v7860_v36, 1  ;;  %v453_v48 = vsel %vm404_vm2, %v450_v13, %v452_v33  ;;  %vm791_vm4 = vcmask 228352   ;;  %vm816_vm5 = vcmask 457728  }
 0x10e   :  { %v331_v33 = vsel %vm275_vm0, %v328_v50, %v330_v52  ;;  %vm841_vm6 = vcmask 687104   ;;  %vm866_vm7 = vcmask 916480   ;;  %vm1033_vm8 = vcmask 97280  }
 0x10f   :  { %vm1421_vm9 = vcmask 998400   ;;  %vm1566_vm10 = vcmask 80896   ;;  %vm3175_vm11 = vcmask 1041409   ;;  %vm3177_vm12 = vcmask 1042434  }
 0x110   :  { %6759 = vrot.lane.b32.xlu0 %v6758_v56, %s7399_s10  ;;  %6764 = vrot.lane.b32.xlu1 %v6763_v35, %s7401_s24  ;;  %v449_v56 = vsel %vm404_vm2, %v447_v46, %v448_v63  ;;  %v6778_v35 = vpack.i.bf16 %v322_v59, %v320_v57  ;;  %v580_v46 = vsel %vm533_vm1, %v577_v14, %v579_v8  ;;  %vm3179_vm13 = vcmask 1043459  }
 0x111   :  { %v6783_v45 = vpack.i.bf16 %v451_v6, %v449_v56  ;;  %v707_v63 = vsel %vm662_vm3, %v705_v17, %v706_v18  ;;  %v6788_v0 = vpack.i.bf16 %v580_v46, %v578_v47  ;;  %v327_v57 = vsel %vm275_vm0, %v325_v32, %v326_v7 }
 0x112   :  { %v456_v14 = vsel %vm404_vm2, %v454_v34, %v455_v19  ;;  %v582_v59 = vsel %vm533_vm1, %v579_v8, %v581_v26  ;;  %v711_v56 = vsel %vm662_vm3, %v708_v20, %v710_v44  ;;  %v458_v34 = vsel %vm404_vm2, %v455_v19, %v457_v53 }
 0x113   :  { %v6803_v18 = vpack.i.bf16 %v456_v14, %v453_v48  ;;  %v460_v8 = vsel %vm404_vm2, %v457_v53, %v459_v2  ;;  %v589_v44 = vsel %vm533_vm1, %v586_v58, %v588_v1  ;;  %vm3181_vm14 = vcmask 1044484  }
 0x114   :  { %6769 = vrot.lane.b32.xlu0 %v6768_v39, %s7400_s4  ;;  %6774 = vrot.lane.b32.xlu1 %v6773_v40, %s7402_s23  ;;  %v6793_v39 = vpack.i.bf16 %v709_v60, %v707_v63  ;;  %v324_v40 = vsel %vm275_vm0, %v11305_v43, %v323_v27  ;;  %v585_v60 = vsel %vm533_vm1, %v583_v37, %v584_v41  ;;  %vm3183_vm15 = vcmask 1045509  }
 0x115   :  { %v6798_v17 = vpack.i.bf16 %v327_v57, %v324_v40  ;;  %v714_v27 = vsel %vm662_vm3, %v712_v42, %v713_v22  ;;  %v6808_v32 = vpack.i.bf16 %v585_v60, %v582_v59  ;;  %v6823_v20 = vpack.i.bf16 %v460_v8, %v458_v34 }
 0x116   :  { %v6813_v13 = vpack.i.bf16 %v714_v27, %v711_v56  ;;  %v587_v37 = vsel %vm533_vm1, %v584_v41, %v586_v58  ;;  %v716_v42 = vsel %vm662_vm3, %v713_v22, %v715_v21  ;;  %vm3187_vm1 = vcmask 1047559  }
 0x118   :  { %6779 = vrot.lane.b32.xlu0 %v6778_v35, %s7399_s10  ;;  %6784 = vrot.lane.b32.xlu1 %v6783_v45, %s7401_s24 }
 0x11c   :  { %6789 = vrot.lane.b32.xlu0 %v6788_v0, %s7400_s4  ;;  %6794 = vrot.lane.b32.xlu1 %v6793_v39, %s7402_s23  ;;  %v329_v0 = vsel %vm275_vm0, %v326_v7, %v328_v50  ;;  %v718_v7 = vsel %vm662_vm3, %v715_v21, %v717_v23  ;;  %v6828_v50 = vpack.i.bf16 %v589_v44, %v587_v37  ;;  %vm3185_vm0 = vcmask 1046534  }
 0x11d   :  { %v6818_v26 = vpack.i.bf16 %v331_v33, %v329_v0  ;;  %v6833_v19 = vpack.i.bf16 %v718_v7, %v716_v42 }
 0x120   :  { %6799 = vrot.lane.b32.xlu0 %v6798_v17, %s7399_s10  ;;  %6804 = vrot.lane.b32.xlu1 %v6803_v18, %s7401_s24 }
 0x124   :  { %6809 = vrot.lane.b32.xlu0 %v6808_v32, %s7400_s4  ;;  %6814 = vrot.lane.b32.xlu1 %v6813_v13, %s7402_s23 }
 0x128   :  { %6819 = vrot.lane.b32.xlu0 %v6818_v26, %s7399_s10  ;;  %6824 = vrot.lane.b32.xlu1 %v6823_v20, %s7401_s24 }
 0x12c   :  { %6829 = vrot.lane.b32.xlu0 %v6828_v50, %s7400_s4  ;;  %6834 = vrot.lane.b32.xlu1 %v6833_v19, %s7402_s23 }
 0x142   :  { %v6600_v53 = vpop.permute.xlu0 %6599  ;;  %v6610_v52 = vpop.permute.xlu1 %6609 }
 0x143   :  { %v6602_v2 = vunpack.i.h.bf16 %v6600_v53  ;;  %v6601_v41 = vunpack.i.l.bf16 %v6600_v53  ;;  %v6612_v22 = vunpack.i.h.bf16 %v6610_v52  ;;  %v6611_v58 = vunpack.i.l.bf16 %v6610_v52 }
 0x145   :  { %v793_v35 = vsel %vm791_vm4, %v7623_v4, %v6602_v2  ;;  %v792_v45 = vsel %vm791_vm4, %v7621_v3, %v6601_v41 }
 0x146   :  { %v6605_v6 = vpop.permute.xlu0 %6604  ;;  %v6615_v23 = vpop.permute.xlu1 %6614 }
 0x147   :  { %v6607_v1 = vunpack.i.h.bf16 %v6605_v6  ;;  %v6606_v21 = vunpack.i.l.bf16 %v6605_v6  ;;  %v6617_v47 = vunpack.i.h.bf16 %v6615_v23  ;;  %v6616_v46 = vunpack.i.l.bf16 %v6615_v23 }
 0x149   :  { %v817_v63 = vsel %vm816_vm5, %v792_v45, %v6606_v21  ;;  %v818_v39 = vsel %vm816_vm5, %v793_v35, %v6607_v1  ;;  %v892_v40 = vpack.c.bf16 %v6617_v47, %v6616_v46 }
 0x14a   :  { %v6620_v43 = vpop.permute.xlu0 %6619  ;;  %v842_v57 = vsel %vm841_vm6, %v817_v63, %v6611_v58  ;;  %v843_v48 = vsel %vm841_vm6, %v818_v39, %v6612_v22  ;;  %v6625_v18 = vpop.permute.xlu1 %6624 }
 0x14b   :  { %v6622_v14 = vunpack.i.h.bf16 %v6620_v43  ;;  %v6621_v17 = vunpack.i.l.bf16 %v6620_v43  ;;  %v867_v4 = vsel %vm866_vm7, %v842_v57, %v6616_v46  ;;  %v868_v3 = vsel %vm866_vm7, %v843_v48, %v6617_v47  ;;  %6066 = vmatprep.mubr.msk.bf16.mxu0 %vm1033_vm8, %v892_v40 }
 0x14c   :  { %v6627_v59 = vunpack.i.h.bf16 %v6625_v18  ;;  %v6626_v60 = vunpack.i.l.bf16 %v6625_v18  ;;  %v891_v56 = vpack.c.bf16 %v868_v3, %v867_v4 }
 0x14d   :  { %v795_v27 = vsel %vm791_vm4, %v7629_v9, %v6622_v14  ;;  %v794_v32 = vsel %vm791_vm4, %v7625_v5, %v6621_v17 }
 0x14e   :  { %v819_v13 = vsel %vm816_vm5, %v794_v32, %v6626_v60  ;;  %v820_v0 = vsel %vm816_vm5, %v795_v27, %v6627_v59  ;;  %v6630_v33 = vpop.permute.xlu0 %6629  ;;  %1109 = vmatmul.mubr.bf16.vlgmr.msra.gmra.mrb[0].mxu0 %v891_v56  ;;  %v6635_v26 = vpop.permute.xlu1 %6634 }
 0x14f   :  { %v6632_v34 = vunpack.i.h.bf16 %v6630_v33  ;;  %v6631_v8 = vunpack.i.l.bf16 %v6630_v33  ;;  %v6637_v20 = vunpack.i.h.bf16 %v6635_v26  ;;  %v6636_v37 = vunpack.i.l.bf16 %v6635_v26 }
 0x151   :  { %v844_v44 = vsel %vm841_vm6, %v819_v13, %v6631_v8  ;;  %v845_v42 = vsel %vm841_vm6, %v820_v0, %v6632_v34  ;;  %v894_v7 = vpack.c.bf16 %v6637_v20, %v6636_v37 }
 0x152   :  { %v6640_v9 = vpop.permute.xlu0 %6639  ;;  %v869_v50 = vsel %vm866_vm7, %v844_v44, %v6636_v37  ;;  %v870_v5 = vsel %vm866_vm7, %v845_v42, %v6637_v20  ;;  %v6645_v52 = vpop.permute.xlu1 %6644 }
 0x153   :  { %v6642_v19 = vunpack.i.h.bf16 %v6640_v9  ;;  %v6641_v53 = vunpack.i.l.bf16 %v6640_v9  ;;  %v893_v2 = vpack.c.bf16 %v870_v5, %v869_v50  ;;  %v6647_v41 = vunpack.i.h.bf16 %v6645_v52  ;;  %6067 = vmatprep.mubr.msk.bf16.mxu0 %vm1033_vm8, %v894_v7 }
 0x154   :  { %v6646_v6 = vunpack.i.l.bf16 %v6645_v52 }
 0x155   :  { %v797_v22 = vsel %vm791_vm4, %v7633_v11, %v6642_v19  ;;  %v796_v58 = vsel %vm791_vm4, %v7631_v10, %v6641_v53 }
 0x156   :  { %v821_v1 = vsel %vm816_vm5, %v796_v58, %v6646_v6  ;;  %v822_v21 = vsel %vm816_vm5, %v797_v22, %v6647_v41  ;;  %1119 = vmatmul.mubr.bf16.gmra.mrb[4].mxu0 %v893_v2  ;;  %v6650_v23 = vpop.permute.xlu0 %6649  ;;  %v6655_v47 = vpop.permute.xlu1 %6654 }
 0x157   :  { %v6652_v35 = vunpack.i.h.bf16 %v6650_v23  ;;  %v6651_v45 = vunpack.i.l.bf16 %v6650_v23  ;;  %v6657_v46 = vunpack.i.h.bf16 %v6655_v47  ;;  %v6656_v63 = vunpack.i.l.bf16 %v6655_v47 }
 0x159   :  { %v846_v39 = vsel %vm841_vm6, %v821_v1, %v6651_v45  ;;  %v847_v43 = vsel %vm841_vm6, %v822_v21, %v6652_v35  ;;  %v896_v40 = vpack.c.bf16 %v6657_v46, %v6656_v63 }
 0x15a   :  { %v871_v11 = vsel %vm866_vm7, %v846_v39, %v6656_v63  ;;  %v872_v10 = vsel %vm866_vm7, %v847_v43, %v6657_v46  ;;  %v6660_v57 = vpop.permute.xlu0 %6659  ;;  %v6665_v18 = vpop.permute.xlu1 %6664 }
 0x15b   :  { %v895_v48 = vpack.c.bf16 %v872_v10, %v871_v11  ;;  %v6662_v14 = vunpack.i.h.bf16 %v6660_v57  ;;  %v6661_v17 = vunpack.i.l.bf16 %v6660_v57  ;;  %6068 = vmatprep.mubr.msk.bf16.mxu0 %vm1033_vm8, %v896_v40  ;;  %v6667_v4 = vunpack.i.h.bf16 %v6665_v18 }
 0x15c   :  { %v6666_v3 = vunpack.i.l.bf16 %v6665_v18 }
 0x15d   :  { %v799_v59 = vsel %vm791_vm4, %v7699_v29, %v6662_v14  ;;  %v798_v60 = vsel %vm791_vm4, %v7697_v25, %v6661_v17 }
 0x15e   :  { %1129 = vmatmul.mubr.bf16.gmra.mrb[8].mxu0 %v895_v48  ;;  %v823_v56 = vsel %vm816_vm5, %v798_v60, %v6666_v3  ;;  %v824_v27 = vsel %vm816_vm5, %v799_v59, %v6667_v4  ;;  %v6670_v32 = vpop.permute.xlu0 %6669  ;;  %v6675_v33 = vpop.permute.xlu1 %6674 }
 0x15f   :  { %v6672_v13 = vunpack.i.h.bf16 %v6670_v32  ;;  %v6671_v0 = vunpack.i.l.bf16 %v6670_v32  ;;  %v6677_v34 = vunpack.i.h.bf16 %v6675_v33  ;;  %v6676_v8 = vunpack.i.l.bf16 %v6675_v33 }
 0x161   :  { %v848_v26 = vsel %vm841_vm6, %v823_v56, %v6671_v0  ;;  %v849_v20 = vsel %vm841_vm6, %v824_v27, %v6672_v13  ;;  %v898_v37 = vpack.c.bf16 %v6677_v34, %v6676_v8 }
 0x162   :  { %v6680_v29 = vpop.permute.xlu0 %6679  ;;  %v873_v44 = vsel %vm866_vm7, %v848_v26, %v6676_v8  ;;  %v874_v25 = vsel %vm866_vm7, %v849_v20, %v6677_v34  ;;  %v6685_v9 = vpop.permute.xlu1 %6684 }
 0x163   :  { %v6682_v42 = vunpack.i.h.bf16 %v6680_v29  ;;  %v6681_v7 = vunpack.i.l.bf16 %v6680_v29  ;;  %v897_v50 = vpack.c.bf16 %v874_v25, %v873_v44  ;;  %v6687_v5 = vunpack.i.h.bf16 %v6685_v9  ;;  %6069 = vmatprep.mubr.msk.bf16.mxu0 %vm1033_vm8, %v898_v37 }
 0x164   :  { %v6686_v19 = vunpack.i.l.bf16 %v6685_v9 }
 0x165   :  { %v801_v53 = vsel %vm791_vm4, %v7728_v61, %v6682_v42  ;;  %v800_v52 = vsel %vm791_vm4, %v7702_v30, %v6681_v7 }
 0x166   :  { %v825_v2 = vsel %vm816_vm5, %v800_v52, %v6686_v19  ;;  %v826_v41 = vsel %vm816_vm5, %v801_v53, %v6687_v5  ;;  %1139 = vmatmul.mubr.bf16.gmra.mrb[12].mxu0 %v897_v50  ;;  %v6690_v6 = vpop.permute.xlu0 %6689  ;;  %v6695_v1 = vpop.permute.xlu1 %6694 }
 0x167   :  { %v6692_v22 = vunpack.i.h.bf16 %v6690_v6  ;;  %v6691_v58 = vunpack.i.l.bf16 %v6690_v6  ;;  %v6697_v21 = vunpack.i.h.bf16 %v6695_v1  ;;  %v6696_v23 = vunpack.i.l.bf16 %v6695_v1 }
 0x169   :  { %v850_v35 = vsel %vm841_vm6, %v825_v2, %v6691_v58  ;;  %v851_v45 = vsel %vm841_vm6, %v826_v41, %v6692_v22  ;;  %v900_v47 = vpack.c.bf16 %v6697_v21, %v6696_v23 }
 0x16a   :  { %v875_v61 = vsel %vm866_vm7, %v850_v35, %v6696_v23  ;;  %v876_v30 = vsel %vm866_vm7, %v851_v45, %v6697_v21  ;;  %v6700_v46 = vpop.permute.xlu0 %6699  ;;  %v6705_v40 = vpop.permute.xlu1 %6704 }
 0x16b   :  { %v899_v63 = vpack.c.bf16 %v876_v30, %v875_v61  ;;  %v6702_v39 = vunpack.i.h.bf16 %v6700_v46  ;;  %v6701_v43 = vunpack.i.l.bf16 %v6700_v46  ;;  %6070 = vmatprep.mubr.msk.bf16.mxu0 %vm1033_vm8, %v900_v47  ;;  %v6707_v11 = vunpack.i.h.bf16 %v6705_v40 }
 0x16c   :  { %v6706_v10 = vunpack.i.l.bf16 %v6705_v40 }
 0x16d   :  { %v803_v57 = vsel %vm791_vm4, %v7745_v24, %v6702_v39  ;;  %v802_v48 = vsel %vm791_vm4, %v7730_v62, %v6701_v43 }
 0x16e   :  { %1149 = vmatmul.mubr.bf16.gmra.mrb[16].mxu0 %v899_v63  ;;  %v827_v14 = vsel %vm816_vm5, %v802_v48, %v6706_v10  ;;  %v828_v17 = vsel %vm816_vm5, %v803_v57, %v6707_v11  ;;  %v6710_v18 = vpop.permute.xlu0 %6709  ;;  %v6715_v59 = vpop.permute.xlu1 %6714 }
 0x16f   :  { %v6712_v4 = vunpack.i.h.bf16 %v6710_v18  ;;  %v6711_v3 = vunpack.i.l.bf16 %v6710_v18  ;;  %v6717_v60 = vunpack.i.h.bf16 %v6715_v59  ;;  %v6716_v56 = vunpack.i.l.bf16 %v6715_v59 }
 0x171   :  { %v852_v27 = vsel %vm841_vm6, %v827_v14, %v6711_v3  ;;  %v853_v32 = vsel %vm841_vm6, %v828_v17, %v6712_v4  ;;  %v902_v13 = vpack.c.bf16 %v6717_v60, %v6716_v56 }
 0x172   :  { %v877_v24 = vsel %vm866_vm7, %v852_v27, %v6716_v56  ;;  %v878_v62 = vsel %vm866_vm7, %v853_v32, %v6717_v60  ;;  %v6720_v0 = vpop.permute.xlu0 %6719  ;;  %v6725_v26 = vpop.permute.xlu1 %6724 }
 0x173   :  { %v901_v33 = vpack.c.bf16 %v878_v62, %v877_v24  ;;  %v6722_v34 = vunpack.i.h.bf16 %v6720_v0  ;;  %v6721_v8 = vunpack.i.l.bf16 %v6720_v0  ;;  %6071 = vmatprep.mubr.msk.bf16.mxu0 %vm1033_vm8, %v902_v13  ;;  %v6727_v20 = vunpack.i.h.bf16 %v6725_v26 }
 0x174   :  { %v6726_v37 = vunpack.i.l.bf16 %v6725_v26 }
 0x175   :  { %v805_v29 = vsel %vm791_vm4, %v7775_v54, %v6722_v34  ;;  %v804_v44 = vsel %vm791_vm4, %v7770_v49, %v6721_v8 }
 0x176   :  { %1159 = vmatmul.mubr.bf16.gmra.mrb[20].mxu0 %v901_v33  ;;  %v829_v25 = vsel %vm816_vm5, %v804_v44, %v6726_v37  ;;  %v830_v42 = vsel %vm816_vm5, %v805_v29, %v6727_v20  ;;  %v6730_v7 = vpop.permute.xlu0 %6729  ;;  %v6735_v5 = vpop.permute.xlu1 %6734 }
 0x177   :  { %v6732_v9 = vunpack.i.h.bf16 %v6730_v7  ;;  %v6731_v50 = vunpack.i.l.bf16 %v6730_v7  ;;  %v6737_v19 = vunpack.i.h.bf16 %v6735_v5  ;;  %v6736_v53 = vunpack.i.l.bf16 %v6735_v5 }
 0x179   :  { %v854_v52 = vsel %vm841_vm6, %v829_v25, %v6731_v50  ;;  %v855_v2 = vsel %vm841_vm6, %v830_v42, %v6732_v9  ;;  %v904_v41 = vpack.c.bf16 %v6737_v19, %v6736_v53 }
 0x17a   :  { %v6740_v54 = vpop.permute.xlu0 %6739  ;;  %v879_v6 = vsel %vm866_vm7, %v854_v52, %v6736_v53  ;;  %v880_v49 = vsel %vm866_vm7, %v855_v2, %v6737_v19  ;;  %v6745_v1 = vpop.permute.xlu1 %6744 }
 0x17b   :  { %v6742_v22 = vunpack.i.h.bf16 %v6740_v54  ;;  %v6741_v58 = vunpack.i.l.bf16 %v6740_v54  ;;  %v903_v21 = vpack.c.bf16 %v880_v49, %v879_v6  ;;  %v6747_v23 = vunpack.i.h.bf16 %v6745_v1  ;;  %6072 = vmatprep.mubr.msk.bf16.mxu0 %vm1033_vm8, %v904_v41 }
 0x17c   :  { %v6746_v35 = vunpack.i.l.bf16 %v6745_v1 }
 0x17d   :  { %v807_v45 = vsel %vm791_vm4, %v7805_v28, %v6742_v22  ;;  %v806_v47 = vsel %vm791_vm4, %v7778_v55, %v6741_v58 }
 0x17e   :  { %v831_v61 = vsel %vm816_vm5, %v806_v47, %v6746_v35  ;;  %v832_v30 = vsel %vm816_vm5, %v807_v45, %v6747_v23  ;;  %1169 = vmatmul.mubr.bf16.gmra.mrb[24].mxu0 %v903_v21  ;;  %v6750_v46 = vpop.permute.xlu0 %6749  ;;  %v6755_v43 = vpop.permute.xlu1 %6754 }
 0x17f   :  { %v6752_v63 = vunpack.i.h.bf16 %v6750_v46  ;;  %v6751_v39 = vunpack.i.l.bf16 %v6750_v46  ;;  %v6757_v40 = vunpack.i.h.bf16 %v6755_v43  ;;  %v6756_v11 = vunpack.i.l.bf16 %v6755_v43 }
 0x181   :  { %v856_v10 = vsel %vm841_vm6, %v831_v61, %v6751_v39  ;;  %v857_v57 = vsel %vm841_vm6, %v832_v30, %v6752_v63  ;;  %v906_v48 = vpack.c.bf16 %v6757_v40, %v6756_v11 }
 0x182   :  { %v881_v28 = vsel %vm866_vm7, %v856_v10, %v6756_v11  ;;  %v882_v55 = vsel %vm866_vm7, %v857_v57, %v6757_v40  ;;  %v6760_v14 = vpop.permute.xlu0 %6759  ;;  %v6765_v3 = vpop.permute.xlu1 %6764 }
 0x183   :  { %v905_v17 = vpack.c.bf16 %v882_v55, %v881_v28  ;;  %v6762_v18 = vunpack.i.h.bf16 %v6760_v14  ;;  %v6761_v4 = vunpack.i.l.bf16 %v6760_v14  ;;  %6073 = vmatprep.mubr.msk.bf16.mxu0 %vm1033_vm8, %v906_v48  ;;  %v6767_v59 = vunpack.i.h.bf16 %v6765_v3 }
 0x184   :  { %v6766_v60 = vunpack.i.l.bf16 %v6765_v3 }
 0x185   :  { %v809_v56 = vsel %vm791_vm4, %v7824_v51, %v6762_v18  ;;  %v808_v27 = vsel %vm791_vm4, %v7807_v31, %v6761_v4 }
 0x186   :  { %1179 = vmatmul.mubr.bf16.gmra.mrb[28].mxu0 %v905_v17  ;;  %v833_v32 = vsel %vm816_vm5, %v808_v27, %v6766_v60  ;;  %v834_v13 = vsel %vm816_vm5, %v809_v56, %v6767_v59  ;;  %v6770_v24 = vpop.permute.xlu0 %6769  ;;  %v6775_v33 = vpop.permute.xlu1 %6774 }
 0x187   :  { %v6772_v62 = vunpack.i.h.bf16 %v6770_v24  ;;  %v6771_v0 = vunpack.i.l.bf16 %v6770_v24  ;;  %v6777_v34 = vunpack.i.h.bf16 %v6775_v33  ;;  %v6776_v8 = vunpack.i.l.bf16 %v6775_v33  ;;  %v11306_v24 = vld [vmem:[#allocation28_spill] sm:$0xff] }
 0x189   :  { %v858_v26 = vsel %vm841_vm6, %v833_v32, %v6771_v0  ;;  %v859_v20 = vsel %vm841_vm6, %v834_v13, %v6772_v62  ;;  %v908_v37 = vpack.c.bf16 %v6777_v34, %v6776_v8 }
 0x18a   :  { %v883_v51 = vsel %vm866_vm7, %v858_v26, %v6776_v8  ;;  %v884_v31 = vsel %vm866_vm7, %v859_v20, %v6777_v34  ;;  %v6780_v29 = vpop.permute.xlu0 %6779  ;;  %v6785_v7 = vpop.permute.xlu1 %6784 }
 0x18b   :  { %v907_v44 = vpack.c.bf16 %v884_v31, %v883_v51  ;;  %v6782_v25 = vunpack.i.h.bf16 %v6780_v29  ;;  %v6781_v42 = vunpack.i.l.bf16 %v6780_v29  ;;  %6074 = vmatprep.mubr.msk.bf16.mxu0 %vm1033_vm8, %v908_v37  ;;  %v6787_v9 = vunpack.i.h.bf16 %v6785_v7 }
 0x18c   :  { %v6786_v50 = vunpack.i.l.bf16 %v6785_v7  ;;  %v935_v7 = vlaneseq }
 0x18d   :  { %v811_v5 = vsel %vm791_vm4, %v7851_v12, %v6782_v25  ;;  %v810_v19 = vsel %vm791_vm4, %v7842_v15, %v6781_v42 }
 0x18e   :  { %1189 = vmatmul.mubr.bf16.gmra.mrb[32].mxu0 %v907_v44  ;;  %v835_v53 = vsel %vm816_vm5, %v810_v19, %v6786_v50  ;;  %v836_v52 = vsel %vm816_vm5, %v811_v5, %v6787_v9  ;;  %v6790_v2 = vpop.permute.xlu0 %6789  ;;  %v6795_v6 = vpop.permute.xlu1 %6794  ;;  %v8091_v9 = vshrl.u32 %v935_v7, 7  ;;  %v933_v5 = vld [vmem:[#allocation7] sm:$0x3] }
 0x18f   :  { %v6792_v41 = vunpack.i.h.bf16 %v6790_v2  ;;  %v6791_v54 = vunpack.i.l.bf16 %v6790_v2  ;;  %v6797_v49 = vunpack.i.h.bf16 %v6795_v6  ;;  %v6796_v22 = vunpack.i.l.bf16 %v6795_v6 }
 0x190   :  { %v8094_v50 = vsub.s32 0, %v8091_v9  ;;  %v941_v19 = vsub.s32 1, %v8091_v9 }
 0x191   :  { %v860_v58 = vsel %vm841_vm6, %v835_v53, %v6791_v54  ;;  %v861_v1 = vsel %vm841_vm6, %v836_v52, %v6792_v41  ;;  %v910_v21 = vpack.c.bf16 %v6797_v49, %v6796_v22 }
 0x192   :  { %v6800_v12 = vpop.permute.xlu0 %6799  ;;  %v885_v23 = vsel %vm866_vm7, %v860_v58, %v6796_v22  ;;  %v886_v15 = vsel %vm866_vm7, %v861_v1, %v6797_v49  ;;  %v6805_v47 = vpop.permute.xlu1 %6804  ;;  %v8098_v53 = vrot.slane %v933_v5, %v8094_v50  ;;  %v8100_v52 = vrot.slane %v933_v5, %v941_v19 }
 0x193   :  { %v6802_v35 = vunpack.i.h.bf16 %v6800_v12  ;;  %v6801_v45 = vunpack.i.l.bf16 %v6800_v12  ;;  %v909_v61 = vpack.c.bf16 %v886_v15, %v885_v23  ;;  %v6807_v30 = vunpack.i.h.bf16 %v6805_v47  ;;  %6075 = vmatprep.mubr.msk.bf16.mxu0 %vm1033_vm8, %v910_v21 }
 0x194   :  { %v6806_v46 = vunpack.i.l.bf16 %v6805_v47 }
 0x195   :  { %v813_v63 = vsel %vm791_vm4, %v7876_v38, %v6802_v35  ;;  %v812_v39 = vsel %vm791_vm4, %v7860_v36, %v6801_v45 }
 0x196   :  { %v837_v43 = vsel %vm816_vm5, %v812_v39, %v6806_v46  ;;  %v838_v40 = vsel %vm816_vm5, %v813_v63, %v6807_v30  ;;  %1199 = vmatmul.mubr.bf16.gmra.mrb[36].mxu0 %v909_v61  ;;  %v6810_v11 = vpop.permute.xlu0 %6809  ;;  %v6815_v48 = vpop.permute.xlu1 %6814 }
 0x197   :  { %v6812_v10 = vunpack.i.h.bf16 %v6810_v11  ;;  %v6811_v57 = vunpack.i.l.bf16 %v6810_v11  ;;  %v6817_v28 = vunpack.i.h.bf16 %v6815_v48  ;;  %v6816_v55 = vunpack.i.l.bf16 %v6815_v48 }
 0x199   :  { %v862_v14 = vsel %vm841_vm6, %v837_v43, %v6811_v57  ;;  %v863_v17 = vsel %vm841_vm6, %v838_v40, %v6812_v10  ;;  %v912_v18 = vpack.c.bf16 %v6817_v28, %v6816_v55 }
 0x19a   :  { %v887_v38 = vsel %vm866_vm7, %v862_v14, %v6816_v55  ;;  %v888_v36 = vsel %vm866_vm7, %v863_v17, %v6817_v28  ;;  %v6820_v4 = vpop.permute.xlu0 %6819  ;;  %v6825_v56 = vpop.permute.xlu1 %6824 }
 0x19b   :  { %v911_v3 = vpack.c.bf16 %v888_v36, %v887_v38  ;;  %v6822_v59 = vunpack.i.h.bf16 %v6820_v4  ;;  %v6821_v60 = vunpack.i.l.bf16 %v6820_v4  ;;  %6076 = vmatprep.mubr.msk.bf16.mxu0 %vm1033_vm8, %v912_v18  ;;  %v6827_v27 = vunpack.i.h.bf16 %v6825_v56 }
 0x19c   :  { %v6826_v32 = vunpack.i.l.bf16 %v6825_v56 }
 0x19d   :  { %v815_v13 = vsel %vm791_vm4, %v7900_v16, %v6822_v59  ;;  %v814_v62 = vsel %vm791_vm4, %v11306_v24, %v6821_v60  ;;  %vm3526_vm4 = vcmask 130048  }
 0x19e   :  { %1209 = vmatmul.mubr.bf16.gmra.mrb[40].mxu0 %v911_v3  ;;  %v839_v0 = vsel %vm816_vm5, %v814_v62, %v6826_v32  ;;  %v840_v33 = vsel %vm816_vm5, %v815_v13, %v6827_v27  ;;  %v6830_v34 = vpop.permute.xlu0 %6829  ;;  %v6835_v20 = vpop.permute.xlu1 %6834  ;;  %vm3767_vm5 = vcmask 261120  }
 0x19f   :  { %v6832_v8 = vunpack.i.h.bf16 %v6830_v34  ;;  %v6831_v26 = vunpack.i.l.bf16 %v6830_v34  ;;  %v6837_v37 = vunpack.i.h.bf16 %v6835_v20  ;;  %v6836_v51 = vunpack.i.l.bf16 %v6835_v20 }
 0x1a1   :  { %v864_v31 = vsel %vm841_vm6, %v839_v0, %v6831_v26  ;;  %v865_v29 = vsel %vm841_vm6, %v840_v33, %v6832_v8  ;;  %v914_v44 = vpack.c.bf16 %v6837_v37, %v6836_v51 }
 0x1a2   :  { %v889_v16 = vsel %vm866_vm7, %v864_v31, %v6836_v51  ;;  %v890_v25 = vsel %vm866_vm7, %v865_v29, %v6837_v37  ;;  %vm4008_vm7 = vcmask 392192  }
 0x1a3   :  { %v913_v42 = vpack.c.bf16 %v890_v25, %v889_v16  ;;  %6077 = vmatprep.mubr.msk.bf16.mxu0 %vm1033_vm8, %v914_v44  ;;  %vm4249_vm8 = vcmask 523264  }
 0x1a6   :  { %1219 = vmatmul.mubr.bf16.gmra.mrb[44].mxu0 %v913_v42 }
 0x221   :  { %v1110_v2 = vpop.f32.mrb[0].mxu0 }
 0x222   :  { %v1111_v41 = vadd.f32 %v1110_v2, %v8098_v53  ;;  %v1112_v54 = vpop.f32.mrb[1].mxu0 }
 0x223   :  { %v8104_v6 = vadd.f32 %v1112_v54, %v8100_v52  ;;  %v1114_v49 = vpop.f32.mrb[2].mxu0 }
 0x224   :  { %v8106_v22 = vmax.f32 %v1111_v41, 0.0  ;;  %v1116_v58 = vpop.f32.mrb[3].mxu0  ;;  %v1115_v12 = vadd.f32 %v1114_v49, %v8098_v53 }
 0x225   :  { %v11031_v1 = vmax.f32 %v8104_v6, 0.0  ;;  %v8110_v21 = vadd.f32 %v1116_v58, %v8100_v52 }
 0x226   :  { %1325 = vrot.lane.b32.xlu0 %v8106_v22, %s7403_s1  ;;  %v8127_v61 = vmax.f32 %v1115_v12, 0.0 }
 0x227   :  { %1327 = vrot.lane.b32.xlu1 %v11031_v1, %s7403_s1  ;;  %v11030_v23 = vmax.f32 %v8110_v21, 0.0 }
 0x229   :  { %v1120_v15 = vpop.f32.mrb[4].mxu0 }
 0x22a   :  { %v1122_v35 = vpop.f32.mrb[5].mxu0  ;;  %1494 = vrot.lane.b32.xlu0 %v8106_v22, %s7404_s25  ;;  %v1121_v39 = vadd.f32 %v1120_v15, %v8098_v53 }
 0x22b   :  { %v8122_v45 = vadd.f32 %v1122_v35, %v8100_v52  ;;  %v1124_v47 = vpop.f32.mrb[6].mxu0  ;;  %1331 = vrot.lane.b32.xlu1 %v11030_v23, %s7403_s1 }
 0x22c   :  { %v1126_v30 = vpop.f32.mrb[7].mxu0  ;;  %v1125_v63 = vadd.f32 %v1124_v47, %v8098_v53  ;;  %v8146_v48 = vmax.f32 %v1121_v39, 0.0 }
 0x22d   :  { %v11029_v46 = vmax.f32 %v8122_v45, 0.0  ;;  %v8140_v40 = vadd.f32 %v1126_v30, %v8100_v52 }
 0x22e   :  { %1329 = vrot.lane.b32.xlu0 %v8127_v61, %s7403_s1  ;;  %v8137_v43 = vmax.f32 %v1125_v63, 0.0 }
 0x22f   :  { %1335 = vrot.lane.b32.xlu1 %v11029_v46, %s7403_s1  ;;  %v11027_v55 = vmax.f32 %v8140_v40, 0.0 }
 0x231   :  { %v1130_v11 = vpop.f32.mrb[8].mxu0 }
 0x232   :  { %v1132_v10 = vpop.f32.mrb[9].mxu0  ;;  %1496 = vrot.lane.b32.xlu0 %v8127_v61, %s7404_s25  ;;  %v1131_v14 = vadd.f32 %v1130_v11, %v8098_v53 }
 0x233   :  { %v1134_v57 = vpop.f32.mrb[10].mxu0  ;;  %1500 = vrot.lane.b32.xlu1 %v8137_v43, %s7404_s25  ;;  %v8158_v18 = vadd.f32 %v1132_v10, %v8100_v52 }
 0x234   :  { %v1136_v28 = vpop.f32.mrb[11].mxu0  ;;  %v8155_v17 = vmax.f32 %v1131_v14, 0.0  ;;  %v1135_v60 = vadd.f32 %v1134_v57, %v8098_v53 }
 0x235   :  { %v11025_v59 = vmax.f32 %v8158_v18, 0.0  ;;  %v8174_v27 = vadd.f32 %v1136_v28, %v8100_v52 }
 0x236   :  { %1333 = vrot.lane.b32.xlu0 %v8146_v48, %s7403_s1  ;;  %v8171_v56 = vmax.f32 %v1135_v60, 0.0 }
 0x237   :  { %1339 = vrot.lane.b32.xlu1 %v11027_v55, %s7403_s1  ;;  %v11024_v33 = vmax.f32 %v8174_v27, 0.0 }
 0x239   :  { %v1140_v38 = vpop.f32.mrb[12].mxu0 }
 0x23a   :  { %1498 = vrot.lane.b32.xlu0 %v8146_v48, %s7404_s25  ;;  %v1142_v36 = vpop.f32.mrb[13].mxu0  ;;  %v1141_v62 = vadd.f32 %v1140_v38, %v8098_v53 }
 0x23b   :  { %1502 = vrot.lane.b32.xlu1 %v8155_v17, %s7404_s25  ;;  %v1144_v4 = vpop.f32.mrb[14].mxu0  ;;  %v8183_v34 = vadd.f32 %v1142_v36, %v8100_v52 }
 0x23c   :  { %v1146_v3 = vpop.f32.mrb[15].mxu0  ;;  %v8190_v8 = vmax.f32 %v1141_v62, 0.0  ;;  %v1145_v29 = vadd.f32 %v1144_v4, %v8098_v53 }
 0x23d   :  { %v11021_v26 = vmax.f32 %v8183_v34, 0.0  ;;  %v8194_v20 = vadd.f32 %v1146_v3, %v8100_v52 }
 0x23e   :  { %1337 = vrot.lane.b32.xlu0 %v8137_v43, %s7403_s1  ;;  %v8211_v42 = vmax.f32 %v1145_v29, 0.0 }
 0x23f   :  { %1343 = vrot.lane.b32.xlu1 %v11025_v59, %s7403_s1  ;;  %v11019_v16 = vmax.f32 %v8194_v20, 0.0 }
 0x241   :  { %v1150_v32 = vpop.f32.mrb[16].mxu0 }
 0x242   :  { %1341 = vrot.lane.b32.xlu0 %v8155_v17, %s7403_s1  ;;  %v1152_v13 = vpop.f32.mrb[17].mxu0  ;;  %v1151_v54 = vadd.f32 %v1150_v32, %v8098_v53 }
 0x243   :  { %1504 = vrot.lane.b32.xlu1 %v8171_v56, %s7404_s25  ;;  %v1154_v24 = vpop.f32.mrb[18].mxu0  ;;  %v8204_v25 = vadd.f32 %v1152_v13, %v8100_v52 }
 0x244   :  { %v1156_v0 = vpop.f32.mrb[19].mxu0  ;;  %v1155_v5 = vadd.f32 %v1154_v24, %v8098_v53  ;;  %v8230_v15 = vmax.f32 %v1151_v54, 0.0 }
 0x245   :  { %v11016_v7 = vmax.f32 %v8204_v25, 0.0  ;;  %v8224_v12 = vadd.f32 %v1156_v0, %v8100_v52 }
 0x246   :  { %1345 = vrot.lane.b32.xlu0 %v8171_v56, %s7403_s1  ;;  %v8221_v58 = vmax.f32 %v1155_v5, 0.0 }
 0x247   :  { %1347 = vrot.lane.b32.xlu1 %v11024_v33, %s7403_s1  ;;  %v11018_v35 = vmax.f32 %v8224_v12, 0.0 }
 0x249   :  { %v1160_v37 = vpop.f32.mrb[20].mxu0 }
 0x24a   :  { %1349 = vrot.lane.b32.xlu0 %v8190_v8, %s7403_s1  ;;  %v1162_v51 = vpop.f32.mrb[21].mxu0  ;;  %v1161_v47 = vadd.f32 %v1160_v37, %v8098_v53 }
 0x24b   :  { %1351 = vrot.lane.b32.xlu1 %v11021_v26, %s7403_s1  ;;  %v1164_v31 = vpop.f32.mrb[22].mxu0  ;;  %v8242_v57 = vadd.f32 %v1162_v51, %v8100_v52 }
 0x24c   :  { %v1166_v44 = vpop.f32.mrb[23].mxu0  ;;  %v8239_v10 = vmax.f32 %v1161_v47, 0.0  ;;  %v1165_v14 = vadd.f32 %v1164_v31, %v8098_v53 }
 0x24d   :  { %v11014_v28 = vmax.f32 %v8242_v57, 0.0  ;;  %v8258_v32 = vadd.f32 %v1166_v44, %v8100_v52 }
 0x24e   :  { %1506 = vrot.lane.b32.xlu0 %v8190_v8, %s7404_s25  ;;  %v8255_v60 = vmax.f32 %v1165_v14, 0.0 }
 0x24f   :  { %1355 = vrot.lane.b32.xlu1 %v11019_v16, %s7403_s1  ;;  %v11013_v24 = vmax.f32 %v8258_v32, 0.0 }
 0x251   :  { %v1170_v19 = vpop.f32.mrb[24].mxu0 }
 0x252   :  { %1353 = vrot.lane.b32.xlu0 %v8211_v42, %s7403_s1  ;;  %v1172_v2 = vpop.f32.mrb[25].mxu0  ;;  %v1171_v13 = vadd.f32 %v1170_v19, %v8098_v53 }
 0x253   :  { %1359 = vrot.lane.b32.xlu1 %v11016_v7, %s7403_s1  ;;  %v1174_v41 = vpop.f32.mrb[26].mxu0  ;;  %v8267_v62 = vadd.f32 %v1172_v2, %v8100_v52 }
 0x254   :  { %v1176_v49 = vpop.f32.mrb[27].mxu0  ;;  %v8274_v31 = vmax.f32 %v1171_v13, 0.0  ;;  %v1175_v19 = vadd.f32 %v1174_v41, %v8098_v53 }
 0x255   :  { %v11012_v44 = vmax.f32 %v8267_v62, 0.0  ;;  %v8278_v5 = vadd.f32 %v1176_v49, %v8100_v52 }
 0x256   :  { %1508 = vrot.lane.b32.xlu0 %v8211_v42, %s7404_s25  ;;  %v8297_v13 = vmax.f32 %v1175_v19, 0.0 }
 0x257   :  { %1512 = vrot.lane.b32.xlu1 %v8221_v58, %s7404_s25  ;;  %v11015_v2 = vmax.f32 %v8278_v5, 0.0 }
 0x259   :  { %v1180_v30 = vpop.f32.mrb[28].mxu0 }
 0x25a   :  { %1357 = vrot.lane.b32.xlu0 %v8230_v15, %s7403_s1  ;;  %v1182_v63 = vpop.f32.mrb[29].mxu0 }
 0x25b   :  { %1363 = vrot.lane.b32.xlu1 %v11018_v35, %s7403_s1  ;;  %v1184_v39 = vpop.f32.mrb[30].mxu0  ;;  %v8288_v54 = vadd.f32 %v1182_v63, %v8100_v52  ;;  %v1181_v63 = vadd.f32 %v1180_v30, %v8098_v53 }
 0x25c   :  { %v1186_v11 = vpop.f32.mrb[31].mxu0 }
 0x25d   :  { %v11017_v41 = vmax.f32 %v8288_v54, 0.0 }
 0x25e   :  { %1510 = vrot.lane.b32.xlu0 %v8230_v15, %s7404_s25 }
 0x25f   :  { %1514 = vrot.lane.b32.xlu1 %v8239_v10, %s7404_s25 }
 0x261   :  { %v1190_v38 = vpop.f32.mrb[32].mxu0 }
 0x262   :  { %1361 = vrot.lane.b32.xlu0 %v8221_v58, %s7403_s1  ;;  %v1192_v36 = vpop.f32.mrb[33].mxu0 }
 0x263   :  { %1367 = vrot.lane.b32.xlu1 %v11014_v28, %s7403_s1  ;;  %v1194_v4 = vpop.f32.mrb[34].mxu0  ;;  %v8336_v16 = vadd.f32 %v1192_v36, %v8100_v52 }
 0x264   :  { %v1196_v3 = vpop.f32.mrb[35].mxu0 }
 0x265   :  { %v8352_v36 = vadd.f32 %v1196_v3, %v8100_v52 }
 0x266   :  { %1365 = vrot.lane.b32.xlu0 %v8239_v10, %s7403_s1 }
 0x267   :  { %1516 = vrot.lane.b32.xlu1 %v8255_v60, %s7404_s25  ;;  %11308 = vst [vmem:[#allocation29_spill] sm:$0xff] %v8352_v36 }
 0x269   :  { %v1200_v0 = vpop.f32.mrb[36].mxu0 }
 0x26a   :  { %1369 = vrot.lane.b32.xlu0 %v8255_v60, %s7403_s1  ;;  %v1202_v37 = vpop.f32.mrb[37].mxu0 }
 0x26b   :  { %1371 = vrot.lane.b32.xlu1 %v11013_v24, %s7403_s1  ;;  %v1204_v51 = vpop.f32.mrb[38].mxu0  ;;  %v1185_v24 = vadd.f32 %v1184_v39, %v8098_v53  ;;  %v8361_v26 = vadd.f32 %v1202_v37, %v8100_v52 }
 0x26c   :  { %v1206_v29 = vpop.f32.mrb[39].mxu0 }
 0x26d   :  { %v8307_v28 = vmax.f32 %v1185_v24, 0.0  ;;  %11309 = vst [vmem:[#allocation30_spill] sm:$0xff] %v8361_v26 }
 0x26e   :  { %1373 = vrot.lane.b32.xlu0 %v8274_v31, %s7403_s1 }
 0x26f   :  { %1375 = vrot.lane.b32.xlu1 %v11012_v44, %s7403_s1 }
 0x271   :  { %v8290_v47 = vpop.f32.mrb[40].mxu0 }
 0x272   :  { %1518 = vrot.lane.b32.xlu0 %v8274_v31, %s7404_s25  ;;  %v1212_v49 = vpop.f32.mrb[41].mxu0 }
 0x273   :  { %1379 = vrot.lane.b32.xlu1 %v11015_v2, %s7403_s1  ;;  %v1214_v14 = vpop.f32.mrb[42].mxu0  ;;  %v8310_v2 = vadd.f32 %v1186_v11, %v8100_v52  ;;  %v1191_v11 = vadd.f32 %v1190_v38, %v8098_v53  ;;  %v11022_v38 = vmax.f32 %v8336_v16, 0.0 }
 0x274   :  { %v1216_v44 = vpop.f32.mrb[43].mxu0 }
 0x275   :  { %v11020_v24 = vmax.f32 %v8310_v2, 0.0  ;;  %v8333_v35 = vmax.f32 %v1191_v11, 0.0 }
 0x276   :  { %1377 = vrot.lane.b32.xlu0 %v8297_v13, %s7403_s1 }
 0x277   :  { %1383 = vrot.lane.b32.xlu1 %v11017_v41, %s7403_s1  ;;  %v8322_v41 = vmax.f32 %v1181_v63, 0.0  ;;  %v1195_v63 = vadd.f32 %v1194_v4, %v8098_v53  ;;  %v1201_v4 = vadd.f32 %v1200_v0, %v8098_v53  ;;  %v1205_v0 = vadd.f32 %v1204_v51, %v8098_v53 }
 0x279   :  { %v8312_v19 = vpop.f32.mrb[44].mxu0  ;;  %v8349_v11 = vmax.f32 %v1195_v63, 0.0  ;;  %v8368_v3 = vmax.f32 %v1201_v4, 0.0  ;;  %v11026_v63 = vmax.f32 %v8361_v26, 0.0  ;;  %v7405_v4 = vmov 1983009808  }
 0x27a   :  { %1520 = vrot.lane.b32.xlu0 %v8297_v13, %s7404_s25  ;;  %v8316_v39 = vpop.f32.mrb[45].mxu0  ;;  %v8389_v33 = vmax.f32 %v1205_v0, 0.0  ;;  %v1211_v0 = vadd.f32 %v8290_v47, %v8098_v53 }
 0x27b   :  { %1524 = vrot.lane.b32.xlu1 %v8307_v28, %s7404_s25  ;;  %v8320_v7 = vpop.f32.mrb[46].mxu0  ;;  %11307 = vst [vmem:[#allocation28_spill] sm:$0xff] %v8349_v11  ;;  %11310 = vst [vmem:[#allocation31_spill] sm:$0xff] %v8368_v3 }
 0x27c   :  { %v8324_v30 = vpop.f32.mrb[47].mxu0  ;;  %11313 = vst [vmem:[#allocation34_spill] sm:$0xff] %v8389_v33  ;;  %v8417_v47 = vmax.f32 %v1211_v0, 0.0 }
 0x27e   :  { %1381 = vrot.lane.b32.xlu0 %v8322_v41, %s7403_s1  ;;  %11318 = vst [vmem:[#allocation38_spill] sm:$0xff] %v8417_v47 }
 0x27f   :  { %1387 = vrot.lane.b32.xlu1 %v11020_v24, %s7403_s1  ;;  %v11023_v24 = vmax.f32 %v8352_v36, 0.0 }
 0x282   :  { %1522 = vrot.lane.b32.xlu0 %v8322_v41, %s7404_s25 }
 0x283   :  { %1526 = vrot.lane.b32.xlu1 %v8333_v35, %s7404_s25 }
 0x286   :  { %1385 = vrot.lane.b32.xlu0 %v8307_v28, %s7403_s1 }
 0x287   :  { %1391 = vrot.lane.b32.xlu1 %v11022_v38, %s7403_s1  ;;  %v8372_v38 = vadd.f32 %v1206_v29, %v8100_v52  ;;  %v1690_v29 = vunpack.c.l.s4 %v7405_v4 }
 0x289   :  { %11311 = vst [vmem:[#allocation32_spill] sm:$0xff] %v8372_v38  ;;  %v11028_v37 = vmax.f32 %v8372_v38, 0.0 }
 0x28a   :  { %1389 = vrot.lane.b32.xlu0 %v8333_v35, %s7403_s1 }
 0x28b   :  { %1528 = vrot.lane.b32.xlu1 %v8349_v11, %s7404_s25 }
 0x28e   :  { %1393 = vrot.lane.b32.xlu0 %v8349_v11, %s7403_s1 }
 0x28f   :  { %1395 = vrot.lane.b32.xlu1 %v11023_v24, %s7403_s1  ;;  %v8382_v24 = vadd.f32 %v1212_v49, %v8100_v52  ;;  %v1691_v49 = vunpack.c.0.s8 %v1690_v29 }
 0x291   :  { %11312 = vst [vmem:[#allocation33_spill] sm:$0xff] %v8382_v24  ;;  %v11033_v51 = vmax.f32 %v8382_v24, 0.0  ;;  %v11317_v24 = vmax.f32 %v8104_v6, 0.0 }
 0x292   :  { %1397 = vrot.lane.b32.xlu0 %v8368_v3, %s7403_s1 }
 0x293   :  { %1399 = vrot.lane.b32.xlu1 %v11026_v63, %s7403_s1  ;;  %v1215_v63 = vadd.f32 %v1214_v14, %v8098_v53  ;;  %v8404_v14 = vadd.f32 %v1216_v44, %v8100_v52 }
 0x295   :  { %v8401_v46 = vmax.f32 %v1215_v63, 0.0  ;;  %11315 = vst [vmem:[#allocation36_spill] sm:$0xff] %v8404_v14 }
 0x296   :  { %1530 = vrot.lane.b32.xlu0 %v8368_v3, %s7404_s25 }
 0x297   :  { %1403 = vrot.lane.b32.xlu1 %v11028_v37, %s7403_s1  ;;  %11314 = vst [vmem:[#allocation35_spill] sm:$0xff] %v8401_v46 }
 0x298   :  { %v1326_v59 = vpop.permute.xlu0 %1325 }
 0x299   :  { %v1328_v55 = vpop.permute.xlu1 %1327 }
 0x29a   :  { %1401 = vrot.lane.b32.xlu0 %v8389_v33, %s7403_s1  ;;  %v1422_v4 = vsel %vm1421_vm9, %v1326_v59, %v1328_v55  ;;  %v8409_v59 = vsub.s32 %v1691_v49, %v8091_v9 }
 0x29b   :  { %1407 = vrot.lane.b32.xlu1 %v11033_v51, %s7403_s1  ;;  %v1591_v29 = vmax.f32 %v8106_v22, %v1422_v4  ;;  %v1221_v22 = vadd.f32 %v8312_v19, %v8098_v53  ;;  %v8436_v4 = vadd.f32 %v8324_v30, %v8100_v52 }
 0x29c   :  { %v1495_v37 = vpop.permute.xlu0 %1494  ;;  %11316 = vst [vmem:[#allocation37_spill] sm:$0xff] %v8409_v59 }
 0x29d   :  { %v1567_v23 = vsel %vm1566_vm10, %v1328_v55, %v1495_v37  ;;  %v1332_v1 = vpop.permute.xlu1 %1331  ;;  %v11037_v37 = vmax.f32 %v8404_v14, 0.0  ;;  %11320 = vst [vmem:[#allocation40_spill] sm:$0xff] %v8436_v4 }
 0x29e   :  { %v1592_v51 = vmax.f32 %v11317_v24, %v1567_v23  ;;  %1532 = vrot.lane.b32.xlu0 %v8389_v33, %s7404_s25  ;;  %v8430_v24 = vadd.f32 %v8316_v39, %v8100_v52  ;;  %v8443_v39 = vsub.s32 2, %v8091_v9  ;;  %v11323_v9 = vmax.f32 %v8110_v21, 0.0 }
 0x29f   :  { %1536 = vrot.lane.b32.xlu1 %v8401_v46, %s7404_s25 }
 0x2a0   :  { %v1687_v44 = vcombine.low %v1591_v29, %v1592_v51  ;;  %v1688_v63 = vcombine.high %v1591_v29, %v1592_v51  ;;  %v1330_v55 = vpop.permute.xlu0 %1329  ;;  %11319 = vst [vmem:[#allocation39_spill] sm:$0xff] %v8430_v24  ;;  %v1225_v51 = vadd.f32 %v8320_v7, %v8098_v53  ;;  %v8445_v53 = vmax.f32 %v1221_v22, 0.0 }
 0x2a1   :  { %v8422_v49 = vpop.permute.xlu1 %1335  ;;  %v1423_v19 = vsel %vm1421_vm9, %v1330_v55, %v1332_v1 }
 0x2a2   :  { %v1695_v6 = vrot.slane %v1687_v44, %v8409_v59  ;;  %v1702_v23 = vrot.slane %v1688_v63, %v8409_v59  ;;  %1405 = vrot.lane.b32.xlu0 %v8417_v47, %s7403_s1  ;;  %11321 = vst [vmem:[#allocation41_spill] sm:$0xff] %v8445_v53  ;;  %v1593_v3 = vmax.f32 %v8127_v61, %v1423_v19  ;;  %v8458_v22 = vmax.f32 %v1225_v51, 0.0 }
 0x2a3   :  { %1411 = vrot.lane.b32.xlu1 %v11037_v37, %s7403_s1  ;;  %v11040_v37 = vmax.f32 %v8430_v24, 0.0 }
 0x2a4   :  { %v1703_v0 = vcombine.high %v1695_v6, %v1695_v6  ;;  %v1704_v29 = vcombine.high %v1702_v23, %v1702_v23  ;;  %v6078_v44 = vrot.slane %v1695_v6, 9  ;;  %v6080_v63 = vrot.slane %v1702_v23, 9  ;;  %v1497_v38 = vpop.permute.xlu0 %1496  ;;  %11324 = vst [vmem:[#allocation43_spill] sm:$0xff] %v8458_v22 }
 0x2a5   :  { %v1568_v52 = vsel %vm1566_vm10, %v1332_v1, %v1497_v38  ;;  %v1501_v7 = vpop.permute.xlu1 %1500 }
 0x2a6   :  { %v6079_v30 = vrot.slane %v1703_v0, 9  ;;  %v6081_v55 = vrot.slane %v1704_v29, 9  ;;  %v8448_v33 = vmax.f32 %v1695_v6, %v6078_v44  ;;  %v2505_v14 = vmax.f32 %v1702_v23, %v6080_v63  ;;  %1409 = vrot.lane.b32.xlu0 %v8401_v46, %s7403_s1 }
 0x2a7   :  { %v1594_v26 = vmax.f32 %v11323_v9, %v1568_v52  ;;  %1538 = vrot.lane.b32.xlu1 %v8445_v53, %s7404_s25 }
 0x2a8   :  { %11322 = vst [vmem:[#allocation42_spill] sm:$0xff] %v8448_v33  ;;  %v2504_v1 = vmax.f32 %v1703_v0, %v6079_v30  ;;  %v2506_v38 = vmax.f32 %v1704_v29, %v6081_v55  ;;  %v1334_v23 = vpop.permute.xlu0 %1333  ;;  %v2666_v44 = vrot.slane %v8448_v33, %v8094_v50  ;;  %v8464_v63 = vrot.slane %v2505_v14, %v8094_v50 }
 0x2a9   :  { %v1705_v61 = vcombine.low %v1593_v3, %v1594_v26  ;;  %v1706_v21 = vcombine.high %v1593_v3, %v1594_v26  ;;  %v1340_v19 = vpop.permute.xlu1 %1339  ;;  %v8481_v26 = vrot.slane %v2505_v14, %v8443_v39 }
 0x2aa   :  { %11325 = vst [vmem:[#allocation44_spill] sm:$0xff] %v8464_v63  ;;  %v2674_v52 = vrot.slane %v2504_v1, %v8094_v50  ;;  %v8468_v9 = vrot.slane %v2504_v1, %v8443_v39  ;;  %v8471_v51 = vrot.slane %v2506_v38, %v8094_v50  ;;  %v8474_v0 = vrot.slane %v2506_v38, %v8443_v39 }
 0x2ab   :  { %1413 = vrot.lane.b32.xlu0 %v8445_v53, %s7403_s1  ;;  %11329 = vst [vmem:[#allocation48_spill] sm:$0xff] %v8481_v26  ;;  %v1713_v3 = vrot.slane %v1705_v61, %v8409_v59  ;;  %v1720_v30 = vrot.slane %v1706_v21, %v8409_v59  ;;  %1415 = vrot.lane.b32.xlu1 %v11040_v37, %s7403_s1  ;;  %v11333_v53 = vmax.f32 %v8122_v45, 0.0 }
 0x2ac   :  { %11326 = vst [vmem:[#allocation45_spill] sm:$0xff] %v8468_v9  ;;  %11327 = vst [vmem:[#allocation46_spill] sm:$0xff] %v8471_v51  ;;  %v8489_v55 = vsel %vm3175_vm11, %v2674_v52, %v2666_v44  ;;  %v3382_v1 = vsel %vm3175_vm11, %v8464_v63, %v2674_v52  ;;  %v1424_v38 = vsel %vm1421_vm9, %v1334_v23, %v8422_v49  ;;  %v1499_v29 = vpop.permute.xlu0 %1498 }
 0x2ad   :  { %11328 = vst [vmem:[#allocation47_spill] sm:$0xff] %v8474_v0  ;;  %11330 = vst [vmem:[#allocation49_spill] sm:$0xff] %v8489_v55  ;;  %v1570_v14 = vsel %vm1566_vm10, %v1340_v19, %v1501_v7  ;;  %v3389_v61 = vsel %vm3175_vm11, %v8481_v26, %v8468_v9  ;;  %v1721_v21 = vcombine.high %v1713_v3, %v1713_v3  ;;  %v6082_v37 = vrot.slane %v1713_v3, 9  ;;  %v1503_v33 = vpop.permute.xlu1 %1502 }
 0x2ae   :  { %v1722_v6 = vcombine.high %v1720_v30, %v1720_v30  ;;  %v8502_v44 = vsel %vm3175_vm11, %v8471_v51, %v8464_v63  ;;  %v8507_v23 = vsel %vm3175_vm11, %v8474_v0, %v8481_v26  ;;  %v6084_v7 = vrot.slane %v1720_v30, 9 }
 0x2af   :  { %11331 = vst [vmem:[#allocation50_spill] sm:$0xff] %v8502_v44  ;;  %11332 = vst [vmem:[#allocation51_spill] sm:$0xff] %v8507_v23  ;;  %v1569_v52 = vsel %vm1566_vm10, %v8422_v49, %v1499_v29  ;;  %1417 = vrot.lane.b32.xlu0 %v8458_v22, %s7403_s1  ;;  %v6083_v55 = vrot.slane %v1721_v21, 9  ;;  %v2507_v24 = vmax.f32 %v1713_v3, %v6082_v37  ;;  %v11334_v63 = vmax.f32 %v8436_v4, 0.0 }
 0x2b0   :  { %v6085_v9 = vrot.slane %v1722_v6, 9  ;;  %v1596_v46 = vmax.f32 %v11333_v53, %v1569_v52  ;;  %v2509_v26 = vmax.f32 %v1720_v30, %v6084_v7  ;;  %v1595_v23 = vmax.f32 %v8146_v48, %v1424_v38  ;;  %v1338_v29 = vpop.permute.xlu0 %1337 }
 0x2b1   :  { %1419 = vrot.lane.b32.xlu1 %v11334_v63, %s7403_s1  ;;  %v11335_v44 = vmax.f32 %v8140_v40, 0.0  ;;  %v3383_v36 = vsel %vm3177_vm12, %v8471_v51, %v3382_v1  ;;  %v2508_v11 = vmax.f32 %v1721_v21, %v6083_v55  ;;  %v8524_v45 = vrot.slane %v2507_v24, %v8094_v50  ;;  %v1344_v53 = vpop.permute.xlu1 %1343 }
 0x2b2   :  { %v2510_v37 = vmax.f32 %v1722_v6, %v6085_v9  ;;  %v8528_v63 = vsel %vm3177_vm12, %v8474_v0, %v3389_v61  ;;  %v8531_v3 = vrot.slane %v2507_v24, %v8443_v39  ;;  %v8534_v40 = vrot.slane %v2509_v26, %v8094_v50 }
 0x2b3   :  { %v1598_v49 = vmax.f32 %v11335_v44, %v1570_v14  ;;  %11336 = vst [vmem:[#allocation52_spill] sm:$0xff] %v8524_v45  ;;  %11337 = vst [vmem:[#allocation53_spill] sm:$0xff] %v8528_v63  ;;  %v1723_v48 = vcombine.low %v1595_v23, %v1596_v46  ;;  %v1724_v30 = vcombine.high %v1595_v23, %v1596_v46  ;;  %1534 = vrot.lane.b32.xlu0 %v8417_v47, %s7404_s25 }
 0x2b4   :  { %11338 = vst [vmem:[#allocation54_spill] sm:$0xff] %v8531_v3  ;;  %11339 = vst [vmem:[#allocation55_spill] sm:$0xff] %v8534_v40  ;;  %v8539_v6 = vrot.slane %v2508_v11, %v8094_v50  ;;  %v8542_v9 = vrot.slane %v2508_v11, %v8443_v39  ;;  %v8545_v55 = vrot.slane %v2509_v26, %v8443_v39  ;;  %v1342_v61 = vpop.permute.xlu0 %1341 }
 0x2b5   :  { %v8548_v24 = vrot.slane %v2510_v37, %v8094_v50  ;;  %1540 = vrot.lane.b32.xlu1 %v8458_v22, %s7404_s25  ;;  %v1731_v46 = vrot.slane %v1723_v48, %v8409_v59  ;;  %v1738_v1 = vrot.slane %v1724_v30, %v8409_v59  ;;  %v1425_v38 = vsel %vm1421_vm9, %v1338_v29, %v1340_v19  ;;  %v1505_v44 = vpop.permute.xlu1 %1504 }
 0x2b6   :  { %11340 = vst [vmem:[#allocation56_spill] sm:$0xff] %v8539_v6  ;;  %11341 = vst [vmem:[#allocation57_spill] sm:$0xff] %v8542_v9  ;;  %v1571_v14 = vsel %vm1566_vm10, %v1344_v53, %v1503_v33  ;;  %v8557_v11 = vrot.slane %v2510_v37, %v8443_v39  ;;  %v1597_v26 = vmax.f32 %v8137_v43, %v1425_v38  ;;  %v11346_v33 = vmax.f32 %v8158_v18, 0.0 }
 0x2b7   :  { %11342 = vst [vmem:[#allocation58_spill] sm:$0xff] %v8545_v55  ;;  %11343 = vst [vmem:[#allocation59_spill] sm:$0xff] %v8548_v24  ;;  %v1426_v21 = vsel %vm1421_vm9, %v1342_v61, %v1344_v53  ;;  %v3384_v23 = vsel %vm3179_vm13, %v8524_v45, %v3383_v36  ;;  %v1739_v7 = vcombine.high %v1731_v46, %v1731_v46  ;;  %v6086_v48 = vrot.slane %v1731_v46, 9 }
 0x2b8   :  { %11344 = vst [vmem:[#allocation60_spill] sm:$0xff] %v8557_v11  ;;  %v8563_v52 = vcombine.high %v1738_v1, %v1738_v1  ;;  %v6088_v30 = vrot.slane %v1738_v1, 9  ;;  %v1741_v19 = vcombine.low %v1597_v26, %v1598_v49  ;;  %v1742_v29 = vcombine.high %v1597_v26, %v1598_v49  ;;  %v1346_v38 = vpop.permute.xlu0 %1345 }
 0x2b9   :  { %v1600_v0 = vmax.f32 %v11346_v33, %v1571_v14  ;;  %v1599_v37 = vmax.f32 %v8155_v17, %v1426_v21  ;;  %v6087_v51 = vrot.slane %v1739_v7, 9  ;;  %v2511_v53 = vmax.f32 %v1731_v46, %v6086_v48  ;;  %v1348_v26 = vpop.permute.xlu1 %1347 }
 0x2ba   :  { %11345 = vst [vmem:[#allocation61_spill] sm:$0xff] %v8563_v52  ;;  %v8571_v36 = vsel %vm3181_vm14, %v8539_v6, %v3384_v23  ;;  %v1749_v61 = vrot.slane %v1741_v19, %v8409_v59  ;;  %v1756_v4 = vrot.slane %v1742_v29, %v8409_v59  ;;  %v8577_v14 = vmax.f32 %v1738_v1, %v6088_v30 }
 0x2bb   :  { %v1759_v22 = vcombine.low %v1599_v37, %v1600_v0  ;;  %v1760_v49 = vcombine.high %v1599_v37, %v1600_v0  ;;  %v8575_v18 = vmax.f32 %v1739_v7, %v6087_v51  ;;  %v8580_v17 = vrot.slane %v2511_v53, %v8094_v50 }
 0x2bc   :  { %11347 = vst [vmem:[#allocation62_spill] sm:$0xff] %v8577_v14  ;;  %v8583_v46 = vrot.slane %v2511_v53, %v8443_v39  ;;  %v1757_v21 = vcombine.high %v1749_v61, %v1749_v61  ;;  %v1758_v23 = vcombine.high %v1756_v4, %v1756_v4  ;;  %v6090_v48 = vrot.slane %v1749_v61, 9  ;;  %v1350_v1 = vpop.permute.xlu0 %1349 }
 0x2bd   :  { %11348 = vst [vmem:[#allocation63_spill] sm:$0xff] %v8580_v17  ;;  %v6092_v33 = vrot.slane %v1756_v4, 9  ;;  %v1767_v19 = vrot.slane %v1759_v22, %v8409_v59  ;;  %v1774_v29 = vrot.slane %v1760_v49, %v8409_v59  ;;  %v1427_v0 = vsel %vm1421_vm9, %v1346_v38, %v1348_v26  ;;  %v1352_v43 = vpop.permute.xlu1 %1351 }
 0x2be   :  { %11349 = vst [vmem:[#allocation64_spill] sm:$0xff] %v8583_v46  ;;  %v1572_v51 = vsel %vm1566_vm10, %v1348_v26, %v1505_v44  ;;  %v6091_v7 = vrot.slane %v1757_v21, 9  ;;  %v6093_v30 = vrot.slane %v1758_v23, 9  ;;  %v8589_v37 = vmax.f32 %v1749_v61, %v6090_v48 }
 0x2bf   :  { %v2517_v53 = vmax.f32 %v1756_v4, %v6092_v33  ;;  %v1775_v52 = vcombine.high %v1767_v19, %v1767_v19  ;;  %v1776_v14 = vcombine.high %v1774_v29, %v1774_v29  ;;  %v6094_v47 = vrot.slane %v1767_v19, 9 }
 0x2c0   :  { %11350 = vst [vmem:[#allocation65_spill] sm:$0xff] %v8589_v37  ;;  %v6096_v46 = vrot.slane %v1774_v29, 9  ;;  %v2516_v22 = vmax.f32 %v1757_v21, %v6091_v7  ;;  %v2518_v63 = vmax.f32 %v1758_v23, %v6093_v30  ;;  %v2730_v38 = vrot.slane %v8589_v37, %v8094_v50  ;;  %v1507_v48 = vpop.permute.xlu0 %1506 }
 0x2c1   :  { %v1601_v44 = vmax.f32 %v8171_v56, %v1427_v0  ;;  %v8595_v49 = vrot.slane %v2517_v53, %v8094_v50  ;;  %v8598_v61 = vrot.slane %v2517_v53, %v8443_v39  ;;  %v6095_v4 = vrot.slane %v1775_v52, 9  ;;  %v1356_v56 = vpop.permute.xlu1 %1355 }
 0x2c2   :  { %v6097_v26 = vrot.slane %v1776_v14, 9  ;;  %v2738_v33 = vrot.slane %v2516_v22, %v8094_v50  ;;  %v8602_v11 = vrot.slane %v2516_v22, %v8443_v39  ;;  %v8605_v21 = vrot.slane %v2518_v63, %v8094_v50 }
 0x2c3   :  { %11351 = vst [vmem:[#allocation66_spill] sm:$0xff] %v8595_v49  ;;  %11352 = vst [vmem:[#allocation67_spill] sm:$0xff] %v8598_v61  ;;  %v8608_v23 = vrot.slane %v2518_v63, %v8443_v39  ;;  %v2519_v0 = vmax.f32 %v1767_v19, %v6094_v47  ;;  %v2520_v7 = vmax.f32 %v1775_v52, %v6095_v4 }
 0x2c4   :  { %11353 = vst [vmem:[#allocation68_spill] sm:$0xff] %v8602_v11  ;;  %11354 = vst [vmem:[#allocation69_spill] sm:$0xff] %v8605_v21  ;;  %v2521_v30 = vmax.f32 %v1774_v29, %v6096_v46  ;;  %v2522_v53 = vmax.f32 %v1776_v14, %v6097_v26  ;;  %v8613_v9 = vsel %vm3175_vm11, %v2738_v33, %v2730_v38  ;;  %v1354_v19 = vpop.permute.xlu0 %1353 }
 0x2c5   :  { %11355 = vst [vmem:[#allocation70_spill] sm:$0xff] %v8608_v23  ;;  %11356 = vst [vmem:[#allocation71_spill] sm:$0xff] %v8613_v9  ;;  %v3396_v22 = vsel %vm3175_vm11, %v8595_v49, %v2738_v33  ;;  %v8620_v63 = vsel %vm3175_vm11, %v8598_v61, %v8602_v11  ;;  %v8625_v47 = vsel %vm3175_vm11, %v8605_v21, %v8595_v49  ;;  %v8650_v33 = vpop.permute.xlu1 %1359  ;;  %v11367_v11 = vmax.f32 %v8183_v34, 0.0 }
 0x2c6   :  { %11357 = vst [vmem:[#allocation72_spill] sm:$0xff] %v8625_v47  ;;  %v8630_v52 = vsel %vm3175_vm11, %v8608_v23, %v8598_v61  ;;  %v8633_v14 = vrot.slane %v2519_v0, %v8094_v50  ;;  %v8636_v46 = vrot.slane %v2519_v0, %v8443_v39  ;;  %v8639_v29 = vrot.slane %v2520_v7, %v8094_v50 }
 0x2c7   :  { %11358 = vst [vmem:[#allocation73_spill] sm:$0xff] %v8630_v52  ;;  %v8642_v38 = vrot.slane %v2520_v7, %v8443_v39  ;;  %v8645_v4 = vrot.slane %v2521_v30, %v8094_v50  ;;  %v8648_v26 = vrot.slane %v2521_v30, %v8443_v39  ;;  %v8653_v55 = vrot.slane %v2522_v53, %v8094_v50 }
 0x2c8   :  { %11359 = vst [vmem:[#allocation74_spill] sm:$0xff] %v8633_v14  ;;  %11360 = vst [vmem:[#allocation75_spill] sm:$0xff] %v8636_v46  ;;  %v11366_v0 = vmax.f32 %v8174_v27, 0.0  ;;  %v1428_v9 = vsel %vm1421_vm9, %v1350_v1, %v1352_v43  ;;  %v1573_v61 = vsel %vm1566_vm10, %v1352_v43, %v1507_v48  ;;  %v1429_v30 = vsel %vm1421_vm9, %v1354_v19, %v1356_v56 }
 0x2c9   :  { %11361 = vst [vmem:[#allocation76_spill] sm:$0xff] %v8639_v29  ;;  %11362 = vst [vmem:[#allocation77_spill] sm:$0xff] %v8642_v38  ;;  %v1603_v7 = vmax.f32 %v8190_v8, %v1428_v9  ;;  %v1604_v37 = vmax.f32 %v11367_v11, %v1573_v61  ;;  %v3386_v52 = vsel %vm3183_vm15, %v8534_v40, %v8571_v36  ;;  %v8671_v34 = vpop.permute.xlu1 %1512  ;;  %v11369_v61 = vmax.f32 %v8194_v20, 0.0 }
 0x2ca   :  { %11363 = vst [vmem:[#allocation78_spill] sm:$0xff] %v8645_v4  ;;  %11364 = vst [vmem:[#allocation79_spill] sm:$0xff] %v8648_v26  ;;  %v1602_v49 = vmax.f32 %v11366_v0, %v1572_v51  ;;  %v8667_v47 = vrot.slane %v2522_v53, %v8443_v39  ;;  %v1605_v1 = vmax.f32 %v8211_v42, %v1429_v30  ;;  %v1509_v0 = vpop.permute.xlu0 %1508 }
 0x2cb   :  { %11365 = vst [vmem:[#allocation80_spill] sm:$0xff] %v8653_v55  ;;  %v1795_v43 = vcombine.low %v1603_v7, %v1604_v37  ;;  %v1796_v48 = vcombine.high %v1603_v7, %v1604_v37  ;;  %v1574_v8 = vsel %vm1566_vm10, %v1356_v56, %v1509_v0  ;;  %v3387_v9 = vsel %vm3185_vm0, %v8548_v24, %v3386_v52 }
 0x2cc   :  { %11368 = vst [vmem:[#allocation81_spill] sm:$0xff] %v8667_v47  ;;  %v1777_v27 = vcombine.low %v1601_v44, %v1602_v49  ;;  %v1778_v51 = vcombine.high %v1601_v44, %v1602_v49  ;;  %v1606_v53 = vmax.f32 %v11369_v61, %v1574_v8  ;;  %v3397_v42 = vsel %vm3177_vm12, %v8605_v21, %v3396_v22 }
 0x2cd   :  { %v1803_v44 = vrot.slane %v1795_v43, %v8409_v59  ;;  %v1810_v37 = vrot.slane %v1796_v48, %v8409_v59  ;;  %v8685_v49 = vsel %vm3187_vm1, %v8580_v17, %v3387_v9  ;;  %v3398_v56 = vsel %vm3179_vm13, %v8633_v14, %v3397_v42  ;;  %v8695_v43 = vpop.permute.xlu1 %1363 }
 0x2ce   :  { %v1785_v11 = vrot.slane %v1777_v27, %v8409_v59  ;;  %v1792_v36 = vrot.slane %v1778_v51, %v8409_v59  ;;  %v1358_v20 = vpop.permute.xlu0 %1357  ;;  %v8693_v30 = vrot.slane %v8575_v18, %v8094_v50  ;;  %v1813_v61 = vcombine.low %v1605_v1, %v1606_v53 }
 0x2cf   :  { %v1811_v22 = vcombine.high %v1803_v44, %v1803_v44  ;;  %v1812_v27 = vcombine.high %v1810_v37, %v1810_v37  ;;  %v6102_v51 = vrot.slane %v1803_v44, 9  ;;  %v6104_v0 = vrot.slane %v1810_v37, 9 }
 0x2d0   :  { %v8689_v52 = vcombine.high %v1785_v11, %v1785_v11  ;;  %v6098_v19 = vrot.slane %v1785_v11, 9  ;;  %v6100_v7 = vrot.slane %v1792_v36, 9  ;;  %11371 = vst [vmem:[#allocation83_spill] sm:$0xff] %v8693_v30  ;;  %v8697_v48 = vcombine.high %v1792_v36, %v1792_v36 }
 0x2d1   :  { %v6103_v42 = vrot.slane %v1811_v22, 9  ;;  %v6105_v21 = vrot.slane %v1812_v27, 9  ;;  %v2527_v14 = vmax.f32 %v1803_v44, %v6102_v51  ;;  %v2529_v47 = vmax.f32 %v1810_v37, %v6104_v0  ;;  %v7026_v44 = vld [vmem:[#allocation8] sm:$0xff]  }
 0x2d2   :  { %11370 = vst [vmem:[#allocation82_spill] sm:$0xff] %v8689_v52  ;;  %11372 = vst [vmem:[#allocation84_spill] sm:$0xff] %v8697_v48  ;;  %v2523_v9 = vmax.f32 %v1785_v11, %v6098_v19  ;;  %v8700_v26 = vmax.f32 %v1792_v36, %v6100_v7  ;;  %v1814_v46 = vcombine.high %v1605_v1, %v1606_v53  ;;  %v1511_v17 = vpop.permute.xlu0 %1510  ;;  %v1515_v19 = vpop.permute.xlu1 %1514  ;;  %v7025_v52 = vld [vmem:[#allocation8 + $0x40] sm:$0xff]  }
 0x2d3   :  { %v1821_v30 = vrot.slane %v1813_v61, %v8409_v59  ;;  %v2528_v48 = vmax.f32 %v1811_v22, %v6103_v42  ;;  %v2530_v8 = vmax.f32 %v1812_v27, %v6105_v21  ;;  %v2794_v11 = vrot.slane %v2527_v14, %v8094_v50  ;;  %6340 = vmatprep.subr.bf16.mxu1 %v7025_v52 }
 0x2d4   :  { %11373 = vst [vmem:[#allocation85_spill] sm:$0xff] %v8700_v26  ;;  %v8703_v38 = vrot.slane %v2523_v9, %v8094_v50  ;;  %v8707_v23 = vrot.slane %v2523_v9, %v8443_v39  ;;  %v2798_v36 = vrot.slane %v2527_v14, %v8443_v39  ;;  %v8712_v37 = vrot.slane %v2529_v47, %v8094_v50 }
 0x2d5   :  { %v1828_v1 = vrot.slane %v1814_v46, %v8409_v59  ;;  %v1829_v53 = vcombine.high %v1821_v30, %v1821_v30  ;;  %v2802_v7 = vrot.slane %v2528_v48, %v8094_v50  ;;  %v2806_v51 = vrot.slane %v2528_v48, %v8443_v39  ;;  %6341 = vmatpush3.bf16.msra.mxu1 %v7026_v44 }
 0x2d6   :  { %11374 = vst [vmem:[#allocation86_spill] sm:$0xff] %v8703_v38  ;;  %11375 = vst [vmem:[#allocation87_spill] sm:$0xff] %v8707_v23  ;;  %v2814_v22 = vrot.slane %v2529_v47, %v8443_v39  ;;  %v8719_v21 = vrot.slane %v2530_v8, %v8094_v50  ;;  %v6106_v0 = vrot.slane %v1821_v30, 9  ;;  %v1362_v61 = vpop.permute.xlu0 %1361  ;;  %v8722_v42 = vrot.slane %v2530_v8, %v8443_v39  ;;  %v1368_v26 = vpop.permute.xlu1 %1367 }
 0x2d7   :  { %11376 = vst [vmem:[#allocation88_spill] sm:$0xff] %v8712_v37  ;;  %v1830_v27 = vcombine.high %v1828_v1, %v1828_v1  ;;  %v6107_v9 = vrot.slane %v1829_v53, 9  ;;  %v6108_v14 = vrot.slane %v1828_v1, 9  ;;  %v8725_v46 = vsel %vm3175_vm11, %v2802_v7, %v2794_v11 }
 0x2d8   :  { %11377 = vst [vmem:[#allocation89_spill] sm:$0xff] %v8719_v21  ;;  %11378 = vst [vmem:[#allocation90_spill] sm:$0xff] %v8722_v42  ;;  %v3217_v48 = vsel %vm3175_vm11, %v2806_v51, %v2798_v36  ;;  %v8729_v47 = vsel %vm3175_vm11, %v2814_v22, %v2806_v51  ;;  %v8736_v23 = vsel %vm3175_vm11, %v8712_v37, %v2802_v7 }
 0x2d9   :  { %11379 = vst [vmem:[#allocation91_spill] sm:$0xff] %v8725_v46  ;;  %11380 = vst [vmem:[#allocation92_spill] sm:$0xff] %v8729_v47  ;;  %v8732_v52 = vsel %vm3177_vm12, %v2814_v22, %v3217_v48  ;;  %v8741_v8 = vsel %vm3175_vm11, %v8719_v21, %v8712_v37  ;;  %v6109_v11 = vrot.slane %v1830_v27, 9  ;;  %v2531_v44 = vmax.f32 %v1821_v30, %v6106_v0 }
 0x2da   :  { %11381 = vst [vmem:[#allocation93_spill] sm:$0xff] %v8732_v52  ;;  %v2532_v46 = vmax.f32 %v1829_v53, %v6107_v9  ;;  %v2533_v36 = vmax.f32 %v1828_v1, %v6108_v14  ;;  %v3399_v51 = vsel %vm3181_vm14, %v8639_v29, %v3398_v56  ;;  %v1430_v7 = vsel %vm1421_vm9, %v1358_v20, %v8650_v33  ;;  %v1366_v37 = vpop.permute.xlu0 %1365 }
 0x2db   :  { %v2534_v47 = vmax.f32 %v1830_v27, %v6109_v11  ;;  %v3400_v48 = vsel %vm3183_vm15, %v8645_v4, %v3399_v51  ;;  %v1576_v52 = vsel %vm1566_vm10, %v8695_v43, %v8671_v34  ;;  %v8754_v30 = vsel %vm3175_vm11, %v8722_v42, %v2814_v22  ;;  %v1517_v27 = vpop.permute.xlu1 %1516 }
 0x2dc   :  { %v8757_v1 = vrot.slane %v2531_v44, %v8094_v50  ;;  %v8760_v56 = vrot.slane %v2531_v44, %v8443_v39  ;;  %v8763_v53 = vrot.slane %v2532_v46, %v8094_v50  ;;  %v8766_v20 = vrot.slane %v2532_v46, %v8443_v39 }
 0x2dd   :  { %v8769_v34 = vrot.slane %v2533_v36, %v8094_v50  ;;  %v8772_v0 = vrot.slane %v2533_v36, %v8443_v39  ;;  %v8775_v22 = vrot.slane %v2534_v47, %v8094_v50  ;;  %v3401_v9 = vsel %vm3185_vm0, %v8653_v55, %v3400_v48  ;;  %v7032_v55 = vld [vmem:[#allocation8 + $0x18] sm:$0xff]  }
 0x2de   :  { %11382 = vst [vmem:[#allocation94_spill] sm:$0xff] %v8757_v1  ;;  %11383 = vst [vmem:[#allocation95_spill] sm:$0xff] %v8760_v56  ;;  %v1607_v14 = vmax.f32 %v8230_v15, %v1430_v7  ;;  %v11389_v11 = vmax.f32 %v8224_v12, 0.0  ;;  %v1575_v46 = vsel %vm1566_vm10, %v8650_v33, %v1511_v17  ;;  %v3402_v51 = vsel %vm3187_vm1, %v8703_v38, %v3401_v9  ;;  %v1370_v48 = vpop.permute.xlu0 %1369  ;;  %v7027_v9 = vld [vmem:[#allocation8 + $0x48] sm:$0xff]  }
 0x2df   :  { %11384 = vst [vmem:[#allocation96_spill] sm:$0xff] %v8763_v53  ;;  %11385 = vst [vmem:[#allocation97_spill] sm:$0xff] %v8766_v20  ;;  %v11390_v36 = vmax.f32 %v8204_v25, 0.0  ;;  %v1431_v29 = vsel %vm1421_vm9, %v1362_v61, %v8695_v43  ;;  %v1577_v42 = vsel %vm1566_vm10, %v1368_v26, %v1515_v19  ;;  %v6838_v15 = vpack.i.bf16 %v3402_v51, %v8685_v49  ;;  %v1372_v33 = vpop.permute.xlu1 %1371  ;;  %v7028_v25 = vld [vmem:[#allocation8 + $0x8] sm:$0xff]  }
 0x2e0   :  { %11386 = vst [vmem:[#allocation98_spill] sm:$0xff] %v8769_v34  ;;  %11387 = vst [vmem:[#allocation99_spill] sm:$0xff] %v8772_v0  ;;  %v1610_v44 = vmax.f32 %v11389_v11, %v1576_v52  ;;  %v1609_v12 = vmax.f32 %v8221_v58, %v1431_v29  ;;  %v11391_v52 = vmax.f32 %v8242_v57, 0.0  ;;  %v1432_v17 = vsel %vm1421_vm9, %v1366_v37, %v1368_v26 }
 0x2e1   :  { %11388 = vst [vmem:[#allocation100_spill] sm:$0xff] %v8775_v22  ;;  %v1608_v4 = vmax.f32 %v11390_v36, %v1575_v46  ;;  %v1611_v43 = vmax.f32 %v8239_v10, %v1432_v17  ;;  %v1433_v19 = vsel %vm1421_vm9, %v1370_v48, %v1372_v33  ;;  %v8801_v61 = vrot.slane %v2534_v47, %v8443_v39  ;;  %v7029_v36 = vld [vmem:[#allocation8 + $0x50] sm:$0xff]   ;;  %v7031_v17 = vld [vmem:[#allocation8 + $0x58] sm:$0xff]  }
 0x2e2   :  { %v8795_v7 = vmax.f32 %v11391_v52, %v1577_v42  ;;  %6839 = vrot.lane.b32.xlu0 %v6838_v15, %s7406_s28  ;;  %v1849_v58 = vcombine.low %v1609_v12, %v1610_v44  ;;  %v1850_v57 = vcombine.high %v1609_v12, %v1610_v44  ;;  %v1578_v29 = vsel %vm1566_vm10, %v1372_v33, %v1517_v27  ;;  %v8811_v37 = vpop.permute.xlu0 %1373  ;;  %v7030_v48 = vld [vmem:[#allocation8 + $0x10] sm:$0xff]  }
 0x2e3   :  { %v1831_v11 = vcombine.low %v1607_v14, %v1608_v4  ;;  %v1832_v46 = vcombine.high %v1607_v14, %v1608_v4  ;;  %11392 = vst [vmem:[#allocation101_spill] sm:$0xff] %v8801_v61  ;;  %v8809_v10 = vmax.f32 %v8255_v60, %v1433_v19  ;;  %6342 = vmatprep.subr.bf16.mxu1 %v7027_v9  ;;  %v11393_v27 = vmax.f32 %v8258_v32, 0.0  ;;  %v8820_v51 = vpop.permute.xlu1 %1375 }
 0x2e4   :  { %v1867_v4 = vcombine.low %v1611_v43, %v8795_v7  ;;  %v1857_v42 = vrot.slane %v1849_v58, %v8409_v59  ;;  %v1864_v47 = vrot.slane %v1850_v57, %v8409_v59  ;;  %v1868_v14 = vcombine.high %v1611_v43, %v8795_v7  ;;  %6343 = vmatpush3.bf16.msra.mxu1 %v7028_v25 }
 0x2e5   :  { %v1839_v26 = vrot.slane %v1831_v11, %v8409_v59  ;;  %v1846_v49 = vrot.slane %v1832_v46, %v8409_v59  ;;  %v8818_v44 = vmax.f32 %v11393_v27, %v1578_v29  ;;  %6344 = vmatprep.subr.bf16.mxu1 %v7029_v36  ;;  %v8828_v25 = vsel %vm3177_vm12, %v8719_v21, %v8736_v23  ;;  %v7033_v23 = vld [vmem:[#allocation8 + $0x60] sm:$0xff]  }
 0x2e6   :  { %v1865_v33 = vcombine.high %v1857_v42, %v1857_v42  ;;  %v1866_v9 = vcombine.high %v1864_v47, %v1864_v47  ;;  %v6114_v11 = vrot.slane %v1857_v42, 9  ;;  %v6116_v46 = vrot.slane %v1864_v47, 9  ;;  %v1519_v19 = vpop.permute.xlu0 %1518 }
 0x2e7   :  { %v1847_v60 = vcombine.high %v1839_v26, %v1839_v26  ;;  %v8822_v15 = vcombine.high %v1846_v49, %v1846_v49  ;;  %v6110_v12 = vrot.slane %v1839_v26, 9  ;;  %v6112_v52 = vrot.slane %v1846_v49, 9  ;;  %v8830_v38 = vpop.permute.xlu1 %1379 }
 0x2e8   :  { %v6115_v58 = vrot.slane %v1865_v33, 9  ;;  %v6117_v57 = vrot.slane %v1866_v9, 9  ;;  %v2539_v29 = vmax.f32 %v1857_v42, %v6114_v11  ;;  %v2541_v27 = vmax.f32 %v1864_v47, %v6116_v46  ;;  %6345 = vmatpush3.bf16.msra.mxu1 %v7030_v48 }
 0x2e9   :  { %11394 = vst [vmem:[#allocation102_spill] sm:$0xff] %v8822_v15  ;;  %v6111_v7 = vrot.slane %v1847_v60, 9  ;;  %v2535_v43 = vmax.f32 %v1839_v26, %v6110_v12  ;;  %v8834_v36 = vmax.f32 %v1846_v49, %v6112_v52  ;;  %v1875_v12 = vrot.slane %v1867_v4, %v8409_v59  ;;  %6346 = vmatprep.subr.bf16.mxu1 %v7031_v17 }
 0x2ea   :  { %v2540_v32 = vmax.f32 %v1865_v33, %v6115_v58  ;;  %v2542_v15 = vmax.f32 %v1866_v9, %v6117_v57  ;;  %v2858_v42 = vrot.slane %v2539_v29, %v8094_v50  ;;  %v2862_v47 = vrot.slane %v2539_v29, %v8443_v39  ;;  %v1378_v11 = vpop.permute.xlu0 %1377 }
 0x2eb   :  { %v8832_v61 = vmax.f32 %v1847_v60, %v6111_v7  ;;  %11395 = vst [vmem:[#allocation103_spill] sm:$0xff] %v8834_v36  ;;  %v8837_v26 = vrot.slane %v2535_v43, %v8094_v50  ;;  %v8843_v48 = vrot.slane %v2541_v27, %v8094_v50  ;;  %v2878_v60 = vrot.slane %v2541_v27, %v8443_v39  ;;  %v8855_v9 = vpop.permute.xlu1 %1383  ;;  %v7034_v7 = vld [vmem:[#allocation8 + $0x20] sm:$0xff]   ;;  %v7035_v27 = vld [vmem:[#allocation8 + $0x68] sm:$0xff]  }
 0x2ec   :  { %v1882_v49 = vrot.slane %v1868_v14, %v8409_v59  ;;  %v1883_v52 = vcombine.high %v1875_v12, %v1875_v12  ;;  %v2866_v46 = vrot.slane %v2540_v32, %v8094_v50  ;;  %v2870_v4 = vrot.slane %v2540_v32, %v8443_v39  ;;  %6347 = vmatpush3.bf16.msra.mxu1 %v7032_v55 }
 0x2ed   :  { %11396 = vst [vmem:[#allocation104_spill] sm:$0xff] %v8837_v26  ;;  %11397 = vst [vmem:[#allocation105_spill] sm:$0xff] %v8843_v48  ;;  %v8850_v17 = vrot.slane %v2542_v15, %v8094_v50  ;;  %v8853_v33 = vrot.slane %v2542_v15, %v8443_v39  ;;  %v6118_v57 = vrot.slane %v1875_v12, 9  ;;  %6348 = vmatprep.subr.bf16.mxu1 %v7033_v23 }
 0x2ee   :  { %v1884_v58 = vcombine.high %v1882_v49, %v1882_v49  ;;  %v6119_v29 = vrot.slane %v1883_v52, 9  ;;  %v6120_v14 = vrot.slane %v1882_v49, 9  ;;  %v8858_v21 = vrot.slane %v2535_v43, %v8443_v39 }
 0x2ef   :  { %11398 = vst [vmem:[#allocation106_spill] sm:$0xff] %v8850_v17  ;;  %11399 = vst [vmem:[#allocation107_spill] sm:$0xff] %v8853_v33  ;;  %v8861_v32 = vsel %vm3175_vm11, %v2866_v46, %v2858_v42  ;;  %v3231_v36 = vsel %vm3175_vm11, %v2870_v4, %v2862_v47  ;;  %v8865_v15 = vsel %vm3175_vm11, %v2878_v60, %v2870_v4  ;;  %v8879_v4 = vpop.permute.xlu1 %1524 }
 0x2f0   :  { %11400 = vst [vmem:[#allocation108_spill] sm:$0xff] %v8858_v21  ;;  %11401 = vst [vmem:[#allocation109_spill] sm:$0xff] %v8861_v32  ;;  %v8868_v55 = vsel %vm3177_vm12, %v2878_v60, %v3231_v36  ;;  %v3424_v0 = vsel %vm3175_vm11, %v8843_v48, %v2866_v46  ;;  %v8875_v23 = vsel %vm3175_vm11, %v8850_v17, %v8843_v48  ;;  %v6121_v43 = vrot.slane %v1884_v58, 9  ;;  %v1521_v21 = vpop.permute.xlu0 %1520  ;;  %v7036_v36 = vld [vmem:[#allocation8 + $0x28] sm:$0xff]  }
 0x2f1   :  { %11402 = vst [vmem:[#allocation110_spill] sm:$0xff] %v8865_v15  ;;  %11403 = vst [vmem:[#allocation111_spill] sm:$0xff] %v8868_v55  ;;  %v2543_v42 = vmax.f32 %v1875_v12, %v6118_v57  ;;  %v2544_v32 = vmax.f32 %v1883_v52, %v6119_v29  ;;  %v2545_v20 = vmax.f32 %v1882_v49, %v6120_v14  ;;  %6349 = vmatpush3.bf16.msra.mxu1 %v7034_v7  ;;  %v7037_v49 = vld [vmem:[#allocation8 + $0x70] sm:$0xff]  }
 0x2f2   :  { %11404 = vst [vmem:[#allocation112_spill] sm:$0xff] %v8875_v23  ;;  %v1885_v47 = vcombine.low %v8809_v10, %v8818_v44  ;;  %v8883_v46 = vsel %vm3175_vm11, %v8853_v33, %v2878_v60  ;;  %v2546_v55 = vmax.f32 %v1884_v58, %v6121_v43  ;;  %v1886_v48 = vcombine.high %v8809_v10, %v8818_v44 }
 0x2f3   :  { %11405 = vst [vmem:[#allocation113_spill] sm:$0xff] %v8883_v46  ;;  %v1579_v12 = vsel %vm1566_vm10, %v8820_v51, %v1519_v19  ;;  %6350 = vmatprep.subr.bf16.mxu1 %v7035_v27  ;;  %v8890_v52 = vrot.slane %v2543_v42, %v8094_v50  ;;  %v8893_v57 = vrot.slane %v2543_v42, %v8443_v39  ;;  %v8922_v43 = vpop.permute.xlu1 %1387 }
 0x2f4   :  { %v8896_v7 = vrot.slane %v2544_v32, %v8094_v50  ;;  %v1434_v60 = vsel %vm1421_vm9, %v8811_v37, %v8820_v51  ;;  %v8902_v10 = vrot.slane %v2544_v32, %v8443_v39  ;;  %v8905_v44 = vrot.slane %v2545_v20, %v8094_v50  ;;  %v8913_v29 = vpop.permute.xlu0 %1381 }
 0x2f5   :  { %11406 = vst [vmem:[#allocation114_spill] sm:$0xff] %v8890_v52  ;;  %11407 = vst [vmem:[#allocation115_spill] sm:$0xff] %v8893_v57  ;;  %v8908_v19 = vrot.slane %v2545_v20, %v8443_v39  ;;  %v8911_v58 = vrot.slane %v2546_v55, %v8094_v50  ;;  %v8916_v14 = vrot.slane %v2546_v55, %v8443_v39  ;;  %v11414_v51 = vmax.f32 %v8267_v62, 0.0  ;;  %v7038_v20 = vld [vmem:[#allocation8 + $0x30] sm:$0xff]  }
 0x2f6   :  { %11408 = vst [vmem:[#allocation116_spill] sm:$0xff] %v8896_v7  ;;  %11409 = vst [vmem:[#allocation117_spill] sm:$0xff] %v8902_v10  ;;  %v1893_v27 = vrot.slane %v1885_v47, %v8409_v59  ;;  %v1900_v37 = vrot.slane %v1886_v48, %v8409_v59  ;;  %6351 = vmatpush3.bf16.msra.mxu1 %v7036_v36  ;;  %v1615_v42 = vmax.f32 %v8274_v31, %v1434_v60 }
 0x2f7   :  { %11410 = vst [vmem:[#allocation118_spill] sm:$0xff] %v8905_v44  ;;  %11411 = vst [vmem:[#allocation119_spill] sm:$0xff] %v8908_v19  ;;  %v1616_v32 = vmax.f32 %v11414_v51, %v1579_v12  ;;  %v1435_v46 = vsel %vm1421_vm9, %v1378_v11, %v8830_v38  ;;  %v1580_v55 = vsel %vm1566_vm10, %v8830_v38, %v1521_v21  ;;  %6352 = vmatprep.subr.bf16.mxu1 %v7037_v49  ;;  %v7039_v38 = vld [vmem:[#allocation8 + $0x78] sm:$0xff]   ;;  %v8942_v10 = vpop.permute.xlu1 %1526 }
 0x2f8   :  { %11412 = vst [vmem:[#allocation120_spill] sm:$0xff] %v8911_v58  ;;  %11413 = vst [vmem:[#allocation121_spill] sm:$0xff] %v8916_v14  ;;  %v3412_v47 = vsel %vm3179_vm13, %v8757_v1, %v8828_v25  ;;  %v1901_v48 = vcombine.high %v1893_v27, %v1893_v27  ;;  %v8932_v62 = vcombine.high %v1900_v37, %v1900_v37  ;;  %v6122_v12 = vrot.slane %v1893_v27, 9  ;;  %v8937_v14 = vpop.permute.xlu0 %1522 }
 0x2f9   :  { %v6124_v51 = vrot.slane %v1900_v37, 9  ;;  %v1903_v36 = vcombine.low %v1615_v42, %v1616_v32  ;;  %v1904_v23 = vcombine.high %v1615_v42, %v1616_v32  ;;  %v1617_v31 = vmax.f32 %v8297_v13, %v1435_v46 }
 0x2fa   :  { %11415 = vst [vmem:[#allocation122_spill] sm:$0xff] %v8932_v62  ;;  %v11416_v60 = vmax.f32 %v8278_v5, 0.0  ;;  %v6123_v21 = vrot.slane %v1901_v48, 9  ;;  %v2547_v25 = vmax.f32 %v1893_v27, %v6122_v12  ;;  %v3425_v49 = vsel %vm3177_vm12, %v8850_v17, %v3424_v0  ;;  %6353 = vmatpush3.bf16.msra.mxu1 %v7038_v20  ;;  %v7040_v27 = vld [vmem:[#allocation8 + $0x38] sm:$0xff]  }
 0x2fb   :  { %v1911_v32 = vrot.slane %v1903_v36, %v8409_v59  ;;  %v1918_v13 = vrot.slane %v1904_v23, %v8409_v59  ;;  %6354 = vmatprep.subr.bf16.mxu1 %v7039_v38  ;;  %v3413_v0 = vsel %vm3181_vm14, %v8763_v53, %v3412_v47 }
 0x2fc   :  { %v1618_v11 = vmax.f32 %v11416_v60, %v1580_v55  ;;  %v8946_v42 = vmax.f32 %v1901_v48, %v6123_v21  ;;  %v8948_v55 = vmax.f32 %v1900_v37, %v6124_v51  ;;  %v8951_v60 = vrot.slane %v2547_v25, %v8094_v50  ;;  %v1386_v62 = vpop.permute.xlu0 %1385  ;;  %v1392_v21 = vpop.permute.xlu1 %1391 }
 0x2fd   :  { %v1919_v12 = vcombine.high %v1911_v32, %v1911_v32  ;;  %v1920_v20 = vcombine.high %v1918_v13, %v1918_v13  ;;  %v6126_v19 = vrot.slane %v1911_v32, 9  ;;  %v6128_v36 = vrot.slane %v1918_v13, 9 }
 0x2fe   :  { %v1921_v46 = vcombine.low %v1617_v31, %v1618_v11  ;;  %v1922_v5 = vcombine.high %v1617_v31, %v1618_v11  ;;  %11417 = vst [vmem:[#allocation123_spill] sm:$0xff] %v8946_v42  ;;  %11418 = vst [vmem:[#allocation124_spill] sm:$0xff] %v8948_v55  ;;  %v8956_v23 = vrot.slane %v2547_v25, %v8443_v39  ;;  %6355 = vmatpush3.bf16.msra.mxu1 %v7040_v27 }
 0x2ff   :  { %11419 = vst [vmem:[#allocation125_spill] sm:$0xff] %v8951_v60  ;;  %v3414_v51 = vsel %vm3183_vm15, %v8769_v34, %v3413_v0  ;;  %v6127_v31 = vrot.slane %v1919_v12, 9  ;;  %v6129_v11 = vrot.slane %v1920_v20, 9  ;;  %v2551_v47 = vmax.f32 %v1911_v32, %v6126_v19 }
 0x300   :  { %11420 = vst [vmem:[#allocation126_spill] sm:$0xff] %v8956_v23  ;;  %v1929_v48 = vrot.slane %v1921_v46, %v8409_v59  ;;  %v1936_v37 = vrot.slane %v1922_v5, %v8409_v59  ;;  %v2553_v38 = vmax.f32 %v1918_v13, %v6128_v36  ;;  %v1390_v5 = vpop.permute.xlu0 %1389  ;;  %v1529_v56 = vpop.permute.xlu1 %1528 }
 0x301   :  { %v2552_v33 = vmax.f32 %v1919_v12, %v6127_v31  ;;  %v2554_v25 = vmax.f32 %v1920_v20, %v6129_v11  ;;  %v2922_v23 = vrot.slane %v2551_v47, %v8094_v50  ;;  %v2926_v46 = vrot.slane %v2551_v47, %v8443_v39 }
 0x302   :  { %v1937_v17 = vcombine.high %v1929_v48, %v1929_v48  ;;  %v1938_v55 = vcombine.high %v1936_v37, %v1936_v37  ;;  %v6130_v42 = vrot.slane %v1929_v48, 9  ;;  %v6132_v57 = vrot.slane %v1936_v37, 9 }
 0x303   :  { %v8965_v15 = vrot.slane %v2553_v38, %v8094_v50  ;;  %v2942_v0 = vrot.slane %v2553_v38, %v8443_v39  ;;  %v2930_v32 = vrot.slane %v2552_v33, %v8094_v50  ;;  %v2934_v13 = vrot.slane %v2552_v33, %v8443_v39 }
 0x304   :  { %v6131_v27 = vrot.slane %v1937_v17, 9  ;;  %v6133_v19 = vrot.slane %v1938_v55, 9  ;;  %v8971_v36 = vrot.slane %v2554_v25, %v8094_v50  ;;  %v8974_v12 = vrot.slane %v2554_v25, %v8443_v39 }
 0x305   :  { %11421 = vst [vmem:[#allocation127_spill] sm:$0xff] %v8965_v15  ;;  %v2555_v20 = vmax.f32 %v1929_v48, %v6130_v42  ;;  %v2557_v11 = vmax.f32 %v1936_v37, %v6132_v57  ;;  %v8977_v34 = vsel %vm3175_vm11, %v2930_v32, %v2922_v23  ;;  %v3245_v38 = vsel %vm3175_vm11, %v2934_v13, %v2926_v46 }
 0x306   :  { %11422 = vst [vmem:[#allocation128_spill] sm:$0xff] %v8971_v36  ;;  %11423 = vst [vmem:[#allocation129_spill] sm:$0xff] %v8974_v12  ;;  %v2556_v31 = vmax.f32 %v1937_v17, %v6131_v27  ;;  %v2558_v47 = vmax.f32 %v1938_v55, %v6133_v19  ;;  %v8982_v53 = vsel %vm3175_vm11, %v8965_v15, %v2930_v32  ;;  %v1394_v55 = vpop.permute.xlu0 %1393 }
 0x307   :  { %11424 = vst [vmem:[#allocation130_spill] sm:$0xff] %v8977_v34  ;;  %v3426_v33 = vsel %vm3179_vm13, %v8890_v52, %v3425_v49  ;;  %v8987_v25 = vsel %vm3177_vm12, %v2942_v0, %v3245_v38  ;;  %v8990_v17 = vsel %vm3175_vm11, %v2942_v0, %v2934_v13  ;;  %v8995_v57 = vsel %vm3175_vm11, %v8971_v36, %v8965_v15 }
 0x308   :  { %11425 = vst [vmem:[#allocation131_spill] sm:$0xff] %v8987_v25  ;;  %11426 = vst [vmem:[#allocation132_spill] sm:$0xff] %v8990_v17  ;;  %v8999_v42 = vsel %vm3175_vm11, %v8974_v12, %v2942_v0  ;;  %v9002_v23 = vrot.slane %v2555_v20, %v8094_v50  ;;  %v9005_v49 = vrot.slane %v2555_v20, %v8443_v39 }
 0x309   :  { %v9008_v48 = vrot.slane %v2556_v31, %v8094_v50  ;;  %v9011_v37 = vrot.slane %v2556_v31, %v8443_v39  ;;  %v9014_v46 = vrot.slane %v2557_v11, %v8094_v50  ;;  %v9017_v27 = vrot.slane %v2557_v11, %v8443_v39 }
 0x30a   :  { %11427 = vst [vmem:[#allocation133_spill] sm:$0xff] %v9002_v23  ;;  %11428 = vst [vmem:[#allocation134_spill] sm:$0xff] %v9005_v49  ;;  %v9020_v0 = vrot.slane %v2558_v47, %v8094_v50  ;;  %v3415_v19 = vsel %vm3185_vm0, %v8775_v22, %v3414_v51  ;;  %v3427_v13 = vsel %vm3181_vm14, %v8896_v7, %v3426_v33  ;;  %v11434_v51 = vmax.f32 %v8310_v2, 0.0 }
 0x30b   :  { %11429 = vst [vmem:[#allocation135_spill] sm:$0xff] %v9008_v48  ;;  %11430 = vst [vmem:[#allocation136_spill] sm:$0xff] %v9011_v37  ;;  %v3416_v32 = vsel %vm3187_vm1, %v8837_v26, %v3415_v19  ;;  %v1436_v20 = vsel %vm1421_vm9, %v8913_v29, %v8855_v9  ;;  %v1582_v31 = vsel %vm1566_vm10, %v8922_v43, %v8879_v4  ;;  %v11435_v29 = vmax.f32 %v8288_v54, 0.0 }
 0x30c   :  { %11431 = vst [vmem:[#allocation137_spill] sm:$0xff] %v9014_v46  ;;  %11432 = vst [vmem:[#allocation138_spill] sm:$0xff] %v9017_v27  ;;  %v3428_v11 = vsel %vm3183_vm15, %v8905_v44, %v3427_v13  ;;  %v1619_v38 = vmax.f32 %v8322_v41, %v1436_v20  ;;  %v1622_v15 = vmax.f32 %v11434_v51, %v1582_v31  ;;  %v1396_v41 = vpop.permute.xlu1 %1395 }
 0x30d   :  { %11433 = vst [vmem:[#allocation139_spill] sm:$0xff] %v9020_v0  ;;  %v1581_v33 = vsel %vm1566_vm10, %v8855_v9, %v8937_v14  ;;  %v3429_v19 = vsel %vm3185_vm0, %v8911_v58, %v3428_v11  ;;  %v1437_v4 = vsel %vm1421_vm9, %v1386_v62, %v8922_v43  ;;  %v1583_v13 = vsel %vm1566_vm10, %v1392_v21, %v8942_v10  ;;  %v9056_v11 = vpop.permute.xlu0 %1397 }
 0x30e   :  { %v1620_v34 = vmax.f32 %v11435_v29, %v1581_v33  ;;  %v3430_v2 = vsel %vm3187_vm1, %v8951_v60, %v3429_v19  ;;  %v1621_v20 = vmax.f32 %v8307_v28, %v1437_v4  ;;  %v11436_v9 = vmax.f32 %v8336_v16, 0.0 }
 0x30f   :  { %v1438_v31 = vsel %vm1421_vm9, %v1390_v5, %v1392_v21  ;;  %v6843_v54 = vpack.i.bf16 %v3430_v2, %v3416_v32  ;;  %v9060_v10 = vrot.slane %v2558_v47, %v8443_v39  ;;  %v1439_v19 = vsel %vm1421_vm9, %v1394_v55, %v1396_v41  ;;  %v11438_v47 = vld [vmem:[#allocation28_spill] sm:$0xff] }
 0x310   :  { %v1624_v14 = vmax.f32 %v11436_v9, %v1583_v13  ;;  %v1939_v51 = vcombine.low %v1619_v38, %v1620_v34  ;;  %v1940_v33 = vcombine.high %v1619_v38, %v1620_v34  ;;  %v1623_v43 = vmax.f32 %v8333_v35, %v1438_v31  ;;  %v1400_v7 = vpop.permute.xlu1 %1399 }
 0x311   :  { %11437 = vst [vmem:[#allocation140_spill] sm:$0xff] %v9060_v10  ;;  %v1957_v62 = vcombine.low %v1621_v20, %v1622_v15  ;;  %v1958_v29 = vcombine.high %v1621_v20, %v1622_v15  ;;  %6844 = vrot.lane.b32.xlu1 %v6843_v54, %s7406_s28  ;;  %v1584_v5 = vsel %vm1566_vm10, %v1396_v41, %v1529_v56  ;;  %v1531_v54 = vpop.permute.xlu0 %1530 }
 0x312   :  { %v1947_v16 = vrot.slane %v1939_v51, %v8409_v59  ;;  %v1954_v28 = vrot.slane %v1940_v33, %v8409_v59  ;;  %v1975_v21 = vcombine.low %v1623_v43, %v1624_v14  ;;  %v1976_v32 = vcombine.high %v1623_v43, %v1624_v14  ;;  %v11440_v33 = vld [vmem:[#allocation29_spill] sm:$0xff] }
 0x313   :  { %v1965_v34 = vrot.slane %v1957_v62, %v8409_v59  ;;  %v1972_v35 = vrot.slane %v1958_v29, %v8409_v59  ;;  %v9070_v38 = vmax.f32 %v11438_v47, %v1439_v19  ;;  %v11441_v62 = vmax.f32 %v11440_v33, 0.0 }
 0x314   :  { %v1955_v15 = vcombine.high %v1947_v16, %v1947_v16  ;;  %v9072_v4 = vcombine.high %v1954_v28, %v1954_v28  ;;  %v6134_v55 = vrot.slane %v1947_v16, 9  ;;  %v6136_v13 = vrot.slane %v1954_v28, 9 }
 0x315   :  { %v1973_v2 = vcombine.high %v1965_v34, %v1965_v34  ;;  %v1974_v20 = vcombine.high %v1972_v35, %v1972_v35  ;;  %v6138_v9 = vrot.slane %v1965_v34, 9  ;;  %v6140_v31 = vrot.slane %v1972_v35, 9 }
 0x316   :  { %11439 = vst [vmem:[#allocation28_spill] sm:$0xff] %v9072_v4  ;;  %v6135_v51 = vrot.slane %v1955_v15, 9  ;;  %v2559_v41 = vmax.f32 %v1947_v16, %v6134_v55  ;;  %v1626_v14 = vmax.f32 %v11441_v62, %v1584_v5  ;;  %v9079_v60 = vmax.f32 %v1954_v28, %v6136_v13 }
 0x317   :  { %v6139_v43 = vrot.slane %v1973_v2, 9  ;;  %v6141_v29 = vrot.slane %v1974_v20, 9  ;;  %v2563_v19 = vmax.f32 %v1965_v34, %v6138_v9  ;;  %v2565_v47 = vmax.f32 %v1972_v35, %v6140_v31 }
 0x318   :  { %v9077_v25 = vmax.f32 %v1955_v15, %v6135_v51  ;;  %11442 = vst [vmem:[#allocation29_spill] sm:$0xff] %v9079_v60  ;;  %v9082_v58 = vrot.slane %v2559_v41, %v8094_v50  ;;  %v1983_v44 = vrot.slane %v1975_v21, %v8409_v59  ;;  %v1990_v28 = vrot.slane %v1976_v32, %v8409_v59 }
 0x319   :  { %v2564_v52 = vmax.f32 %v1973_v2, %v6139_v43  ;;  %v2566_v56 = vmax.f32 %v1974_v20, %v6141_v29  ;;  %v2986_v16 = vrot.slane %v2563_v19, %v8094_v50  ;;  %v2990_v5 = vrot.slane %v2563_v19, %v8443_v39  ;;  %v1402_v20 = vpop.permute.xlu0 %1401 }
 0x31a   :  { %11443 = vst [vmem:[#allocation141_spill] sm:$0xff] %v9082_v58  ;;  %v9088_v55 = vrot.slane %v2565_v47, %v8094_v50  ;;  %v3006_v34 = vrot.slane %v2565_v47, %v8443_v39  ;;  %v1991_v35 = vcombine.high %v1983_v44, %v1983_v44  ;;  %v1992_v9 = vcombine.high %v1990_v28, %v1990_v28  ;;  %v1404_v47 = vpop.permute.xlu1 %1403 }
 0x31b   :  { %v2994_v15 = vrot.slane %v2564_v52, %v8094_v50  ;;  %v2998_v13 = vrot.slane %v2564_v52, %v8443_v39  ;;  %v9095_v21 = vrot.slane %v2566_v56, %v8094_v50  ;;  %v9098_v2 = vrot.slane %v2566_v56, %v8443_v39 }
 0x31c   :  { %11444 = vst [vmem:[#allocation142_spill] sm:$0xff] %v9088_v55  ;;  %v6142_v31 = vrot.slane %v1983_v44, 9  ;;  %v6143_v51 = vrot.slane %v1991_v35, 9  ;;  %v6144_v33 = vrot.slane %v1990_v28, 9  ;;  %v9101_v62 = vrot.slane %v2559_v41, %v8443_v39 }
 0x31d   :  { %11445 = vst [vmem:[#allocation143_spill] sm:$0xff] %v9095_v21  ;;  %11446 = vst [vmem:[#allocation144_spill] sm:$0xff] %v9098_v2  ;;  %v9104_v32 = vsel %vm3175_vm11, %v2994_v15, %v2986_v16  ;;  %v3259_v43 = vsel %vm3175_vm11, %v2998_v13, %v2990_v5  ;;  %v3452_v52 = vsel %vm3175_vm11, %v9088_v55, %v2994_v15  ;;  %v6145_v41 = vrot.slane %v1992_v9, 9 }
 0x31e   :  { %11447 = vst [vmem:[#allocation145_spill] sm:$0xff] %v9101_v62  ;;  %11448 = vst [vmem:[#allocation146_spill] sm:$0xff] %v9104_v32  ;;  %v9110_v29 = vsel %vm3177_vm12, %v3006_v34, %v3259_v43  ;;  %v9113_v56 = vsel %vm3175_vm11, %v3006_v34, %v2998_v13  ;;  %v9118_v19 = vsel %vm3175_vm11, %v9095_v21, %v9088_v55 }
 0x31f   :  { %11449 = vst [vmem:[#allocation147_spill] sm:$0xff] %v9110_v29  ;;  %11450 = vst [vmem:[#allocation148_spill] sm:$0xff] %v9113_v56  ;;  %v2567_v16 = vmax.f32 %v1983_v44, %v6142_v31  ;;  %v2568_v32 = vmax.f32 %v1991_v35, %v6143_v51  ;;  %v2569_v4 = vmax.f32 %v1990_v28, %v6144_v33  ;;  %v1533_v35 = vpop.permute.xlu0 %1532 }
 0x320   :  { %11451 = vst [vmem:[#allocation149_spill] sm:$0xff] %v9118_v19  ;;  %v1993_v5 = vcombine.low %v9070_v38, %v1626_v14  ;;  %v9123_v15 = vsel %vm3175_vm11, %v9098_v2, %v3006_v34  ;;  %v2570_v43 = vmax.f32 %v1992_v9, %v6145_v41  ;;  %v1994_v13 = vcombine.high %v9070_v38, %v1626_v14 }
 0x321   :  { %11452 = vst [vmem:[#allocation150_spill] sm:$0xff] %v9123_v15  ;;  %v1585_v29 = vsel %vm1566_vm10, %v1400_v7, %v1531_v54  ;;  %v9128_v60 = vrot.slane %v2567_v16, %v8094_v50  ;;  %v9131_v55 = vrot.slane %v2567_v16, %v8443_v39  ;;  %v9134_v44 = vrot.slane %v2568_v32, %v8094_v50  ;;  %v9159_v15 = vpop.permute.xlu1 %1407 }
 0x322   :  { %v1440_v28 = vsel %vm1421_vm9, %v9056_v11, %v1400_v7  ;;  %v9139_v34 = vrot.slane %v2568_v32, %v8443_v39  ;;  %v9142_v38 = vrot.slane %v2569_v4, %v8094_v50  ;;  %v9145_v54 = vrot.slane %v2569_v4, %v8443_v39  ;;  %v11461_v11 = vld [vmem:[#allocation30_spill] sm:$0xff]  ;;  %v11463_v32 = vld [vmem:[#allocation31_spill] sm:$0xff] }
 0x323   :  { %11453 = vst [vmem:[#allocation151_spill] sm:$0xff] %v9128_v60  ;;  %11454 = vst [vmem:[#allocation152_spill] sm:$0xff] %v9131_v55  ;;  %v9148_v14 = vrot.slane %v2570_v43, %v8094_v50  ;;  %v9151_v9 = vrot.slane %v2570_v43, %v8443_v39  ;;  %v2001_v31 = vrot.slane %v1993_v5, %v8409_v59  ;;  %v11462_v51 = vmax.f32 %v11461_v11, 0.0 }
 0x324   :  { %11455 = vst [vmem:[#allocation153_spill] sm:$0xff] %v9134_v44  ;;  %11456 = vst [vmem:[#allocation154_spill] sm:$0xff] %v9139_v34  ;;  %v2008_v7 = vrot.slane %v1994_v13, %v8409_v59  ;;  %v1627_v41 = vmax.f32 %v11463_v32, %v1440_v28  ;;  %v1441_v16 = vsel %vm1421_vm9, %v1402_v20, %v1404_v47  ;;  %v11466_v28 = vld [vmem:[#allocation32_spill] sm:$0xff] }
 0x325   :  { %11457 = vst [vmem:[#allocation155_spill] sm:$0xff] %v9142_v38  ;;  %11458 = vst [vmem:[#allocation156_spill] sm:$0xff] %v9145_v54  ;;  %v1628_v33 = vmax.f32 %v11462_v51, %v1585_v29  ;;  %v1586_v4 = vsel %vm1566_vm10, %v1404_v47, %v1533_v35  ;;  %v3439_v43 = vsel %vm3177_vm12, %v8971_v36, %v8982_v53  ;;  %v6146_v5 = vrot.slane %v2001_v31, 9  ;;  %v11465_v29 = vld [vmem:[#allocation34_spill] sm:$0xff] }
 0x326   :  { %11459 = vst [vmem:[#allocation157_spill] sm:$0xff] %v9148_v14  ;;  %11460 = vst [vmem:[#allocation158_spill] sm:$0xff] %v9151_v9  ;;  %v2009_v19 = vcombine.high %v2001_v31, %v2001_v31  ;;  %v9165_v9 = vcombine.high %v2008_v7, %v2008_v7  ;;  %v6148_v13 = vrot.slane %v2008_v7, 9  ;;  %v1629_v51 = vmax.f32 %v11465_v29, %v1441_v16  ;;  %v1537_v29 = vpop.permute.xlu1 %1536 }
 0x327   :  { %v2011_v54 = vcombine.low %v1627_v41, %v1628_v33  ;;  %v2012_v11 = vcombine.high %v1627_v41, %v1628_v33  ;;  %v11467_v32 = vmax.f32 %v11466_v28, 0.0  ;;  %v2571_v47 = vmax.f32 %v2001_v31, %v6146_v5 }
 0x328   :  { %11464 = vst [vmem:[#allocation30_spill] sm:$0xff] %v9165_v9  ;;  %v6147_v34 = vrot.slane %v2009_v19, 9  ;;  %v3453_v35 = vsel %vm3177_vm12, %v9095_v21, %v3452_v52  ;;  %v9177_v33 = vmax.f32 %v2008_v7, %v6148_v13  ;;  %v3440_v16 = vsel %vm3179_vm13, %v9002_v23, %v3439_v43 }
 0x329   :  { %v1630_v20 = vmax.f32 %v11467_v32, %v1586_v4  ;;  %v2019_v53 = vrot.slane %v2011_v54, %v8409_v59  ;;  %v2026_v36 = vrot.slane %v2012_v11, %v8409_v59  ;;  %v9180_v41 = vrot.slane %v2571_v47, %v8094_v50 }
 0x32a   :  { %v9175_v56 = vmax.f32 %v2009_v19, %v6147_v34  ;;  %11469 = vst [vmem:[#allocation34_spill] sm:$0xff] %v9177_v33  ;;  %v9185_v54 = vrot.slane %v2571_v47, %v8443_v39  ;;  %v3441_v34 = vsel %vm3181_vm14, %v9008_v48, %v3440_v16  ;;  %v3454_v17 = vsel %vm3179_vm13, %v9128_v60, %v3453_v35  ;;  %v11493_v60 = vld [vmem:[#allocation35_spill] sm:$0xff] }
 0x32b   :  { %v2029_v62 = vcombine.low %v1629_v51, %v1630_v20  ;;  %v2030_v2 = vcombine.high %v1629_v51, %v1630_v20  ;;  %11470 = vst [vmem:[#allocation32_spill] sm:$0xff] %v9180_v41  ;;  %v2027_v31 = vcombine.high %v2019_v53, %v2019_v53  ;;  %v2028_v4 = vcombine.high %v2026_v36, %v2026_v36 }
 0x32c   :  { %11468 = vst [vmem:[#allocation31_spill] sm:$0xff] %v9175_v56  ;;  %v6150_v5 = vrot.slane %v2019_v53, 9  ;;  %v6152_v52 = vrot.slane %v2026_v36, 9  ;;  %11471 = vst [vmem:[#allocation159_spill] sm:$0xff] %v9185_v54 }
 0x32d   :  { %v2037_v11 = vrot.slane %v2029_v62, %v8409_v59  ;;  %v2044_v19 = vrot.slane %v2030_v2, %v8409_v59  ;;  %v6151_v7 = vrot.slane %v2027_v31, 9  ;;  %v6153_v13 = vrot.slane %v2028_v4, 9 }
 0x32e   :  { %v2575_v51 = vmax.f32 %v2019_v53, %v6150_v5  ;;  %v2577_v28 = vmax.f32 %v2026_v36, %v6152_v52  ;;  %v1412_v52 = vpop.permute.xlu1 %1411 }
 0x32f   :  { %v2045_v43 = vcombine.high %v2037_v11, %v2037_v11  ;;  %v2046_v32 = vcombine.high %v2044_v19, %v2044_v19  ;;  %v6154_v20 = vrot.slane %v2037_v11, 9  ;;  %v6156_v55 = vrot.slane %v2044_v19, 9 }
 0x330   :  { %v2576_v9 = vmax.f32 %v2027_v31, %v6151_v7  ;;  %v2578_v21 = vmax.f32 %v2028_v4, %v6153_v13  ;;  %v3050_v47 = vrot.slane %v2575_v51, %v8094_v50  ;;  %v3054_v33 = vrot.slane %v2575_v51, %v8443_v39  ;;  %v1406_v4 = vpop.permute.xlu0 %1405 }
 0x331   :  { %v9194_v62 = vrot.slane %v2577_v28, %v8094_v50  ;;  %v3070_v2 = vrot.slane %v2577_v28, %v8443_v39  ;;  %v6155_v16 = vrot.slane %v2045_v43, 9  ;;  %v6157_v56 = vrot.slane %v2046_v32, 9 }
 0x332   :  { %v3058_v53 = vrot.slane %v2576_v9, %v8094_v50  ;;  %v3062_v36 = vrot.slane %v2576_v9, %v8443_v39  ;;  %v9200_v5 = vrot.slane %v2578_v21, %v8094_v50  ;;  %v9203_v31 = vrot.slane %v2578_v21, %v8443_v39 }
 0x333   :  { %11472 = vst [vmem:[#allocation160_spill] sm:$0xff] %v9194_v62  ;;  %v2579_v7 = vmax.f32 %v2037_v11, %v6154_v20  ;;  %v2580_v13 = vmax.f32 %v2045_v43, %v6155_v16  ;;  %v2581_v51 = vmax.f32 %v2044_v19, %v6156_v55  ;;  %v2582_v54 = vmax.f32 %v2046_v32, %v6157_v56 }
 0x334   :  { %11473 = vst [vmem:[#allocation161_spill] sm:$0xff] %v9200_v5  ;;  %11474 = vst [vmem:[#allocation162_spill] sm:$0xff] %v9203_v31  ;;  %v9206_v28 = vsel %vm3175_vm11, %v3058_v53, %v3050_v47  ;;  %v3273_v12 = vsel %vm3175_vm11, %v3062_v36, %v3054_v33  ;;  %v9211_v9 = vsel %vm3175_vm11, %v9194_v62, %v3058_v53 }
 0x335   :  { %11475 = vst [vmem:[#allocation163_spill] sm:$0xff] %v9206_v28  ;;  %v9216_v21 = vsel %vm3177_vm12, %v3070_v2, %v3273_v12  ;;  %v9219_v11 = vsel %vm3175_vm11, %v3070_v2, %v3062_v36  ;;  %v9224_v55 = vsel %vm3175_vm11, %v9200_v5, %v9194_v62  ;;  %v9228_v56 = vsel %vm3175_vm11, %v9203_v31, %v3070_v2  ;;  %v11507_v31 = vld [vmem:[#allocation81_spill] sm:$0xff] }
 0x336   :  { %11476 = vst [vmem:[#allocation164_spill] sm:$0xff] %v9216_v21  ;;  %11477 = vst [vmem:[#allocation165_spill] sm:$0xff] %v9219_v11  ;;  %v9231_v33 = vrot.slane %v2579_v7, %v8094_v50  ;;  %v9234_v35 = vrot.slane %v2579_v7, %v8443_v39  ;;  %v9237_v12 = vrot.slane %v2580_v13, %v8094_v50  ;;  %v1410_v7 = vpop.permute.xlu0 %1409 }
 0x337   :  { %v9240_v19 = vrot.slane %v2580_v13, %v8443_v39  ;;  %v9243_v43 = vrot.slane %v2581_v51, %v8094_v50  ;;  %v9246_v32 = vrot.slane %v2581_v51, %v8443_v39  ;;  %v9249_v20 = vrot.slane %v2582_v54, %v8094_v50  ;;  %v1539_v13 = vpop.permute.xlu1 %1538 }
 0x338   :  { %11478 = vst [vmem:[#allocation166_spill] sm:$0xff] %v9231_v33  ;;  %11479 = vst [vmem:[#allocation167_spill] sm:$0xff] %v9234_v35  ;;  %v3442_v47 = vsel %vm3183_vm15, %v9014_v46, %v3441_v34  ;;  %v9254_v2 = vrot.slane %v2582_v54, %v8443_v39  ;;  %v3455_v53 = vsel %vm3181_vm14, %v9134_v44, %v3454_v17  ;;  %v11486_v34 = vld [vmem:[#allocation36_spill] sm:$0xff]  ;;  %v11490_v44 = vld [vmem:[#allocation51_spill] sm:$0xff] }
 0x339   :  { %11480 = vst [vmem:[#allocation168_spill] sm:$0xff] %v9237_v12  ;;  %11481 = vst [vmem:[#allocation169_spill] sm:$0xff] %v9240_v19  ;;  %v3443_v16 = vsel %vm3185_vm0, %v9020_v0, %v3442_v47  ;;  %v1588_v36 = vsel %vm1566_vm10, %v1412_v52, %v1537_v29  ;;  %v3456_v62 = vsel %vm3183_vm15, %v9142_v38, %v3455_v53  ;;  %v11487_v28 = vmax.f32 %v11486_v34, 0.0  ;;  %v11489_v29 = vld [vmem:[#allocation50_spill] sm:$0xff] }
 0x33a   :  { %11482 = vst [vmem:[#allocation170_spill] sm:$0xff] %v9243_v43  ;;  %11483 = vst [vmem:[#allocation171_spill] sm:$0xff] %v9246_v32  ;;  %v3444_v51 = vsel %vm3187_vm1, %v9082_v58, %v3443_v16  ;;  %v1442_v54 = vsel %vm1421_vm9, %v1406_v4, %v9159_v15  ;;  %v3457_v47 = vsel %vm3185_vm0, %v9148_v14, %v3456_v62 }
 0x33b   :  { %11484 = vst [vmem:[#allocation172_spill] sm:$0xff] %v9249_v20  ;;  %11485 = vst [vmem:[#allocation173_spill] sm:$0xff] %v9254_v2  ;;  %v1634_v21 = vmax.f32 %v11487_v28, %v1588_v36  ;;  %v9273_v17 = vrot.slane %v8575_v18, %v8443_v39  ;;  %v3624_v16 = vsel %vm3177_vm12, %v8524_v45, %v11489_v29  ;;  %v11491_v36 = vld [vmem:[#allocation57_spill] sm:$0xff]  ;;  %v11492_v29 = vld [vmem:[#allocation58_spill] sm:$0xff] }
 0x33c   :  { %v3631_v53 = vsel %vm3177_vm12, %v8531_v3, %v11490_v44  ;;  %v3458_v4 = vsel %vm3187_vm1, %v9180_v41, %v3457_v47  ;;  %v3625_v28 = vsel %vm3179_vm13, %v8539_v6, %v3624_v16  ;;  %v1443_v18 = vsel %vm1421_vm9, %v1410_v7, %v1412_v52  ;;  %v11494_v41 = vld [vmem:[#allocation60_spill] sm:$0xff]  ;;  %v11495_v6 = vld [vmem:[#allocation53_spill] sm:$0xff]  ;;  %v11496_v52 = vld [vmem:[#allocation70_spill] sm:$0xff] }
 0x33d   :  { %11488 = vst [vmem:[#allocation36_spill] sm:$0xff] %v9273_v17  ;;  %v3632_v62 = vsel %vm3179_vm13, %v11491_v36, %v3631_v53  ;;  %v6848_v34 = vpack.i.bf16 %v3458_v4, %v3444_v51  ;;  %v3626_v14 = vsel %vm3181_vm14, %v8534_v40, %v3625_v28  ;;  %v1633_v44 = vmax.f32 %v11493_v60, %v1443_v18  ;;  %v11497_v51 = vld [vmem:[#allocation63_spill] sm:$0xff]  ;;  %v11498_v60 = vld [vmem:[#allocation64_spill] sm:$0xff]  ;;  %v1414_v18 = vpop.permute.xlu0 %1413 }
 0x33e   :  { %v3633_v38 = vsel %vm3181_vm14, %v11492_v29, %v3632_v62  ;;  %v3627_v47 = vsel %vm3183_vm15, %v8548_v24, %v3626_v14  ;;  %v3391_v53 = vsel %vm3179_vm13, %v8531_v3, %v11495_v6  ;;  %v3404_v7 = vsel %vm3177_vm12, %v11496_v52, %v8620_v63  ;;  %v11499_v24 = vld [vmem:[#allocation83_spill] sm:$0xff] }
 0x33f   :  { %v3634_v16 = vsel %vm3183_vm15, %v11494_v41, %v3633_v38  ;;  %6849 = vrot.lane.b32.xlu0 %v6848_v34, %s7406_s28  ;;  %v3628_v4 = vsel %vm3185_vm0, %v11497_v51, %v3627_v47  ;;  %v2065_v14 = vcombine.low %v1633_v44, %v1634_v21  ;;  %v2066_v62 = vcombine.high %v1633_v44, %v1634_v21  ;;  %v1416_v38 = vpop.permute.xlu1 %1415  ;;  %v11500_v34 = vld [vmem:[#allocation75_spill] sm:$0xff]  ;;  %v11501_v44 = vld [vmem:[#allocation38_spill] sm:$0xff] }
 0x340   :  { %v3635_v28 = vsel %vm3185_vm0, %v11498_v60, %v3634_v16  ;;  %v3629_v40 = vsel %vm3187_vm1, %v11499_v24, %v3628_v4  ;;  %v3392_v63 = vsel %vm3181_vm14, %v11491_v36, %v3391_v53  ;;  %v3405_v52 = vsel %vm3179_vm13, %v11500_v34, %v3404_v7  ;;  %v11502_v4 = vld [vmem:[#allocation77_spill] sm:$0xff] }
 0x341   :  { %v3636_v6 = vsel %vm3187_vm1, %v9273_v17, %v3635_v28  ;;  %v2073_v51 = vrot.slane %v2065_v14, %v8409_v59  ;;  %v2080_v16 = vrot.slane %v2066_v62, %v8409_v59  ;;  %v3393_v21 = vsel %vm3183_vm15, %v11492_v29, %v3392_v63  ;;  %v11503_v63 = vld [vmem:[#allocation79_spill] sm:$0xff] }
 0x342   :  { %v6853_v47 = vpack.i.bf16 %v3636_v6, %v3629_v40  ;;  %v9321_v3 = vmax.f32 %v11501_v44, %v1442_v54  ;;  %v3406_v28 = vsel %vm3181_vm14, %v11502_v4, %v3405_v52  ;;  %v1444_v17 = vsel %vm1421_vm9, %v1414_v18, %v1416_v38  ;;  %v11504_v44 = vld [vmem:[#allocation41_spill] sm:$0xff]  ;;  %v11505_v52 = vld [vmem:[#allocation39_spill] sm:$0xff] }
 0x343   :  { %v1589_v53 = vsel %vm1566_vm10, %v1416_v38, %v1539_v13  ;;  %v2081_v40 = vcombine.high %v2073_v51, %v2073_v51  ;;  %v2082_v7 = vcombine.high %v2080_v16, %v2080_v16  ;;  %v6162_v14 = vrot.slane %v2073_v51, 9 }
 0x344   :  { %6854 = vrot.lane.b32.xlu0 %v6853_v47, %s7407_s29  ;;  %v6164_v62 = vrot.slane %v2080_v16, 9  ;;  %v3394_v6 = vsel %vm3185_vm0, %v11494_v41, %v3393_v21  ;;  %v3407_v54 = vsel %vm3183_vm15, %v11503_v63, %v3406_v28  ;;  %v1635_v24 = vmax.f32 %v11504_v44, %v1444_v17 }
 0x345   :  { %v11506_v29 = vmax.f32 %v11505_v52, 0.0  ;;  %v6163_v36 = vrot.slane %v2081_v40, 9  ;;  %v6165_v13 = vrot.slane %v2082_v7, 9  ;;  %v2587_v38 = vmax.f32 %v2073_v51, %v6162_v14  ;;  %v1420_v52 = vpop.permute.xlu1 %1419 }
 0x346   :  { %v2589_v45 = vmax.f32 %v2080_v16, %v6164_v62  ;;  %v3395_v47 = vsel %vm3187_vm1, %v11498_v60, %v3394_v6  ;;  %v3408_v11 = vsel %vm3185_vm0, %v11507_v31, %v3407_v54  ;;  %v11509_v16 = vld [vmem:[#allocation87_spill] sm:$0xff] }
 0x347   :  { %v1636_v18 = vmax.f32 %v11506_v29, %v1589_v53  ;;  %v2588_v41 = vmax.f32 %v2081_v40, %v6163_v36  ;;  %v2590_v34 = vmax.f32 %v2082_v7, %v6165_v13  ;;  %v3114_v28 = vrot.slane %v2587_v38, %v8094_v50 }
 0x348   :  { %v3118_v17 = vrot.slane %v2587_v38, %v8443_v39  ;;  %v9342_v29 = vrot.slane %v2589_v45, %v8094_v50  ;;  %v3134_v51 = vrot.slane %v2589_v45, %v8443_v39  ;;  %v3409_v53 = vsel %vm3187_vm1, %v11509_v16, %v3408_v11 }
 0x349   :  { %v2083_v4 = vcombine.low %v1635_v24, %v1636_v18  ;;  %v2084_v21 = vcombine.high %v1635_v24, %v1636_v18  ;;  %v3122_v62 = vrot.slane %v2588_v41, %v8094_v50  ;;  %v3126_v24 = vrot.slane %v2588_v41, %v8443_v39  ;;  %v1541_v31 = vpop.permute.xlu1 %1540 }
 0x34a   :  { %11508 = vst [vmem:[#allocation50_spill] sm:$0xff] %v9342_v29  ;;  %v9351_v36 = vrot.slane %v2590_v34, %v8094_v50  ;;  %v9354_v40 = vrot.slane %v2590_v34, %v8443_v39  ;;  %v6868_v7 = vpack.i.bf16 %v3409_v53, %v3395_v47  ;;  %v9367_v41 = vrot.slane %v8832_v61, %v8094_v50  ;;  %v1418_v34 = vpop.permute.xlu0 %1417 }
 0x34b   :  { %v2091_v14 = vrot.slane %v2083_v4, %v8409_v59  ;;  %v2098_v6 = vrot.slane %v2084_v21, %v8409_v59  ;;  %v9358_v44 = vsel %vm3175_vm11, %v3122_v62, %v3114_v28  ;;  %v3287_v11 = vsel %vm3175_vm11, %v3126_v24, %v3118_v17 }
 0x34c   :  { %11510 = vst [vmem:[#allocation51_spill] sm:$0xff] %v9351_v36  ;;  %11511 = vst [vmem:[#allocation35_spill] sm:$0xff] %v9354_v40  ;;  %v9363_v4 = vsel %vm3175_vm11, %v9342_v29, %v3122_v62  ;;  %v9370_v18 = vsel %vm3177_vm12, %v3134_v51, %v3287_v11  ;;  %v9373_v13 = vsel %vm3175_vm11, %v3134_v51, %v3126_v24  ;;  %6869 = vrot.lane.b32.xlu0 %v6868_v7, %s7406_s28  ;;  %v11517_v11 = vld [vmem:[#allocation95_spill] sm:$0xff] }
 0x34d   :  { %v2099_v54 = vcombine.high %v2091_v14, %v2091_v14  ;;  %v6166_v45 = vrot.slane %v2091_v14, 9  ;;  %11512 = vst [vmem:[#allocation53_spill] sm:$0xff] %v9358_v44  ;;  %11513 = vst [vmem:[#allocation38_spill] sm:$0xff] %v9367_v41  ;;  %v9378_v38 = vsel %vm3175_vm11, %v9351_v36, %v9342_v29  ;;  %v2100_v47 = vcombine.high %v2098_v6, %v2098_v6 }
 0x34e   :  { %11514 = vst [vmem:[#allocation79_spill] sm:$0xff] %v9370_v18  ;;  %11515 = vst [vmem:[#allocation41_spill] sm:$0xff] %v9378_v38  ;;  %v9383_v21 = vsel %vm3175_vm11, %v9354_v40, %v3134_v51  ;;  %v6168_v17 = vrot.slane %v2098_v6, 9  ;;  %v3652_v24 = vsel %vm3177_vm12, %v8757_v1, %v8741_v8  ;;  %v3659_v29 = vsel %vm3177_vm12, %v11517_v11, %v8754_v30  ;;  %v11521_v8 = vld [vmem:[#allocation96_spill] sm:$0xff]  ;;  %v11522_v1 = vld [vmem:[#allocation97_spill] sm:$0xff] }
 0x34f   :  { %11516 = vst [vmem:[#allocation39_spill] sm:$0xff] %v9383_v21  ;;  %v6167_v28 = vrot.slane %v2099_v54, 9  ;;  %v2591_v53 = vmax.f32 %v2091_v14, %v6166_v45  ;;  %v6169_v62 = vrot.slane %v2100_v47, 9  ;;  %v1445_v44 = vsel %vm1421_vm9, %v1418_v34, %v1420_v52 }
 0x350   :  { %v2593_v18 = vmax.f32 %v2098_v6, %v6168_v17  ;;  %v9397_v51 = vrot.slane %v8832_v61, %v8443_v39  ;;  %v3653_v21 = vsel %vm3179_vm13, %v11521_v8, %v3652_v24  ;;  %v3660_v30 = vsel %vm3179_vm13, %v11522_v1, %v3659_v29  ;;  %v11526_v61 = vld [vmem:[#allocation43_spill] sm:$0xff]  ;;  %v11531_v8 = vld [vmem:[#allocation101_spill] sm:$0xff] }
 0x351   :  { %v2592_v7 = vmax.f32 %v2099_v54, %v6167_v28  ;;  %v9393_v38 = vrot.slane %v2591_v53, %v8094_v50  ;;  %v2594_v14 = vmax.f32 %v2100_v47, %v6169_v62  ;;  %v9400_v45 = vrot.slane %v2591_v53, %v8443_v39  ;;  %v11529_v53 = vld [vmem:[#allocation98_spill] sm:$0xff]  ;;  %v11530_v62 = vld [vmem:[#allocation99_spill] sm:$0xff] }
 0x352   :  { %11519 = vst [vmem:[#allocation175_spill] sm:$0xff] %v9397_v51  ;;  %v9413_v34 = vrot.slane %v2593_v18, %v8094_v50  ;;  %v1637_v47 = vmax.f32 %v11526_v61, %v1445_v44  ;;  %v9417_v28 = vrot.slane %v2593_v18, %v8443_v39  ;;  %v3654_v29 = vsel %vm3181_vm14, %v11529_v53, %v3653_v21  ;;  %v11533_v44 = vld [vmem:[#allocation90_spill] sm:$0xff]  ;;  %v11536_v53 = vld [vmem:[#allocation108_spill] sm:$0xff] }
 0x353   :  { %11518 = vst [vmem:[#allocation174_spill] sm:$0xff] %v9393_v38  ;;  %11520 = vst [vmem:[#allocation176_spill] sm:$0xff] %v9400_v45  ;;  %v9407_v54 = vrot.slane %v2592_v7, %v8094_v50  ;;  %v9410_v6 = vrot.slane %v2592_v7, %v8443_v39  ;;  %v9420_v17 = vrot.slane %v2594_v14, %v8094_v50  ;;  %v11534_v61 = vld [vmem:[#allocation110_spill] sm:$0xff]  ;;  %v1535_v45 = vpop.permute.xlu0 %1534  ;;  %vm4697_vm9 = vcmask 654336  }
 0x354   :  { %11525 = vst [vmem:[#allocation179_spill] sm:$0xff] %v9413_v34  ;;  %11527 = vst [vmem:[#allocation43_spill] sm:$0xff] %v9417_v28  ;;  %v3661_v24 = vsel %vm3181_vm14, %v11530_v62, %v3660_v30  ;;  %v3655_v7 = vsel %vm3183_vm15, %v8775_v22, %v3654_v29  ;;  %v11535_v28 = vld [vmem:[#allocation107_spill] sm:$0xff] }
 0x355   :  { %11523 = vst [vmem:[#allocation177_spill] sm:$0xff] %v9407_v54  ;;  %11524 = vst [vmem:[#allocation178_spill] sm:$0xff] %v9410_v6  ;;  %v3662_v60 = vsel %vm3183_vm15, %v11531_v8, %v3661_v24  ;;  %v11532_v6 = vld [vmem:[#allocation92_spill] sm:$0xff]  ;;  %v3432_v16 = vsel %vm3177_vm12, %v11535_v28, %v11534_v61  ;;  %v3656_v21 = vsel %vm3185_vm0, %v8837_v26, %v3655_v7  ;;  %v11537_v22 = vld [vmem:[#allocation115_spill] sm:$0xff] }
 0x356   :  { %11528 = vst [vmem:[#allocation180_spill] sm:$0xff] %v9420_v17  ;;  %v3418_v18 = vsel %vm3177_vm12, %v11533_v44, %v11532_v6  ;;  %v3663_v30 = vsel %vm3185_vm0, %v11536_v53, %v3662_v60  ;;  %v3433_v24 = vsel %vm3179_vm13, %v11537_v22, %v3432_v16  ;;  %v3657_v6 = vsel %vm3187_vm1, %v9367_v41, %v3656_v21  ;;  %v11538_v7 = vld [vmem:[#allocation117_spill] sm:$0xff]  ;;  %v11539_v26 = vld [vmem:[#allocation119_spill] sm:$0xff] }
 0x357   :  { %v3419_v29 = vsel %vm3179_vm13, %v11517_v11, %v3418_v18  ;;  %v3664_v61 = vsel %vm3187_vm1, %v9397_v51, %v3663_v30  ;;  %v3434_v44 = vsel %vm3181_vm14, %v11538_v7, %v3433_v24  ;;  %v1587_v11 = vsel %vm1566_vm10, %v9159_v15, %v1535_v45  ;;  %v11540_v30 = vld [vmem:[#allocation121_spill] sm:$0xff]  ;;  %v11544_v15 = vld [vmem:[#allocation126_spill] sm:$0xff] }
 0x358   :  { %v3420_v28 = vsel %vm3181_vm14, %v11522_v1, %v3419_v29  ;;  %v6878_v60 = vpack.i.bf16 %v3664_v61, %v3657_v6  ;;  %v3435_v16 = vsel %vm3183_vm15, %v11539_v26, %v3434_v44  ;;  %v11541_v29 = vld [vmem:[#allocation33_spill] sm:$0xff]  ;;  %v1590_v24 = vsel %vm1566_vm10, %v1420_v52, %v1541_v31  ;;  %v11545_v44 = vld [vmem:[#allocation40_spill] sm:$0xff] }
 0x359   :  { %v3421_v18 = vsel %vm3183_vm15, %v11530_v62, %v3420_v28  ;;  %v3436_v51 = vsel %vm3185_vm0, %v11540_v30, %v3435_v16  ;;  %v11542_v41 = vmax.f32 %v11541_v29, 0.0  ;;  %v9466_v6 = vrot.slane %v2594_v14, %v8443_v39 }
 0x35a   :  { %v3422_v21 = vsel %vm3185_vm0, %v11531_v8, %v3421_v18  ;;  %6879 = vrot.lane.b32.xlu0 %v6878_v60, %s7407_s29  ;;  %v3437_v45 = vsel %vm3187_vm1, %v11544_v15, %v3436_v51  ;;  %v11546_v61 = vmax.f32 %v11545_v44, 0.0  ;;  %v9479_v31 = vrot.slane %v9077_v25, %v8094_v50 }
 0x35b   :  { %v1632_v1 = vmax.f32 %v11542_v41, %v1587_v11  ;;  %11543 = vst [vmem:[#allocation99_spill] sm:$0xff] %v9466_v6  ;;  %v3423_v28 = vsel %vm3187_vm1, %v11536_v53, %v3422_v21  ;;  %v3680_v14 = vsel %vm3177_vm12, %v9002_v23, %v8995_v57  ;;  %v3687_v51 = vsel %vm3177_vm12, %v9005_v49, %v8999_v42 }
 0x35c   :  { %v1638_v18 = vmax.f32 %v11546_v61, %v1590_v24  ;;  %v6888_v16 = vpack.i.bf16 %v3437_v45, %v3423_v28  ;;  %11547 = vst [vmem:[#allocation101_spill] sm:$0xff] %v9479_v31  ;;  %v9498_v24 = vrot.slane %v9077_v25, %v8443_v39  ;;  %vm7412_vm10 = vmmov 0  }
 0x35d   :  { %v2047_v29 = vcombine.low %v9321_v3, %v1632_v1  ;;  %v2048_v41 = vcombine.high %v9321_v3, %v1632_v1  ;;  %v3681_v3 = vsel %vm3179_vm13, %v9008_v48, %v3680_v14  ;;  %v3688_v1 = vsel %vm3179_vm13, %v9011_v37, %v3687_v51 }
 0x35e   :  { %v2101_v52 = vcombine.low %v1637_v47, %v1638_v18  ;;  %v2102_v11 = vcombine.high %v1637_v47, %v1638_v18  ;;  %6889 = vrot.lane.b32.xlu0 %v6888_v16, %s7406_s28  ;;  %11548 = vst [vmem:[#allocation92_spill] sm:$0xff] %v9498_v24  ;;  %v3682_v42 = vsel %vm3181_vm14, %v9014_v46, %v3681_v3 }
 0x35f   :  { %v2055_v60 = vrot.slane %v2047_v29, %v8409_v59  ;;  %v2062_v21 = vrot.slane %v2048_v41, %v8409_v59  ;;  %v3689_v16 = vsel %vm3181_vm14, %v9017_v27, %v3688_v1  ;;  %v3683_v1 = vsel %vm3183_vm15, %v9020_v0, %v3682_v42  ;;  %v11559_v42 = vld [vmem:[#allocation129_spill] sm:$0xff] }
 0x360   :  { %v2109_v47 = vrot.slane %v2101_v52, %v8409_v59  ;;  %v2116_v57 = vrot.slane %v2102_v11, %v8409_v59 }
 0x361   :  { %v2063_v28 = vcombine.high %v2055_v60, %v2055_v60  ;;  %v9502_v45 = vcombine.high %v2062_v21, %v2062_v21  ;;  %v6158_v44 = vrot.slane %v2055_v60, 9  ;;  %v6160_v61 = vrot.slane %v2062_v21, 9 }
 0x362   :  { %v2117_v18 = vcombine.high %v2109_v47, %v2109_v47  ;;  %v6170_v29 = vrot.slane %v2109_v47, 9  ;;  %v6172_v41 = vrot.slane %v2116_v57, 9  ;;  %v9507_v25 = vcombine.high %v2116_v57, %v2116_v57 }
 0x363   :  { %11549 = vst [vmem:[#allocation110_spill] sm:$0xff] %v9502_v45  ;;  %v6159_v52 = vrot.slane %v2063_v28, 9  ;;  %v2583_v14 = vmax.f32 %v2055_v60, %v6158_v44  ;;  %v9509_v51 = vmax.f32 %v2062_v21, %v6160_v61  ;;  %v3690_v44 = vsel %vm3183_vm15, %v9060_v10, %v3689_v16  ;;  %v11558_v61 = vld [vmem:[#allocation132_spill] sm:$0xff]  ;;  %v11597_v45 = vld [vmem:[#allocation55_spill] sm:$0xff] }
 0x364   :  { %11550 = vst [vmem:[#allocation115_spill] sm:$0xff] %v9507_v25  ;;  %v6171_v3 = vrot.slane %v2117_v18, 9  ;;  %v2595_v59 = vmax.f32 %v2109_v47, %v6170_v29  ;;  %v9511_v46 = vmax.f32 %v2116_v57, %v6172_v41  ;;  %v3684_v47 = vsel %vm3185_vm0, %v9082_v58, %v3683_v1  ;;  %v7041_v57 = vld [vmem:[#allocation8 + $0xc0] sm:$0xff]   ;;  %v11560_v29 = vld [vmem:[#allocation148_spill] sm:$0xff] }
 0x365   :  { %11551 = vst [vmem:[#allocation117_spill] sm:$0xff] %v9509_v51  ;;  %v2584_v48 = vmax.f32 %v2063_v28, %v6159_v52  ;;  %v9514_v23 = vrot.slane %v2583_v14, %v8094_v50  ;;  %v9517_v53 = vrot.slane %v2583_v14, %v8443_v39  ;;  %v3685_v28 = vsel %vm3187_vm1, %v9479_v31, %v3684_v47  ;;  %v11561_v41 = vld [vmem:[#allocation144_spill] sm:$0xff]  ;;  %v11564_v25 = vld [vmem:[#allocation154_spill] sm:$0xff] }
 0x366   :  { %11552 = vst [vmem:[#allocation119_spill] sm:$0xff] %v9511_v46  ;;  %v9521_v11 = vmax.f32 %v2117_v18, %v6171_v3  ;;  %v9524_v60 = vrot.slane %v2595_v59, %v8094_v50  ;;  %v9527_v21 = vrot.slane %v2595_v59, %v8443_v39  ;;  %v3446_v18 = vsel %vm3177_vm12, %v11559_v42, %v11558_v61  ;;  %v11562_v59 = vld [vmem:[#allocation145_spill] sm:$0xff]  ;;  %v11563_v1 = vld [vmem:[#allocation152_spill] sm:$0xff] }
 0x367   :  { %11553 = vst [vmem:[#allocation121_spill] sm:$0xff] %v9514_v23  ;;  %11554 = vst [vmem:[#allocation33_spill] sm:$0xff] %v9517_v53  ;;  %v3460_v52 = vsel %vm3177_vm12, %v11561_v41, %v11560_v29  ;;  %v3691_v14 = vsel %vm3185_vm0, %v11562_v59, %v3690_v44  ;;  %v3447_v3 = vsel %vm3179_vm13, %v9005_v49, %v3446_v18  ;;  %6380 = vmatprep.subr.bf16.mxu1 %v7041_v57  ;;  %v11565_v51 = vld [vmem:[#allocation156_spill] sm:$0xff] }
 0x368   :  { %11555 = vst [vmem:[#allocation126_spill] sm:$0xff] %v9521_v11  ;;  %11556 = vst [vmem:[#allocation40_spill] sm:$0xff] %v9524_v60  ;;  %v3461_v47 = vsel %vm3179_vm13, %v11563_v1, %v3460_v52  ;;  %v3467_v16 = vsel %vm3177_vm12, %v9200_v5, %v9211_v9  ;;  %v3692_v61 = vsel %vm3187_vm1, %v9498_v24, %v3691_v14  ;;  %v11606_v58 = vld [vmem:[#allocation60_spill] sm:$0xff] }
 0x369   :  { %11557 = vst [vmem:[#allocation181_spill] sm:$0xff] %v9527_v21  ;;  %v3448_v29 = vsel %vm3181_vm14, %v9011_v37, %v3447_v3  ;;  %v3462_v44 = vsel %vm3181_vm14, %v11564_v25, %v3461_v47  ;;  %v3468_v18 = vsel %vm3179_vm13, %v9231_v33, %v3467_v16  ;;  %v6898_v46 = vpack.i.bf16 %v3692_v61, %v3685_v28  ;;  %v11566_v3 = vld [vmem:[#allocation158_spill] sm:$0xff]  ;;  %v11567_v61 = vld [vmem:[#allocation159_spill] sm:$0xff] }
 0x36a   :  { %v3449_v52 = vsel %vm3183_vm15, %v9017_v27, %v3448_v29  ;;  %v3463_v9 = vsel %vm3183_vm15, %v11565_v51, %v3462_v44  ;;  %v3469_v57 = vsel %vm3181_vm14, %v9237_v12, %v3468_v18  ;;  %v3481_v28 = vsel %vm3177_vm12, %v9351_v36, %v9363_v4  ;;  %v11618_v27 = vld [vmem:[#allocation48_spill] sm:$0xff] }
 0x36b   :  { %v3450_v14 = vsel %vm3185_vm0, %v9060_v10, %v3449_v52  ;;  %v3464_v5 = vsel %vm3185_vm0, %v11566_v3, %v3463_v9  ;;  %v3470_v47 = vsel %vm3183_vm15, %v9243_v43, %v3469_v57  ;;  %6899 = vrot.lane.b32.xlu0 %v6898_v46, %s7407_s29  ;;  %v3482_v18 = vsel %vm3179_vm13, %v9393_v38, %v3481_v28  ;;  %v11617_v10 = vld [vmem:[#allocation118_spill] sm:$0xff] }
 0x36c   :  { %v3451_v16 = vsel %vm3187_vm1, %v11562_v59, %v3450_v14  ;;  %v3465_v29 = vsel %vm3187_vm1, %v11567_v61, %v3464_v5  ;;  %v3471_v44 = vsel %vm3185_vm0, %v9249_v20, %v3470_v47  ;;  %v3483_v4 = vsel %vm3181_vm14, %v9407_v54, %v3482_v18  ;;  %v11619_v61 = vld [vmem:[#allocation120_spill] sm:$0xff] }
 0x36d   :  { %v6908_v52 = vpack.i.bf16 %v3465_v29, %v3451_v16  ;;  %v3472_v9 = vsel %vm3187_vm1, %v9514_v23, %v3471_v44  ;;  %v9587_v46 = vrot.slane %v2584_v48, %v8094_v50  ;;  %v3484_v57 = vsel %vm3183_vm15, %v9413_v34, %v3483_v4  ;;  %v11570_v44 = vld [vmem:[#allocation82_spill] sm:$0xff] }
 0x36e   :  { %v9592_v5 = vrot.slane %v2584_v48, %v8443_v39  ;;  %v3708_v14 = vsel %vm3177_vm12, %v9231_v33, %v9224_v55  ;;  %v3715_v47 = vsel %vm3177_vm12, %v9234_v35, %v9228_v56  ;;  %v3485_v28 = vsel %vm3185_vm0, %v9420_v17, %v3484_v57  ;;  %v11572_v57 = vld [vmem:[#allocation72_spill] sm:$0xff]  ;;  %v11580_v33 = vld [vmem:[#allocation165_spill] sm:$0xff] }
 0x36f   :  { %11568 = vst [vmem:[#allocation132_spill] sm:$0xff] %v9587_v46  ;;  %v3709_v16 = vsel %vm3179_vm13, %v9237_v12, %v3708_v14  ;;  %v3716_v29 = vsel %vm3179_vm13, %v9240_v19, %v3715_v47  ;;  %v11571_v48 = vrot.slane %v11570_v44, 9  ;;  %6909 = vrot.lane.b32.xlu0 %v6908_v52, %s7406_s28  ;;  %v3486_v55 = vsel %vm3187_vm1, %v9524_v60, %v3485_v28  ;;  %v11573_v14 = vld [vmem:[#allocation74_spill] sm:$0xff] }
 0x370   :  { %11569 = vst [vmem:[#allocation148_spill] sm:$0xff] %v9592_v5  ;;  %v3710_v56 = vsel %vm3181_vm14, %v9243_v43, %v3709_v16  ;;  %v3717_v4 = vsel %vm3181_vm14, %v9246_v32, %v3716_v29  ;;  %v3638_v36 = vsel %vm3177_vm12, %v11573_v14, %v11572_v57  ;;  %v6858_v47 = vpack.i.bf16 %v3486_v55, %v3472_v9  ;;  %v11576_v57 = vld [vmem:[#allocation73_spill] sm:$0xff]  ;;  %v11581_v60 = vld [vmem:[#allocation162_spill] sm:$0xff] }
 0x371   :  { %v2524_v18 = vmax.f32 %v11570_v44, %v11571_v48  ;;  %v3711_v12 = vsel %vm3183_vm15, %v9249_v20, %v3710_v56  ;;  %v3718_v52 = vsel %vm3183_vm15, %v9254_v2, %v3717_v4  ;;  %v11574_v48 = vld [vmem:[#allocation76_spill] sm:$0xff]  ;;  %v11575_v4 = vld [vmem:[#allocation78_spill] sm:$0xff] }
 0x372   :  { %v3712_v28 = vsel %vm3185_vm0, %v9514_v23, %v3711_v12  ;;  %v3719_v16 = vsel %vm3185_vm0, %v9517_v53, %v3718_v52  ;;  %v3639_v9 = vsel %vm3179_vm13, %v11574_v48, %v3638_v36  ;;  %6859 = vrot.lane.b32.xlu1 %v6858_v47, %s7406_s28  ;;  %v11577_v23 = vld [vmem:[#allocation75_spill] sm:$0xff]  ;;  %v11578_v20 = vld [vmem:[#allocation80_spill] sm:$0xff]  ;;  %v11579_v36 = vld [vmem:[#allocation77_spill] sm:$0xff] }
 0x373   :  { %v9624_v44 = vrot.slane %v2524_v18, %v8094_v50  ;;  %v9631_v29 = vrot.slane %v2524_v18, %v8443_v39  ;;  %v3713_v55 = vsel %vm3187_vm1, %v9587_v46, %v3712_v28  ;;  %v3720_v56 = vsel %vm3187_vm1, %v9592_v5, %v3719_v16  ;;  %v9652_v46 = vpop.permute.xlu0 %6839  ;;  %v11583_v16 = vld [vmem:[#allocation86_spill] sm:$0xff] }
 0x374   :  { %v3640_v12 = vsel %vm3181_vm14, %v11575_v4, %v3639_v9  ;;  %v3645_v52 = vsel %vm3177_vm12, %v11577_v23, %v11576_v57  ;;  %v6918_v18 = vpack.i.bf16 %v3720_v56, %v3713_v55  ;;  %v3474_v28 = vsel %vm3177_vm12, %v11581_v60, %v11580_v33  ;;  %11582 = vst [vmem:[#allocation82_spill] sm:$0xff] %v9652_v46  ;;  %v11586_v60 = vld [vmem:[#allocation87_spill] sm:$0xff] }
 0x375   :  { %v3641_v43 = vsel %vm3183_vm15, %v11578_v20, %v3640_v12  ;;  %v3646_v47 = vsel %vm3179_vm13, %v11579_v36, %v3645_v52  ;;  %v3475_v55 = vsel %vm3179_vm13, %v9234_v35, %v3474_v28  ;;  %v3488_v56 = vsel %vm3177_vm12, %v9354_v40, %v9373_v13  ;;  %v11584_v12 = vld [vmem:[#allocation81_spill] sm:$0xff]  ;;  %v11585_v52 = vld [vmem:[#allocation176_spill] sm:$0xff]  ;;  %v11587_v40 = vld [vmem:[#allocation178_spill] sm:$0xff] }
 0x376   :  { %v3642_v9 = vsel %vm3185_vm0, %v11583_v16, %v3641_v43  ;;  %v3647_v5 = vsel %vm3181_vm14, %v11503_v63, %v3646_v47  ;;  %6919 = vrot.lane.b32.xlu0 %v6918_v18, %s7407_s29  ;;  %v3476_v43 = vsel %vm3181_vm14, %v9240_v19, %v3475_v55  ;;  %v3489_v47 = vsel %vm3179_vm13, %v11585_v52, %v3488_v56  ;;  %v11588_v19 = vld [vmem:[#allocation43_spill] sm:$0xff]  ;;  %v11593_v35 = vld [vmem:[#allocation52_spill] sm:$0xff] }
 0x377   :  { %v3643_v33 = vsel %vm3187_vm1, %v9624_v44, %v3642_v9  ;;  %v3648_v57 = vsel %vm3183_vm15, %v11584_v12, %v3647_v5  ;;  %v3477_v13 = vsel %vm3183_vm15, %v9246_v32, %v3476_v43  ;;  %v3490_v18 = vsel %vm3181_vm14, %v11587_v40, %v3489_v47  ;;  %v11589_v9 = vld [vmem:[#allocation62_spill] sm:$0xff]  ;;  %v11603_v52 = vld [vmem:[#allocation63_spill] sm:$0xff] }
 0x378   :  { %v3649_v28 = vsel %vm3185_vm0, %v11586_v60, %v3648_v57  ;;  %v3478_v55 = vsel %vm3185_vm0, %v9254_v2, %v3477_v13  ;;  %v3491_v56 = vsel %vm3183_vm15, %v11588_v19, %v3490_v18  ;;  %v9692_v32 = vrot.slane %v11589_v9, %v8094_v50  ;;  %v11591_v13 = vld [vmem:[#allocation85_spill] sm:$0xff]  ;;  %v11592_v18 = vld [vmem:[#allocation46_spill] sm:$0xff] }
 0x379   :  { %v3650_v5 = vsel %vm3187_vm1, %v9631_v29, %v3649_v28  ;;  %v3479_v43 = vsel %vm3187_vm1, %v9517_v53, %v3478_v55  ;;  %v3492_v47 = vsel %vm3185_vm0, %v9466_v6, %v3491_v56  ;;  %v9698_v2 = vrot.slane %v11591_v13, %v8094_v50  ;;  %v11595_v53 = vld [vmem:[#allocation56_spill] sm:$0xff] }
 0x37a   :  { %v6863_v57 = vpack.i.bf16 %v3650_v5, %v3643_v33  ;;  %11590 = vst [vmem:[#allocation72_spill] sm:$0xff] %v9692_v32  ;;  %v3493_v28 = vsel %vm3187_vm1, %v9527_v21, %v3492_v47  ;;  %v3864_v33 = vsel %vm3175_vm11, %v11593_v35, %v11592_v18  ;;  %v11594_v5 = vld [vmem:[#allocation69_spill] sm:$0xff]  ;;  %v9713_v21 = vrot.slane %v11589_v9, %v8443_v39 }
 0x37b   :  { %v3878_v55 = vsel %vm3175_vm11, %v11573_v14, %v11594_v5  ;;  %v6923_v56 = vpack.i.bf16 %v3493_v28, %v3479_v43  ;;  %v3865_v6 = vsel %vm3177_vm12, %v11595_v53, %v3864_v33  ;;  %v11598_v43 = vld [vmem:[#allocation47_spill] sm:$0xff]  ;;  %v11599_v28 = vld [vmem:[#allocation54_spill] sm:$0xff] }
 0x37c   :  { %6864 = vrot.lane.b32.xlu1 %v6863_v57, %s7407_s29  ;;  %v3879_v47 = vsel %vm3177_vm12, %v11574_v48, %v3878_v55  ;;  %11596 = vst [vmem:[#allocation74_spill] sm:$0xff] %v9713_v21  ;;  %v3866_v19 = vsel %vm3179_vm13, %v11597_v45, %v3865_v6  ;;  %v9721_v57 = vrot.slane %v11591_v13, %v8443_v39  ;;  %v11600_v55 = vld [vmem:[#allocation59_spill] sm:$0xff]  ;;  %v11601_v6 = vld [vmem:[#allocation57_spill] sm:$0xff] }
 0x37d   :  { %v3880_v17 = vsel %vm3179_vm13, %v11575_v4, %v3879_v47  ;;  %v3871_v33 = vsel %vm3175_vm11, %v11599_v28, %v11598_v43  ;;  %6924 = vrot.lane.b32.xlu0 %v6923_v56, %s7406_s28  ;;  %v3867_v9 = vsel %vm3181_vm14, %v11600_v55, %v3866_v19  ;;  %v11602_v47 = vld [vmem:[#allocation70_spill] sm:$0xff] }
 0x37e   :  { %v3881_v40 = vsel %vm3181_vm14, %v11578_v20, %v3880_v17  ;;  %v3872_v34 = vsel %vm3177_vm12, %v11601_v6, %v3871_v33  ;;  %v3885_v13 = vsel %vm3175_vm11, %v11577_v23, %v11602_v47  ;;  %v3868_v54 = vsel %vm3183_vm15, %v11603_v52, %v3867_v9  ;;  %v11604_v56 = vld [vmem:[#allocation58_spill] sm:$0xff]  ;;  %v11605_v17 = vld [vmem:[#allocation83_spill] sm:$0xff]  ;;  %v11607_v52 = vld [vmem:[#allocation64_spill] sm:$0xff] }
 0x37f   :  { %v3882_v38 = vsel %vm3183_vm15, %v11583_v16, %v3881_v40  ;;  %v3873_v11 = vsel %vm3179_vm13, %v11604_v56, %v3872_v34  ;;  %v3886_v19 = vsel %vm3177_vm12, %v11579_v36, %v3885_v13  ;;  %v3869_v31 = vsel %vm3185_vm0, %v11605_v17, %v3868_v54 }
 0x380   :  { %v3883_v33 = vsel %vm3185_vm0, %v9624_v44, %v3882_v38  ;;  %v3874_v0 = vsel %vm3181_vm14, %v11606_v58, %v3873_v11  ;;  %v3887_v9 = vsel %vm3179_vm13, %v11503_v63, %v3886_v19  ;;  %v3870_v40 = vsel %vm3187_vm1, %v9692_v32, %v3869_v31  ;;  %v11608_v38 = vld [vmem:[#allocation36_spill] sm:$0xff]  ;;  %v11609_v19 = vld [vmem:[#allocation123_spill] sm:$0xff]  ;;  %v11616_v32 = vld [vmem:[#allocation45_spill] sm:$0xff] }
 0x381   :  { %v3884_v34 = vsel %vm3187_vm1, %v9698_v2, %v3883_v33  ;;  %v3875_v13 = vsel %vm3183_vm15, %v11607_v52, %v3874_v0  ;;  %v3888_v54 = vsel %vm3181_vm14, %v11584_v12, %v3887_v9  ;;  %v9766_v59 = vrot.slane %v11609_v19, %v8094_v50  ;;  %v11610_v9 = vld [vmem:[#allocation112_spill] sm:$0xff] }
 0x382   :  { %v6873_v17 = vpack.i.bf16 %v3884_v34, %v3870_v40  ;;  %v3876_v24 = vsel %vm3185_vm0, %v11608_v38, %v3875_v13  ;;  %v3889_v11 = vsel %vm3183_vm15, %v11586_v60, %v3888_v54  ;;  %v9774_v33 = vrot.slane %v11609_v19, %v8443_v39  ;;  %v11611_v40 = vld [vmem:[#allocation114_spill] sm:$0xff]  ;;  %v11612_v54 = vld [vmem:[#allocation116_spill] sm:$0xff] }
 0x383   :  { %v3877_v31 = vsel %vm3187_vm1, %v9713_v21, %v3876_v24  ;;  %v3890_v0 = vsel %vm3185_vm0, %v9631_v29, %v3889_v11  ;;  %v3666_v34 = vsel %vm3177_vm12, %v11611_v40, %v11610_v9  ;;  %v11613_v21 = vld [vmem:[#allocation113_spill] sm:$0xff]  ;;  %v11614_v38 = vld [vmem:[#allocation42_spill] sm:$0xff] }
 0x384   :  { %6874 = vrot.lane.b32.xlu1 %v6873_v17, %s7408_s5  ;;  %v3891_v13 = vsel %vm3187_vm1, %v9721_v57, %v3890_v0  ;;  %v3667_v24 = vsel %vm3179_vm13, %v11612_v54, %v3666_v34  ;;  %v3673_v11 = vsel %vm3177_vm12, %v11537_v22, %v11613_v21  ;;  %v11615_v19 = vrot.slane %v11614_v38, %v8443_v39 }
 0x385   :  { %v6938_v9 = vpack.i.bf16 %v3891_v13, %v3877_v31  ;;  %v3668_v17 = vsel %vm3181_vm14, %v11617_v10, %v3667_v24  ;;  %v3674_v0 = vsel %vm3179_vm13, %v11538_v7, %v3673_v11  ;;  %v11622_v13 = vld [vmem:[#allocation68_spill] sm:$0xff]  ;;  %v11623_v11 = vld [vmem:[#allocation125_spill] sm:$0xff] }
 0x386   :  { %v3189_v52 = vsel %vm3175_vm11, %v11616_v32, %v11615_v19  ;;  %v3669_v41 = vsel %vm3183_vm15, %v11619_v61, %v3668_v17  ;;  %v3675_v21 = vsel %vm3181_vm14, %v11539_v26, %v3674_v0  ;;  %v11620_v32 = vld [vmem:[#allocation65_spill] sm:$0xff]  ;;  %v11624_v17 = vld [vmem:[#allocation67_spill] sm:$0xff] }
 0x387   :  { %v3190_v34 = vsel %vm3177_vm12, %v11618_v27, %v3189_v52  ;;  %v11621_v31 = vrot.slane %v11620_v32, %v8443_v39  ;;  %6939 = vrot.lane.b32.xlu0 %v6938_v9, %s7408_s5  ;;  %v3670_v27 = vsel %vm3185_vm0, %v11623_v11, %v3669_v41  ;;  %v3676_v52 = vsel %vm3183_vm15, %v11540_v30, %v3675_v21 }
 0x388   :  { %v3191_v38 = vsel %vm3179_vm13, %v11598_v43, %v3190_v34  ;;  %v3671_v0 = vsel %vm3187_vm1, %v9766_v59, %v3670_v27  ;;  %v3677_v34 = vsel %vm3185_vm0, %v11544_v15, %v3676_v52  ;;  %v11625_v27 = vld [vmem:[#allocation84_spill] sm:$0xff] }
 0x389   :  { %v3203_v24 = vsel %vm3175_vm11, %v11622_v13, %v11621_v31  ;;  %v3192_v19 = vsel %vm3181_vm14, %v11599_v28, %v3191_v38  ;;  %v3678_v21 = vsel %vm3187_vm1, %v9774_v33, %v3677_v34  ;;  %v6101_v52 = vrot.slane %v11625_v27, 9 }
 0x38a   :  { %v3204_v43 = vsel %vm3177_vm12, %v11624_v17, %v3203_v24  ;;  %v3193_v9 = vsel %vm3183_vm15, %v11601_v6, %v3192_v19  ;;  %v6883_v31 = vpack.i.bf16 %v3678_v21, %v3671_v0  ;;  %v11626_v19 = vunpack.i.l.bf16 %v9652_v46 }
 0x38b   :  { %v3205_v41 = vsel %vm3179_vm13, %v11602_v47, %v3204_v43  ;;  %v3194_v38 = vsel %vm3185_vm0, %v11604_v56, %v3193_v9  ;;  %v4119_v43 = vsel %vm3175_vm11, %v11574_v48, %v11573_v14  ;;  %v4126_v0 = vsel %vm3175_vm11, %v11579_v36, %v11577_v23 }
 0x38c   :  { %v3206_v32 = vsel %vm3181_vm14, %v11577_v23, %v3205_v41  ;;  %v3195_v13 = vsel %vm3187_vm1, %v11606_v58, %v3194_v38  ;;  %6884 = vrot.lane.b32.xlu1 %v6883_v31, %s7407_s29  ;;  %v2526_v9 = vmax.f32 %v11625_v27, %v6101_v52  ;;  %v4120_v41 = vsel %vm3177_vm12, %v11575_v4, %v4119_v43  ;;  %v11628_v31 = vld [vmem:[#allocation49_spill] sm:$0xff] }
 0x38d   :  { %v3207_v24 = vsel %vm3183_vm15, %v11579_v36, %v3206_v32  ;;  %v4274_v17 = vsel %vm3526_vm4, %v3195_v13, %v11626_v19  ;;  %v4127_v21 = vsel %vm3177_vm12, %v11503_v63, %v4126_v0  ;;  %v11627_v38 = vunpack.i.h.bf16 %v9652_v46  ;;  %v11629_v13 = vld [vmem:[#allocation44_spill] sm:$0xff]  ;;  %v11630_v0 = vld [vmem:[#allocation71_spill] sm:$0xff] }
 0x38e   :  { %v3208_v47 = vsel %vm3185_vm0, %v11503_v63, %v3207_v24  ;;  %v4121_v23 = vsel %vm3179_vm13, %v11578_v20, %v4120_v41  ;;  %v4128_v36 = vsel %vm3179_vm13, %v11584_v12, %v4127_v21  ;;  %v3178_v24 = vsel %vm3177_vm12, %v11629_v13, %v11628_v31 }
 0x38f   :  { %v3209_v34 = vsel %vm3187_vm1, %v11584_v12, %v3208_v47  ;;  %v4052_v52 = vrot.slane %v2526_v9, %v8094_v50  ;;  %v4056_v47 = vrot.slane %v2526_v9, %v8443_v39  ;;  %v4122_v63 = vsel %vm3181_vm14, %v11583_v16, %v4121_v23 }
 0x390   :  { %v4275_v32 = vsel %vm3526_vm4, %v3209_v34, %v11627_v38  ;;  %v4123_v19 = vsel %vm3183_vm15, %v9624_v44, %v4122_v63  ;;  %v4129_v43 = vsel %vm3181_vm14, %v11586_v60, %v4128_v36  ;;  %v3180_v12 = vsel %vm3179_vm13, %v11592_v18, %v3178_v24  ;;  %v11631_v34 = vld [vmem:[#allocation66_spill] sm:$0xff] }
 0x391   :  { %v4307_v27 = vpack.c.bf16 %v4275_v32, %v4274_v17  ;;  %v3197_v17 = vsel %vm3177_vm12, %v11631_v34, %v11630_v0  ;;  %v4124_v9 = vsel %vm3185_vm0, %v9698_v2, %v4123_v19  ;;  %v4130_v16 = vsel %vm3183_vm15, %v9631_v29, %v4129_v43  ;;  %v11638_v19 = vld [vmem:[#allocation102_spill] sm:$0xff]  ;;  %v11640_v34 = vld [vmem:[#allocation96_spill] sm:$0xff] }
 0x392   :  { %v3182_v44 = vsel %vm3181_vm14, %v11593_v35, %v3180_v12  ;;  %v3198_v60 = vsel %vm3179_vm13, %v11594_v5, %v3197_v17  ;;  %v4125_v41 = vsel %vm3187_vm1, %v4052_v52, %v4124_v9  ;;  %v4131_v18 = vsel %vm3185_vm0, %v9721_v57, %v4130_v16  ;;  %v11632_v5 = vld [vmem:[#allocation103_spill] sm:$0xff]  ;;  %v11636_v52 = vld [vmem:[#allocation94_spill] sm:$0xff] }
 0x393   :  { %4742 = vmatprep.mubr.bf16.mxu1 %v4307_v27  ;;  %v3184_v21 = vsel %vm3183_vm15, %v11595_v53, %v3182_v44  ;;  %v3199_v2 = vsel %vm3181_vm14, %v11573_v14, %v3198_v60  ;;  %v4132_v38 = vsel %vm3187_vm1, %v4056_v47, %v4131_v18  ;;  %v3819_v23 = vrot.slane %v11632_v5, %v8094_v50  ;;  %v11633_v14 = vld [vmem:[#allocation124_spill] sm:$0xff]  ;;  %v11635_v27 = vld [vmem:[#allocation89_spill] sm:$0xff]  ;;  %v11637_v47 = vld [vmem:[#allocation106_spill] sm:$0xff] }
 0x394   :  { %v3186_v29 = vsel %vm3185_vm0, %v11597_v45, %v3184_v21  ;;  %v3200_v32 = vsel %vm3183_vm15, %v11574_v48, %v3199_v2  ;;  %v6948_v36 = vpack.i.bf16 %v4132_v38, %v4125_v41  ;;  %v9907_v13 = vrot.slane %v11633_v14, %v8094_v50  ;;  %v7043_v16 = vld [vmem:[#allocation8 + $0xc8] sm:$0xff]   ;;  %v11642_v2 = vld [vmem:[#allocation100_spill] sm:$0xff] }
 0x395   :  { %v3188_v57 = vsel %vm3187_vm1, %v11600_v55, %v3186_v29  ;;  %v3201_v31 = vsel %vm3185_vm0, %v11575_v4, %v3200_v32  ;;  %v3892_v48 = vsel %vm3175_vm11, %v11636_v52, %v11635_v27  ;;  %v3906_v63 = vsel %vm3175_vm11, %v11611_v40, %v11637_v47  ;;  %v7042_v4 = vld [vmem:[#allocation8 + $0x80] sm:$0xff]   ;;  %v11661_v47 = vld [vmem:[#allocation159_spill] sm:$0xff] }
 0x396   :  { %11634 = vst [vmem:[#allocation76_spill] sm:$0xff] %v9907_v13  ;;  %v3202_v24 = vsel %vm3187_vm1, %v11578_v20, %v3201_v31  ;;  %v11639_v43 = vrot.slane %v11638_v19, 9  ;;  %6949 = vrot.lane.b32.xlu0 %v6948_v36, %s7389_s18  ;;  %v3893_v17 = vsel %vm3177_vm12, %v11640_v34, %v3892_v48  ;;  %v3907_v20 = vsel %vm3177_vm12, %v11612_v54, %v3906_v63  ;;  %v11641_v44 = vld [vmem:[#allocation98_spill] sm:$0xff]  ;;  %v11644_v36 = vld [vmem:[#allocation97_spill] sm:$0xff]  ;;  %v11645_v31 = vld [vmem:[#allocation104_spill] sm:$0xff] }
 0x397   :  { %v4306_v0 = vpack.c.bf16 %v3202_v24, %v3188_v57  ;;  %v9927_v9 = vrot.slane %v11632_v5, %v8443_v39  ;;  %v3894_v60 = vsel %vm3179_vm13, %v11641_v44, %v3893_v17  ;;  %v3908_v41 = vsel %vm3179_vm13, %v11617_v10, %v3907_v20  ;;  %v11643_v5 = vld [vmem:[#allocation95_spill] sm:$0xff] }
 0x398   :  { %v2538_v12 = vmax.f32 %v11638_v19, %v11639_v43  ;;  %v3895_v38 = vsel %vm3181_vm14, %v11642_v2, %v3894_v60  ;;  %v3909_v29 = vsel %vm3181_vm14, %v11619_v61, %v3908_v41  ;;  %v4133_v32 = vsel %vm3175_vm11, %v11640_v34, %v11636_v52  ;;  %v7044_v43 = vld [vmem:[#allocation8 + $0x88] sm:$0xff]  }
 0x399   :  { %4743 = vmatmul.mubr.bf16.vlgmr.msra.gmra.mrb[0].mxu1 %v4306_v0  ;;  %v4140_v57 = vsel %vm3175_vm11, %v11644_v36, %v11643_v5  ;;  %v3896_v24 = vsel %vm3183_vm15, %v11645_v31, %v3895_v38  ;;  %v3910_v48 = vsel %vm3183_vm15, %v11623_v11, %v3909_v29  ;;  %v4134_v63 = vsel %vm3177_vm12, %v11641_v44, %v4133_v32  ;;  %v11647_v29 = vld [vmem:[#allocation108_spill] sm:$0xff] }
 0x39a   :  { %v4060_v18 = vrot.slane %v2538_v12, %v8094_v50  ;;  %v4064_v21 = vrot.slane %v2538_v12, %v8443_v39  ;;  %v4141_v19 = vsel %vm3177_vm12, %v11530_v62, %v4140_v57  ;;  %6381 = vmatpush3.bf16.msra.mxu1 %v7042_v4  ;;  %v11646_v12 = vld [vmem:[#allocation38_spill] sm:$0xff]  ;;  %v3911_v17 = vsel %vm3185_vm0, %v9766_v59, %v3910_v48  ;;  %v7045_v57 = vld [vmem:[#allocation8 + $0xd0] sm:$0xff]  }
 0x39b   :  { %v3897_v0 = vsel %vm3185_vm0, %v11646_v12, %v3896_v24  ;;  %v4135_v20 = vsel %vm3179_vm13, %v11642_v2, %v4134_v63  ;;  %v4142_v60 = vsel %vm3179_vm13, %v11531_v8, %v4141_v19  ;;  %6382 = vmatprep.subr.bf16.mxu1 %v7043_v16  ;;  %v3912_v38 = vsel %vm3187_vm1, %v9907_v13, %v3911_v17  ;;  %v11648_v63 = vld [vmem:[#allocation175_spill] sm:$0xff]  ;;  %v11667_v13 = vld [vmem:[#allocation128_spill] sm:$0xff] }
 0x39c   :  { %v3898_v41 = vsel %vm3187_vm1, %v3819_v23, %v3897_v0  ;;  %v4136_v4 = vsel %vm3181_vm14, %v11645_v31, %v4135_v20  ;;  %v4143_v32 = vsel %vm3181_vm14, %v11647_v29, %v4142_v60  ;;  %v11649_v16 = vld [vmem:[#allocation31_spill] sm:$0xff]  ;;  %v11650_v60 = vld [vmem:[#allocation149_spill] sm:$0xff] }
 0x39d   :  { %v6893_v24 = vpack.i.bf16 %v3912_v38, %v3898_v41  ;;  %v4137_v48 = vsel %vm3183_vm15, %v11646_v12, %v4136_v4  ;;  %v4144_v19 = vsel %vm3183_vm15, %v11648_v63, %v4143_v32  ;;  %v9974_v0 = vrot.slane %v11649_v16, %v8094_v50  ;;  %v11651_v41 = vld [vmem:[#allocation151_spill] sm:$0xff]  ;;  %v11652_v32 = vld [vmem:[#allocation153_spill] sm:$0xff] }
 0x39e   :  { %v4138_v17 = vsel %vm3185_vm0, %v3819_v23, %v4137_v48  ;;  %v4145_v31 = vsel %vm3185_vm0, %v9927_v9, %v4144_v19  ;;  %v9981_v20 = vrot.slane %v11649_v16, %v8443_v39  ;;  %v3694_v12 = vsel %vm3177_vm12, %v11651_v41, %v11650_v60  ;;  %6383 = vmatpush3.bf16.msra.mxu1 %v7044_v43  ;;  %v11653_v48 = vld [vmem:[#allocation150_spill] sm:$0xff]  ;;  %v7046_v16 = vld [vmem:[#allocation8 + $0x90] sm:$0xff]  }
 0x39f   :  { %6894 = vrot.lane.b32.xlu1 %v6893_v24, %s7408_s5  ;;  %v4139_v38 = vsel %vm3187_vm1, %v4060_v18, %v4138_v17  ;;  %v4146_v4 = vsel %vm3187_vm1, %v4064_v21, %v4145_v31  ;;  %v3695_v23 = vsel %vm3179_vm13, %v11652_v32, %v3694_v12  ;;  %v3701_v19 = vsel %vm3177_vm12, %v11563_v1, %v11653_v48  ;;  %v11654_v2 = vld [vmem:[#allocation155_spill] sm:$0xff]  ;;  %v11655_v24 = vld [vmem:[#allocation29_spill] sm:$0xff]  ;;  %v11658_v12 = vld [vmem:[#allocation34_spill] sm:$0xff] }
 0x3a0   :  { %v6958_v46 = vpack.i.bf16 %v4146_v4, %v4139_v38  ;;  %v3696_v44 = vsel %vm3181_vm14, %v11654_v2, %v3695_v23  ;;  %v3702_v43 = vsel %vm3179_vm13, %v11564_v25, %v3701_v19  ;;  %v10000_v18 = vrot.slane %v11655_v24, %v8443_v39  ;;  %6384 = vmatprep.subr.bf16.mxu1 %v7045_v57  ;;  %v7047_v21 = vld [vmem:[#allocation8 + $0xd8] sm:$0xff]  }
 0x3a1   :  { %v11657_v17 = vld [vmem:[#allocation157_spill] sm:$0xff]  ;;  %v3703_v60 = vsel %vm3181_vm14, %v11565_v51, %v3702_v43  ;;  %v10008_v38 = vrot.slane %v11658_v12, %v8443_v39  ;;  %v3927_v4 = vsel %vm3175_vm11, %v9005_v49, %v11559_v42  ;;  %v11659_v23 = vld [vmem:[#allocation32_spill] sm:$0xff] }
 0x3a2   :  { %11656 = vst [vmem:[#allocation78_spill] sm:$0xff] %v10000_v18  ;;  %v3697_v31 = vsel %vm3183_vm15, %v11657_v17, %v3696_v44  ;;  %6959 = vrot.lane.b32.xlu0 %v6958_v46, %s7389_s18  ;;  %v3704_v48 = vsel %vm3183_vm15, %v11566_v3, %v3703_v60  ;;  %v3928_v44 = vsel %vm3177_vm12, %v9011_v37, %v3927_v4  ;;  %v11660_v19 = vld [vmem:[#allocation144_spill] sm:$0xff]  ;;  %v11662_v46 = vld [vmem:[#allocation138_spill] sm:$0xff] }
 0x3a3   :  { %v3698_v57 = vsel %vm3185_vm0, %v11659_v23, %v3697_v31  ;;  %v3941_v43 = vsel %vm3175_vm11, %v11563_v1, %v11660_v19  ;;  %v3705_v42 = vsel %vm3185_vm0, %v11661_v47, %v3704_v48  ;;  %v3929_v52 = vsel %vm3179_vm13, %v11662_v46, %v3928_v44  ;;  %6385 = vmatpush3.bf16.msra.mxu1 %v7046_v16  ;;  %v11663_v4 = vld [vmem:[#allocation140_spill] sm:$0xff]  ;;  %v11665_v46 = vld [vmem:[#allocation145_spill] sm:$0xff]  ;;  %v11672_v37 = vld [vmem:[#allocation30_spill] sm:$0xff] }
 0x3a4   :  { %v3699_v34 = vsel %vm3187_vm1, %v9974_v0, %v3698_v57  ;;  %v3942_v31 = vsel %vm3177_vm12, %v11564_v25, %v3941_v43  ;;  %v3706_v60 = vsel %vm3187_vm1, %v9981_v20, %v3705_v42  ;;  %v3930_v27 = vsel %vm3181_vm14, %v11663_v4, %v3929_v52  ;;  %6386 = vmatprep.subr.bf16.mxu1 %v7047_v21  ;;  %v7048_v48 = vld [vmem:[#allocation8 + $0x98] sm:$0xff]   ;;  %v7049_v52 = vld [vmem:[#allocation8 + $0xe0] sm:$0xff]  }
 0x3a5   :  { %v3943_v19 = vsel %vm3179_vm13, %v11565_v51, %v3942_v31  ;;  %v10039_v57 = vrot.slane %v11655_v24, %v8094_v50  ;;  %v6903_v44 = vpack.i.bf16 %v3706_v60, %v3699_v34  ;;  %v3931_v43 = vsel %vm3183_vm15, %v11665_v46, %v3930_v27  ;;  %v11666_v4 = vld [vmem:[#allocation92_spill] sm:$0xff]  ;;  %v11668_v21 = vld [vmem:[#allocation133_spill] sm:$0xff]  ;;  %v11669_v60 = vld [vmem:[#allocation143_spill] sm:$0xff] }
 0x3a6   :  { %v3944_v16 = vsel %vm3181_vm14, %v11566_v3, %v3943_v19  ;;  %v3843_v42 = vrot.slane %v11658_v12, %v8094_v50  ;;  %v3932_v31 = vsel %vm3185_vm0, %v11666_v4, %v3931_v43  ;;  %v3920_v34 = vsel %vm3175_vm11, %v11668_v21, %v11667_v13  ;;  %v11670_v43 = vld [vmem:[#allocation135_spill] sm:$0xff]  ;;  %v11671_v46 = vld [vmem:[#allocation137_spill] sm:$0xff] }
 0x3a7   :  { %11664 = vst [vmem:[#allocation73_spill] sm:$0xff] %v10039_v57  ;;  %v3945_v24 = vsel %vm3183_vm15, %v11661_v47, %v3944_v16  ;;  %v3934_v27 = vsel %vm3175_vm11, %v11651_v41, %v11669_v60  ;;  %6904 = vrot.lane.b32.xlu1 %v6903_v44, %s7407_s29  ;;  %v3933_v12 = vsel %vm3187_vm1, %v10000_v18, %v3932_v31  ;;  %v11673_v31 = vrot.slane %v11672_v37, 9 }
 0x3a8   :  { %v3946_v19 = vsel %vm3185_vm0, %v9981_v20, %v3945_v24  ;;  %v3921_v4 = vsel %vm3177_vm12, %v11670_v43, %v3920_v34  ;;  %v3935_v16 = vsel %vm3177_vm12, %v11652_v32, %v3934_v27  ;;  %6387 = vmatpush3.bf16.msra.mxu1 %v7048_v48  ;;  %v7050_v24 = vld [vmem:[#allocation8 + $0xa0] sm:$0xff]   ;;  %v11674_v34 = vld [vmem:[#allocation139_spill] sm:$0xff] }
 0x3a9   :  { %v3947_v13 = vsel %vm3187_vm1, %v10008_v38, %v3946_v19  ;;  %v3922_v60 = vsel %vm3179_vm13, %v11671_v46, %v3921_v4  ;;  %v3936_v44 = vsel %vm3179_vm13, %v11654_v2, %v3935_v16  ;;  %v2574_v18 = vmax.f32 %v11672_v37, %v11673_v31  ;;  %6388 = vmatprep.subr.bf16.mxu1 %v7049_v52  ;;  %v7051_v19 = vld [vmem:[#allocation8 + $0xe8] sm:$0xff]   ;;  %v11675_v16 = vld [vmem:[#allocation141_spill] sm:$0xff] }
 0x3aa   :  { %v6968_v49 = vpack.i.bf16 %v3947_v13, %v3933_v12  ;;  %v3923_v43 = vsel %vm3181_vm14, %v11674_v34, %v3922_v60  ;;  %v3937_v27 = vsel %vm3181_vm14, %v11657_v17, %v3936_v44  ;;  %v4175_v4 = vsel %vm3175_vm11, %v11652_v32, %v11651_v41  ;;  %v11676_v60 = vld [vmem:[#allocation101_spill] sm:$0xff]  ;;  %v11677_v32 = vld [vmem:[#allocation126_spill] sm:$0xff] }
 0x3ab   :  { %v3924_v46 = vsel %vm3183_vm15, %v11675_v16, %v3923_v43  ;;  %v3938_v37 = vsel %vm3183_vm15, %v11659_v23, %v3937_v27  ;;  %v4084_v13 = vrot.slane %v2574_v18, %v8094_v50  ;;  %v4088_v48 = vrot.slane %v2574_v18, %v8443_v39  ;;  %v7052_v27 = vld [vmem:[#allocation8 + $0xa8] sm:$0xff]  }
 0x3ac   :  { %6969 = vrot.lane.b32.xlu0 %v6968_v49, %s7408_s5  ;;  %v3925_v12 = vsel %vm3185_vm0, %v11676_v60, %v3924_v46  ;;  %v3939_v44 = vsel %vm3185_vm0, %v9974_v0, %v3938_v37  ;;  %v4176_v52 = vsel %vm3177_vm12, %v11654_v2, %v4175_v4  ;;  %v4182_v43 = vsel %vm3175_vm11, %v11564_v25, %v11563_v1  ;;  %v11685_v41 = vld [vmem:[#allocation178_spill] sm:$0xff]  ;;  %v11693_v25 = vld [vmem:[#allocation181_spill] sm:$0xff] }
 0x3ad   :  { %v3926_v31 = vsel %vm3187_vm1, %v10039_v57, %v3925_v12  ;;  %v3940_v18 = vsel %vm3187_vm1, %v3843_v42, %v3939_v44  ;;  %v4177_v49 = vsel %vm3179_vm13, %v11657_v17, %v4176_v52  ;;  %v4183_v46 = vsel %vm3177_vm12, %v11565_v51, %v4182_v43  ;;  %6389 = vmatpush3.bf16.msra.mxu1 %v7050_v24  ;;  %v7053_v44 = vld [vmem:[#allocation8 + $0xf0] sm:$0xff]   ;;  %v11702_v60 = vld [vmem:[#allocation173_spill] sm:$0xff] }
 0x3ae   :  { %v6913_v37 = vpack.i.bf16 %v3940_v18, %v3926_v31  ;;  %v4178_v4 = vsel %vm3181_vm14, %v11659_v23, %v4177_v49  ;;  %v4184_v2 = vsel %vm3179_vm13, %v11566_v3, %v4183_v46  ;;  %v10111_v12 = vrot.slane %v11677_v32, %v8094_v50  ;;  %6390 = vmatprep.subr.bf16.mxu1 %v7051_v19  ;;  %v11679_v23 = vld [vmem:[#allocation41_spill] sm:$0xff]  ;;  %v11680_v31 = vld [vmem:[#allocation174_spill] sm:$0xff] }
 0x3af   :  { %v4179_v52 = vsel %vm3183_vm15, %v9974_v0, %v4178_v4  ;;  %v4185_v24 = vsel %vm3181_vm14, %v11661_v47, %v4184_v2  ;;  %v10119_v43 = vrot.slane %v11677_v32, %v8443_v39  ;;  %v3722_v18 = vsel %vm3177_vm12, %v11680_v31, %v11679_v23  ;;  %v11681_v46 = vld [vmem:[#allocation177_spill] sm:$0xff]  ;;  %v11682_v4 = vld [vmem:[#allocation39_spill] sm:$0xff]  ;;  %v11683_v47 = vld [vmem:[#allocation176_spill] sm:$0xff] }
 0x3b0   :  { %6914 = vrot.lane.b32.xlu1 %v6913_v37, %s7408_s5  ;;  %v4180_v49 = vsel %vm3185_vm0, %v3843_v42, %v4179_v52  ;;  %v4186_v19 = vsel %vm3183_vm15, %v9981_v20, %v4185_v24  ;;  %v3723_v0 = vsel %vm3179_vm13, %v11681_v46, %v3722_v18  ;;  %v3729_v2 = vsel %vm3177_vm12, %v11683_v47, %v11682_v4  ;;  %v11684_v23 = vld [vmem:[#allocation179_spill] sm:$0xff]  ;;  %v11686_v52 = vld [vmem:[#allocation180_spill] sm:$0xff]  ;;  %v11688_v3 = vld [vmem:[#allocation110_spill] sm:$0xff] }
 0x3b1   :  { %11678 = vst [vmem:[#allocation75_spill] sm:$0xff] %v10119_v43  ;;  %v4181_v32 = vsel %vm3187_vm1, %v4084_v13, %v4180_v49  ;;  %v4187_v17 = vsel %vm3185_vm0, %v10008_v38, %v4186_v19  ;;  %v3724_v37 = vsel %vm3181_vm14, %v11684_v23, %v3723_v0  ;;  %v3730_v42 = vsel %vm3179_vm13, %v11685_v41, %v3729_v2  ;;  %v11687_v18 = vld [vmem:[#allocation43_spill] sm:$0xff]  ;;  %v11690_v0 = vld [vmem:[#allocation40_spill] sm:$0xff] }
 0x3b2   :  { %6391 = vmatpush3.bf16.msra.mxu1 %v7052_v27  ;;  %v4188_v20 = vsel %vm3187_vm1, %v4088_v48, %v4187_v17  ;;  %v3725_v24 = vsel %vm3183_vm15, %v11686_v52, %v3724_v37  ;;  %v3731_v4 = vsel %vm3181_vm14, %v11687_v18, %v3730_v42  ;;  %v11689_v13 = vrot.slane %v11688_v3, 9  ;;  %v7054_v38 = vld [vmem:[#allocation8 + $0xb0] sm:$0xff]   ;;  %v11692_v17 = vld [vmem:[#allocation117_spill] sm:$0xff] }
 0x3b3   :  { %6392 = vmatprep.subr.bf16.mxu1 %v7053_v44  ;;  %v6978_v19 = vpack.i.bf16 %v4188_v20, %v4181_v32  ;;  %v3726_v51 = vsel %vm3185_vm0, %v11690_v0, %v3725_v24  ;;  %v11691_v2 = vld [vmem:[#allocation99_spill] sm:$0xff]  ;;  %v3851_v48 = vrot.slane %v11692_v17, %v8094_v50  ;;  %v7055_v37 = vld [vmem:[#allocation8 + $0xf8] sm:$0xff]   ;;  %v11694_v24 = vld [vmem:[#allocation166_spill] sm:$0xff] }
 0x3b4   :  { %v2586_v49 = vmax.f32 %v11688_v3, %v11689_v13  ;;  %v3732_v27 = vsel %vm3183_vm15, %v11691_v2, %v3731_v4  ;;  %v3727_v42 = vsel %vm3187_vm1, %v10111_v12, %v3726_v51  ;;  %v10160_v3 = vrot.slane %v11692_v17, %v8443_v39  ;;  %v11695_v4 = vld [vmem:[#allocation168_spill] sm:$0xff]  ;;  %v11696_v13 = vld [vmem:[#allocation167_spill] sm:$0xff]  ;;  %v11697_v2 = vld [vmem:[#allocation169_spill] sm:$0xff] }
 0x3b5   :  { %v3733_v1 = vsel %vm3185_vm0, %v11693_v25, %v3732_v27  ;;  %6979 = vrot.lane.b32.xlu0 %v6978_v19, %s7389_s18  ;;  %v4189_v51 = vsel %vm3175_vm11, %v11695_v4, %v11694_v24  ;;  %v4196_v27 = vsel %vm3175_vm11, %v11697_v2, %v11696_v13  ;;  %v11698_v17 = vld [vmem:[#allocation170_spill] sm:$0xff]  ;;  %v11699_v41 = vld [vmem:[#allocation171_spill] sm:$0xff]  ;;  %v11703_v2 = vld [vmem:[#allocation161_spill] sm:$0xff] }
 0x3b6   :  { %v4092_v44 = vrot.slane %v2586_v49, %v8094_v50  ;;  %v3734_v32 = vsel %vm3187_vm1, %v10119_v43, %v3733_v1  ;;  %v4096_v20 = vrot.slane %v2586_v49, %v8443_v39  ;;  %v4190_v18 = vsel %vm3177_vm12, %v11698_v17, %v4189_v51  ;;  %v11700_v47 = vld [vmem:[#allocation119_spill] sm:$0xff]  ;;  %6393 = vmatpush3.bf16.msra.mxu1 %v7054_v38  ;;  %v7056_v49 = vld [vmem:[#allocation8 + $0xb8] sm:$0xff]  }
 0x3b7   :  { %v6928_v25 = vpack.i.bf16 %v3734_v32, %v3727_v42  ;;  %v4197_v19 = vsel %vm3177_vm12, %v11699_v41, %v4196_v27  ;;  %v10179_v1 = vrot.slane %v11700_v47, %v8094_v50  ;;  %v11701_v43 = vld [vmem:[#allocation172_spill] sm:$0xff]  ;;  %v3948_v42 = vsel %vm3175_vm11, %v11694_v24, %v11703_v2  ;;  %v11704_v32 = vld [vmem:[#allocation51_spill] sm:$0xff]  ;;  %6394 = vmatprep.subr.bf16.mxu1 %v7055_v37  ;;  %v11705_v27 = vld [vmem:[#allocation121_spill] sm:$0xff] }
 0x3b8   :  { %v4191_v57 = vsel %vm3179_vm13, %v11701_v43, %v4190_v18  ;;  %v4198_v16 = vsel %vm3179_vm13, %v11702_v60, %v4197_v19  ;;  %v3962_v51 = vsel %vm3175_vm11, %v11680_v31, %v11704_v32  ;;  %v11706_v47 = vld [vmem:[#allocation33_spill] sm:$0xff]  ;;  %v3949_v19 = vsel %vm3177_vm12, %v11695_v4, %v3948_v42  ;;  %v11707_v24 = vld [vmem:[#allocation132_spill] sm:$0xff] }
 0x3b9   :  { %6929 = vrot.lane.b32.xlu1 %v6928_v25, %s7407_s29  ;;  %v4192_v38 = vsel %vm3181_vm14, %v11705_v27, %v4191_v57  ;;  %v4199_v18 = vsel %vm3181_vm14, %v11706_v47, %v4198_v16  ;;  %v3963_v60 = vsel %vm3177_vm12, %v11681_v46, %v3962_v51  ;;  %v11708_v41 = vld [vmem:[#allocation148_spill] sm:$0xff]  ;;  %v3950_v25 = vsel %vm3179_vm13, %v11698_v17, %v3949_v19 }
 0x3ba   :  { %v4193_v2 = vsel %vm3183_vm15, %v11707_v24, %v4192_v38  ;;  %v4200_v37 = vsel %vm3183_vm15, %v11708_v41, %v4199_v18  ;;  %v3964_v57 = vsel %vm3179_vm13, %v11684_v23, %v3963_v60  ;;  %v3951_v51 = vsel %vm3181_vm14, %v11701_v43, %v3950_v25  ;;  %6395 = vmatpush3.bf16.msra.mxu1 %v7056_v49  ;;  %v11709_v43 = vld [vmem:[#allocation61_spill] sm:$0xff] }
 0x3bb   :  { %v4194_v16 = vsel %vm3185_vm0, %v3851_v48, %v4193_v2  ;;  %v4201_v42 = vsel %vm3185_vm0, %v10160_v3, %v4200_v37  ;;  %v3965_v38 = vsel %vm3181_vm14, %v11686_v52, %v3964_v57  ;;  %v3952_v19 = vsel %vm3183_vm15, %v11705_v27, %v3951_v51  ;;  %v11712_v51 = vld [vmem:[#allocation63_spill] sm:$0xff] }
 0x3bc   :  { %v4195_v18 = vsel %vm3187_vm1, %v4092_v44, %v4194_v16  ;;  %v4202_v4 = vsel %vm3187_vm1, %v4096_v20, %v4201_v42  ;;  %v3966_v60 = vsel %vm3183_vm15, %v11690_v0, %v3965_v38  ;;  %v3953_v37 = vsel %vm3185_vm0, %v11707_v24, %v3952_v19 }
 0x3bd   :  { %v6983_v2 = vpack.i.bf16 %v4202_v4, %v4195_v18  ;;  %v3967_v25 = vsel %vm3185_vm0, %v10111_v12, %v3966_v60  ;;  %v11710_v57 = vrot.slane %v11709_v43, 9  ;;  %v3954_v44 = vsel %vm3187_vm1, %v3851_v48, %v3953_v37  ;;  %v11713_v18 = vld [vmem:[#allocation107_spill] sm:$0xff]  ;;  %v11715_v60 = vld [vmem:[#allocation64_spill] sm:$0xff] }
 0x3be   :  { %v3968_v20 = vsel %vm3187_vm1, %v10179_v1, %v3967_v25  ;;  %v4105_v27 = vsel %vm3175_vm11, %v11595_v53, %v11593_v35  ;;  %v4112_v24 = vsel %vm3175_vm11, %v11601_v6, %v11599_v28  ;;  %v3831_v53 = vrot.slane %v11633_v14, %v8443_v39  ;;  %v11711_v28 = vld [vmem:[#allocation90_spill] sm:$0xff]  ;;  %v11714_v14 = vld [vmem:[#allocation83_spill] sm:$0xff] }
 0x3bf   :  { %v2514_v49 = vmax.f32 %v11709_v43, %v11710_v57  ;;  %6984 = vrot.lane.b32.xlu0 %v6983_v2, %s7389_s18  ;;  %v6933_v4 = vpack.i.bf16 %v3968_v20, %v3954_v44  ;;  %v4106_v48 = vsel %vm3177_vm12, %v11597_v45, %v4105_v27  ;;  %v4113_v35 = vsel %vm3177_vm12, %v11604_v56, %v4112_v24  ;;  %v11716_v57 = vld [vmem:[#allocation72_spill] sm:$0xff] }
 0x3c0   :  { %v4107_v42 = vsel %vm3179_vm13, %v11600_v55, %v4106_v48  ;;  %v3899_v6 = vsel %vm3175_vm11, %v11643_v5, %v11711_v28  ;;  %v4114_v45 = vsel %vm3179_vm13, %v11606_v58, %v4113_v35  ;;  %v3913_v56 = vsel %vm3175_vm11, %v11537_v22, %v11713_v18  ;;  %v10269_v58 = vpop.permute.xlu1 %6844  ;;  %v11717_v44 = vld [vmem:[#allocation36_spill] sm:$0xff]  ;;  %v11718_v48 = vld [vmem:[#allocation74_spill] sm:$0xff] }
 0x3c1   :  { %v4044_v16 = vrot.slane %v2514_v49, %v8094_v50  ;;  %v4048_v43 = vrot.slane %v2514_v49, %v8443_v39  ;;  %6934 = vrot.lane.b32.xlu1 %v6933_v4, %s7408_s5  ;;  %v4108_v38 = vsel %vm3181_vm14, %v11712_v51, %v4107_v42  ;;  %v3900_v55 = vsel %vm3177_vm12, %v11644_v36, %v3899_v6 }
 0x3c2   :  { %v4109_v19 = vsel %vm3183_vm15, %v11714_v14, %v4108_v38  ;;  %v4115_v2 = vsel %vm3181_vm14, %v11715_v60, %v4114_v45  ;;  %v3901_v37 = vsel %vm3179_vm13, %v11530_v62, %v3900_v55  ;;  %v3914_v25 = vsel %vm3177_vm12, %v11538_v7, %v3913_v56 }
 0x3c3   :  { %v4110_v49 = vsel %vm3185_vm0, %v11716_v57, %v4109_v19  ;;  %v4116_v20 = vsel %vm3183_vm15, %v11717_v44, %v4115_v2  ;;  %v3902_v27 = vsel %vm3181_vm14, %v11531_v8, %v3901_v37  ;;  %v3915_v24 = vsel %vm3179_vm13, %v11539_v26, %v3914_v25 }
 0x3c4   :  { %v4111_v4 = vsel %vm3187_vm1, %v4044_v16, %v4110_v49  ;;  %v4117_v42 = vsel %vm3185_vm0, %v11718_v48, %v4116_v20  ;;  %v3903_v35 = vsel %vm3183_vm15, %v11647_v29, %v3902_v27  ;;  %v3916_v6 = vsel %vm3181_vm14, %v11540_v30, %v3915_v24  ;;  %v11721_v49 = vld [vmem:[#allocation28_spill] sm:$0xff] }
 0x3c5   :  { %v4118_v51 = vsel %vm3187_vm1, %v4048_v43, %v4117_v42  ;;  %v3904_v38 = vsel %vm3185_vm0, %v11648_v63, %v3903_v35  ;;  %v3917_v45 = vsel %vm3183_vm15, %v11544_v15, %v3916_v6  ;;  %v6847_v55 = vunpack.i.h.bf16 %v10269_v58  ;;  %v11719_v43 = vld [vmem:[#allocation122_spill] sm:$0xff] }
 0x3c6   :  { %v6943_v16 = vpack.i.bf16 %v4118_v51, %v4111_v4  ;;  %v3905_v56 = vsel %vm3187_vm1, %v9927_v9, %v3904_v38  ;;  %v3918_v29 = vsel %vm3185_vm0, %v9774_v33, %v3917_v45  ;;  %v6846_v14 = vunpack.i.l.bf16 %v10269_v58 }
 0x3c7   :  { %v3919_v19 = vsel %vm3187_vm1, %v3831_v53, %v3918_v29  ;;  %v11720_v60 = vrot.slane %v11719_v43, 9  ;;  %v4147_v2 = vsel %vm3175_vm11, %v11612_v54, %v11611_v40  ;;  %v4154_v37 = vsel %vm3175_vm11, %v11538_v7, %v11537_v22  ;;  %v11724_v29 = vld [vmem:[#allocation134_spill] sm:$0xff] }
 0x3c8   :  { %6944 = vrot.lane.b32.xlu1 %v6943_v16, %s7389_s18  ;;  %v6953_v9 = vpack.i.bf16 %v3919_v19, %v3905_v56  ;;  %v4148_v25 = vsel %vm3177_vm12, %v11617_v10, %v4147_v2  ;;  %v4155_v57 = vsel %vm3177_vm12, %v11539_v26, %v4154_v37  ;;  %v11722_v44 = vrot.slane %v11721_v49, 9  ;;  %v11723_v16 = vld [vmem:[#allocation135_spill] sm:$0xff]  ;;  %v11725_v19 = vld [vmem:[#allocation136_spill] sm:$0xff]  ;;  %v11728_v2 = vld [vmem:[#allocation138_spill] sm:$0xff] }
 0x3c9   :  { %v2550_v63 = vmax.f32 %v11719_v43, %v11720_v60  ;;  %v4149_v4 = vsel %vm3179_vm13, %v11619_v61, %v4148_v25  ;;  %v4156_v48 = vsel %vm3179_vm13, %v11540_v30, %v4155_v57  ;;  %v4161_v56 = vsel %vm3175_vm11, %v11723_v16, %v11668_v21 }
 0x3ca   :  { %v2562_v20 = vmax.f32 %v11721_v49, %v11722_v44  ;;  %v4150_v42 = vsel %vm3181_vm14, %v11623_v11, %v4149_v4  ;;  %v4157_v35 = vsel %vm3181_vm14, %v11544_v15, %v4156_v48  ;;  %v4168_v11 = vsel %vm3175_vm11, %v11725_v19, %v11724_v29  ;;  %v11726_v15 = vld [vmem:[#allocation76_spill] sm:$0xff]  ;;  %v11731_v4 = vld [vmem:[#allocation145_spill] sm:$0xff] }
 0x3cb   :  { %v4068_v27 = vrot.slane %v2550_v63, %v8094_v50  ;;  %v4072_v24 = vrot.slane %v2550_v63, %v8443_v39  ;;  %v4151_v38 = vsel %vm3183_vm15, %v9766_v59, %v4150_v42  ;;  %v4158_v45 = vsel %vm3183_vm15, %v9774_v33, %v4157_v35  ;;  %v11727_v63 = vld [vmem:[#allocation137_spill] sm:$0xff]  ;;  %v11729_v49 = vld [vmem:[#allocation140_spill] sm:$0xff] }
 0x3cc   :  { %v4076_v6 = vrot.slane %v2562_v20, %v8094_v50  ;;  %v4080_v51 = vrot.slane %v2562_v20, %v8443_v39  ;;  %6954 = vrot.lane.b32.xlu1 %v6953_v9, %s7408_s5  ;;  %v4152_v43 = vsel %vm3185_vm0, %v11726_v15, %v4151_v38  ;;  %v4159_v60 = vsel %vm3185_vm0, %v3831_v53, %v4158_v45  ;;  %v11730_v20 = vld [vmem:[#allocation141_spill] sm:$0xff]  ;;  %v11734_v38 = vld [vmem:[#allocation92_spill] sm:$0xff] }
 0x3cd   :  { %v4162_v59 = vsel %vm3177_vm12, %v11727_v63, %v4161_v56  ;;  %v4169_v33 = vsel %vm3177_vm12, %v11728_v2, %v4168_v11  ;;  %v4153_v37 = vsel %vm3187_vm1, %v4068_v27, %v4152_v43  ;;  %v4160_v25 = vsel %vm3187_vm1, %v4072_v24, %v4159_v60  ;;  %v11732_v42 = vld [vmem:[#allocation93_spill] sm:$0xff]  ;;  %v11735_v11 = vld [vmem:[#allocation111_spill] sm:$0xff] }
 0x3ce   :  { %v4163_v57 = vsel %vm3179_vm13, %v11674_v34, %v4162_v59  ;;  %v4170_v9 = vsel %vm3179_vm13, %v11729_v49, %v4169_v33  ;;  %v6963_v44 = vpack.i.bf16 %v4160_v25, %v4153_v37  ;;  %v3219_v35 = vsel %vm3179_vm13, %v11711_v28, %v11732_v42  ;;  %v11733_v27 = vld [vmem:[#allocation101_spill] sm:$0xff]  ;;  %v11737_v59 = vld [vmem:[#allocation78_spill] sm:$0xff]  ;;  %v11743_v42 = vld [vmem:[#allocation115_spill] sm:$0xff] }
 0x3cf   :  { %v4164_v53 = vsel %vm3181_vm14, %v11730_v20, %v4163_v57  ;;  %v4171_v48 = vsel %vm3181_vm14, %v11731_v4, %v4170_v9  ;;  %v3220_v56 = vsel %vm3181_vm14, %v11643_v5, %v3219_v35  ;;  %v3233_v15 = vsel %vm3179_vm13, %v11713_v18, %v11735_v11  ;;  %v11736_v43 = vld [vmem:[#allocation73_spill] sm:$0xff]  ;;  %v11738_v20 = vld [vmem:[#allocation91_spill] sm:$0xff] }
 0x3d0   :  { %v4165_v24 = vsel %vm3183_vm15, %v11733_v27, %v4164_v53  ;;  %v4172_v45 = vsel %vm3183_vm15, %v11734_v38, %v4171_v48  ;;  %6964 = vrot.lane.b32.xlu1 %v6963_v44, %s7389_s18  ;;  %v3221_v33 = vsel %vm3183_vm15, %v11644_v36, %v3220_v56  ;;  %v3234_v37 = vsel %vm3181_vm14, %v11537_v22, %v3233_v15  ;;  %v11739_v53 = vld [vmem:[#allocation88_spill] sm:$0xff]  ;;  %v11741_v4 = vld [vmem:[#allocation109_spill] sm:$0xff] }
 0x3d1   :  { %v4166_v60 = vsel %vm3185_vm0, %v11736_v43, %v4165_v24  ;;  %v4173_v28 = vsel %vm3185_vm0, %v11737_v59, %v4172_v45  ;;  %v3222_v18 = vsel %vm3185_vm0, %v11530_v62, %v3221_v33  ;;  %v3235_v57 = vsel %vm3183_vm15, %v11538_v7, %v3234_v37  ;;  %v11742_v48 = vld [vmem:[#allocation105_spill] sm:$0xff]  ;;  %v11745_v24 = vld [vmem:[#allocation106_spill] sm:$0xff]  ;;  %v11746_v56 = vld [vmem:[#allocation96_spill] sm:$0xff] }
 0x3d2   :  { %v4167_v5 = vsel %vm3187_vm1, %v4076_v6, %v4166_v60  ;;  %v4174_v25 = vsel %vm3187_vm1, %v4080_v51, %v4173_v28  ;;  %v3223_v44 = vsel %vm3187_vm1, %v11531_v8, %v3222_v18  ;;  %v3236_v36 = vsel %vm3185_vm0, %v11539_v26, %v3235_v57  ;;  %v11740_v51 = vld [vmem:[#allocation89_spill] sm:$0xff]  ;;  %v11747_v43 = vld [vmem:[#allocation162_spill] sm:$0xff]  ;;  %v11751_v18 = vld [vmem:[#allocation176_spill] sm:$0xff] }
 0x3d3   :  { %v6973_v9 = vpack.i.bf16 %v4174_v25, %v4167_v5  ;;  %v3211_v22 = vsel %vm3177_vm12, %v11739_v53, %v11738_v20  ;;  %v3237_v6 = vsel %vm3187_vm1, %v11540_v30, %v3236_v36  ;;  %v4276_v62 = vsel %vm3526_vm4, %v3223_v44, %v6846_v14  ;;  %v11744_v30 = vld [vmem:[#allocation94_spill] sm:$0xff]  ;;  %v11749_v37 = vld [vmem:[#allocation169_spill] sm:$0xff]  ;;  %v11750_v25 = vld [vmem:[#allocation35_spill] sm:$0xff] }
 0x3d4   :  { %v3212_v7 = vsel %vm3179_vm13, %v11740_v51, %v3211_v22  ;;  %v3225_v8 = vsel %vm3177_vm12, %v11742_v48, %v11741_v4  ;;  %v6173_v26 = vrot.slane %v11743_v42, 9  ;;  %v4277_v35 = vsel %vm3526_vm4, %v3237_v6, %v6847_v55  ;;  %v11748_v59 = vld [vmem:[#allocation98_spill] sm:$0xff]  ;;  %v11754_v53 = vld [vmem:[#allocation100_spill] sm:$0xff]  ;;  %v11755_v6 = vld [vmem:[#allocation173_spill] sm:$0xff] }
 0x3d5   :  { %6974 = vrot.lane.b32.xlu1 %v6973_v9, %s7389_s18  ;;  %v3213_v27 = vsel %vm3181_vm14, %v11744_v30, %v3212_v7  ;;  %v3226_v38 = vsel %vm3179_vm13, %v11745_v24, %v3225_v8  ;;  %v4313_v45 = vpack.c.bf16 %v4277_v35, %v4276_v62  ;;  %v3955_v60 = vsel %vm3175_vm11, %v11696_v13, %v11747_v43  ;;  %v11752_v9 = vld [vmem:[#allocation171_spill] sm:$0xff]  ;;  %v11753_v36 = vld [vmem:[#allocation178_spill] sm:$0xff]  ;;  %v11759_v24 = vld [vmem:[#allocation181_spill] sm:$0xff] }
 0x3d6   :  { %v3214_v11 = vsel %vm3183_vm15, %v11746_v56, %v3213_v27  ;;  %v3227_v15 = vsel %vm3181_vm14, %v11611_v40, %v3226_v38  ;;  %v3956_v5 = vsel %vm3177_vm12, %v11749_v37, %v3955_v60  ;;  %v3969_v57 = vsel %vm3175_vm11, %v11751_v18, %v11750_v25  ;;  %v11756_v51 = vld [vmem:[#allocation43_spill] sm:$0xff] }
 0x3d7   :  { %v3215_v28 = vsel %vm3185_vm0, %v11748_v59, %v3214_v11  ;;  %v3228_v33 = vsel %vm3183_vm15, %v11612_v54, %v3227_v15  ;;  %4750 = vmatprep.mubr.bf16.mxu1 %v4313_v45  ;;  %v3957_v44 = vsel %vm3179_vm13, %v11752_v9, %v3956_v5  ;;  %v3970_v20 = vsel %vm3177_vm12, %v11753_v36, %v3969_v57  ;;  %v11757_v48 = vld [vmem:[#allocation99_spill] sm:$0xff] }
 0x3d8   :  { %v3229_v40 = vsel %vm3185_vm0, %v11617_v10, %v3228_v33  ;;  %v3216_v54 = vsel %vm3187_vm1, %v11754_v53, %v3215_v28  ;;  %v3958_v62 = vsel %vm3181_vm14, %v11755_v6, %v3957_v44  ;;  %v3971_v7 = vsel %vm3179_vm13, %v11756_v51, %v3970_v20  ;;  %v11758_v30 = vld [vmem:[#allocation119_spill] sm:$0xff] }
 0x3d9   :  { %v3230_v22 = vsel %vm3187_vm1, %v11619_v61, %v3229_v40  ;;  %v3959_v10 = vsel %vm3183_vm15, %v11706_v47, %v3958_v62  ;;  %v3972_v8 = vsel %vm3181_vm14, %v11757_v48, %v3971_v7  ;;  %v4203_v35 = vsel %vm3175_vm11, %v11681_v46, %v11680_v31  ;;  %v11760_v56 = vld [vmem:[#allocation75_spill] sm:$0xff] }
 0x3da   :  { %v4312_v4 = vpack.c.bf16 %v3230_v22, %v3216_v54  ;;  %v3863_v61 = vrot.slane %v11758_v30, %v8443_v39  ;;  %v3960_v27 = vsel %vm3185_vm0, %v11708_v41, %v3959_v10  ;;  %v3973_v38 = vsel %vm3183_vm15, %v11759_v24, %v3972_v8  ;;  %v11761_v54 = vld [vmem:[#allocation131_spill] sm:$0xff]  ;;  %v11765_v30 = vld [vmem:[#allocation152_spill] sm:$0xff] }
 0x3db   :  { %v2598_v45 = vmax.f32 %v11743_v42, %v6173_v26  ;;  %v3961_v47 = vsel %vm3187_vm1, %v10160_v3, %v3960_v27  ;;  %v3974_v11 = vsel %vm3185_vm0, %v11760_v56, %v3973_v38  ;;  %v4204_v15 = vsel %vm3177_vm12, %v11684_v23, %v4203_v35  ;;  %v10466_v26 = vpop.permute.xlu0 %6849  ;;  %v11763_v7 = vld [vmem:[#allocation147_spill] sm:$0xff]  ;;  %v11766_v38 = vld [vmem:[#allocation154_spill] sm:$0xff] }
 0x3dc   :  { %4751 = vmatmul.mubr.bf16.gmra.mrb[4].mxu1 %v4312_v4  ;;  %v4210_v60 = vsel %vm3175_vm11, %v11753_v36, %v11751_v18  ;;  %v3975_v41 = vsel %vm3187_vm1, %v3863_v61, %v3974_v11  ;;  %v4205_v59 = vsel %vm3179_vm13, %v11686_v52, %v4204_v15  ;;  %v6851_v53 = vunpack.i.l.bf16 %v10466_v26  ;;  %v11764_v4 = vld [vmem:[#allocation144_spill] sm:$0xff] }
 0x3dd   :  { %v4211_v42 = vsel %vm3177_vm12, %v11756_v51, %v4210_v60  ;;  %v6988_v3 = vpack.i.bf16 %v3975_v41, %v3961_v47  ;;  %v4206_v28 = vsel %vm3181_vm14, %v11690_v0, %v4205_v59  ;;  %v4100_v5 = vrot.slane %v2598_v45, %v8094_v50  ;;  %v11762_v50 = vld [vmem:[#allocation129_spill] sm:$0xff]  ;;  %v11768_v47 = vld [vmem:[#allocation127_spill] sm:$0xff]  ;;  %v11769_v15 = vld [vmem:[#allocation156_spill] sm:$0xff] }
 0x3de   :  { %v4212_v33 = vsel %vm3179_vm13, %v11757_v48, %v4211_v42  ;;  %v4104_v57 = vrot.slane %v2598_v45, %v8443_v39  ;;  %v4207_v40 = vsel %vm3183_vm15, %v10111_v12, %v4206_v28  ;;  %v3247_v39 = vsel %vm3179_vm13, %v11762_v50, %v11761_v54  ;;  %v11767_v45 = vld [vmem:[#allocation130_spill] sm:$0xff]  ;;  %v11770_v60 = vld [vmem:[#allocation128_spill] sm:$0xff] }
 0x3df   :  { %v4213_v44 = vsel %vm3181_vm14, %v11759_v24, %v4212_v33  ;;  %6989 = vrot.lane.b32.xlu1 %v6988_v3, %s7408_s5  ;;  %v4208_v20 = vsel %vm3185_vm0, %v10179_v1, %v4207_v40  ;;  %v3248_v62 = vsel %vm3181_vm14, %v11724_v29, %v3247_v39  ;;  %v3261_v1 = vsel %vm3179_vm13, %v11764_v4, %v11763_v7  ;;  %v11771_v59 = vld [vmem:[#allocation146_spill] sm:$0xff]  ;;  %v11776_v39 = vld [vmem:[#allocation153_spill] sm:$0xff]  ;;  %v6855_v4 = vpop.permute.xlu0 %6854 }
 0x3e0   :  { %v4214_v0 = vsel %vm3183_vm15, %v11760_v56, %v4213_v44  ;;  %v4209_v22 = vsel %vm3187_vm1, %v4100_v5, %v4208_v20  ;;  %v6852_v8 = vunpack.i.h.bf16 %v10466_v26  ;;  %v3249_v35 = vsel %vm3183_vm15, %v11725_v19, %v3248_v62  ;;  %v11772_v42 = vld [vmem:[#allocation142_spill] sm:$0xff]  ;;  %v11774_v5 = vld [vmem:[#allocation143_spill] sm:$0xff]  ;;  %v11778_v7 = vld [vmem:[#allocation157_spill] sm:$0xff] }
 0x3e1   :  { %v4215_v12 = vsel %vm3185_vm0, %v3863_v61, %v4214_v0  ;;  %v3262_v27 = vsel %vm3181_vm14, %v11765_v30, %v3261_v1  ;;  %v3250_v61 = vsel %vm3185_vm0, %v11728_v2, %v3249_v35  ;;  %v3239_v56 = vsel %vm3177_vm12, %v11768_v47, %v11767_v45  ;;  %v11773_v3 = vld [vmem:[#allocation158_spill] sm:$0xff]  ;;  %v11775_v20 = vld [vmem:[#allocation151_spill] sm:$0xff]  ;;  %v11779_v35 = vld [vmem:[#allocation164_spill] sm:$0xff] }
 0x3e2   :  { %v4216_v10 = vsel %vm3187_vm1, %v4104_v57, %v4215_v12  ;;  %v3263_v29 = vsel %vm3183_vm15, %v11766_v38, %v3262_v27  ;;  %v3251_v11 = vsel %vm3187_vm1, %v11729_v49, %v3250_v61  ;;  %v3240_v41 = vsel %vm3179_vm13, %v11770_v60, %v3239_v56  ;;  %v11781_v61 = vld [vmem:[#allocation163_spill] sm:$0xff]  ;;  %v11782_v38 = vld [vmem:[#allocation160_spill] sm:$0xff]  ;;  %v11783_v45 = vld [vmem:[#allocation53_spill] sm:$0xff] }
 0x3e3   :  { %v6993_v24 = vpack.i.bf16 %v4216_v10, %v4209_v22  ;;  %v3264_v19 = vsel %vm3185_vm0, %v11769_v15, %v3263_v29  ;;  %v3253_v2 = vsel %vm3177_vm12, %v11772_v42, %v11771_v59  ;;  %v4278_v33 = vsel %vm3526_vm4, %v3251_v11, %v6851_v53  ;;  %v11777_v22 = vld [vmem:[#allocation155_spill] sm:$0xff]  ;;  %v11784_v47 = vld [vmem:[#allocation50_spill] sm:$0xff]  ;;  %v6870_v15 = vpop.permute.xlu0 %6869  ;;  %v11785_v60 = vld [vmem:[#allocation161_spill] sm:$0xff] }
 0x3e4   :  { %v3265_v28 = vsel %vm3187_vm1, %v11773_v3, %v3264_v19  ;;  %v3241_v49 = vsel %vm3181_vm14, %v11668_v21, %v3240_v41  ;;  %v3254_v57 = vsel %vm3179_vm13, %v11774_v5, %v3253_v2  ;;  %v10543_v10 = vpop.permute.xlu1 %6859  ;;  %v3275_v30 = vsel %vm3179_vm13, %v11747_v43, %v11779_v35  ;;  %v11787_v3 = vld [vmem:[#allocation168_spill] sm:$0xff] }
 0x3e5   :  { %6994 = vrot.lane.b32.xlu1 %v6993_v24, %s7389_s18  ;;  %v4279_v40 = vsel %vm3526_vm4, %v3265_v28, %v6852_v8  ;;  %v3242_v44 = vsel %vm3183_vm15, %v11723_v16, %v3241_v49  ;;  %v3255_v0 = vsel %vm3181_vm14, %v11775_v20, %v3254_v57  ;;  %v3276_v27 = vsel %vm3181_vm14, %v11696_v13, %v3275_v30  ;;  %v11780_v24 = vld [vmem:[#allocation79_spill] sm:$0xff]  ;;  %s7411_s18 = smov 116  }
 0x3e6   :  { %v4319_v54 = vpack.c.bf16 %v4279_v40, %v4278_v33  ;;  %v3243_v50 = vsel %vm3185_vm0, %v11727_v63, %v3242_v44  ;;  %v3256_v21 = vsel %vm3183_vm15, %v11776_v39, %v3255_v0  ;;  %v6861_v63 = vunpack.i.l.bf16 %v10543_v10 }
 0x3e7   :  { %v3257_v12 = vsel %vm3185_vm0, %v11777_v22, %v3256_v21  ;;  %v3244_v62 = vsel %vm3187_vm1, %v11674_v34, %v3243_v50  ;;  %v3289_v34 = vsel %vm3179_vm13, %v11750_v25, %v11780_v24  ;;  %v3267_v29 = vsel %vm3177_vm12, %v11782_v38, %v11781_v61  ;;  %v10597_v57 = vpop.permute.xlu0 %6879  ;;  %v11789_v22 = vld [vmem:[#allocation82_spill] sm:$0xff] }
 0x3e8   :  { %4758 = vmatprep.mubr.bf16.mxu1 %v4319_v54  ;;  %v3258_v16 = vsel %vm3187_vm1, %v11778_v7, %v3257_v12  ;;  %v3281_v56 = vsel %vm3177_vm12, %v11784_v47, %v11783_v45  ;;  %v6862_v11 = vunpack.i.h.bf16 %v10543_v10  ;;  %v3277_v43 = vsel %vm3183_vm15, %v11749_v37, %v3276_v27  ;;  %v7057_v45 = vld [vmem:[#allocation8 + $0x100] sm:$0xff]  }
 0x3e9   :  { %v4318_v1 = vpack.c.bf16 %v3258_v16, %v3244_v62  ;;  %v3290_v13 = vsel %vm3181_vm14, %v11751_v18, %v3289_v34  ;;  %v3278_v25 = vsel %vm3185_vm0, %v11752_v9, %v3277_v43  ;;  %v3268_v41 = vsel %vm3179_vm13, %v11785_v60, %v3267_v29  ;;  %v11786_v18 = vld [vmem:[#allocation166_spill] sm:$0xff] }
 0x3ea   :  { %v3291_v19 = vsel %vm3183_vm15, %v11753_v36, %v3290_v13  ;;  %v3282_v59 = vsel %vm3179_vm13, %v11704_v32, %v3281_v56  ;;  %v3279_v42 = vsel %vm3187_vm1, %v11755_v6, %v3278_v25  ;;  %v3269_v2 = vsel %vm3181_vm14, %v11786_v18, %v3268_v41 }
 0x3eb   :  { %4759 = vmatmul.mubr.bf16.gmra.mrb[8].mxu1 %v4318_v1  ;;  %v3292_v37 = vsel %vm3185_vm0, %v11756_v51, %v3291_v19  ;;  %v4280_v36 = vsel %vm3526_vm4, %v3279_v42, %v6861_v63  ;;  %v3270_v28 = vsel %vm3183_vm15, %v11787_v3, %v3269_v2  ;;  %v3283_v32 = vsel %vm3181_vm14, %v11680_v31, %v3282_v59  ;;  %v11788_v31 = vld [vmem:[#allocation172_spill] sm:$0xff]  ;;  %v6890_v16 = vpop.permute.xlu0 %6889  ;;  %v7061_v2 = vld [vmem:[#allocation8 + $0x120] sm:$0xff]  }
 0x3ec   :  { %v3293_v9 = vsel %vm3187_vm1, %v11757_v48, %v3292_v37  ;;  %v3284_v51 = vsel %vm3183_vm15, %v11681_v46, %v3283_v32  ;;  %v3271_v48 = vsel %vm3185_vm0, %v11698_v17, %v3270_v28  ;;  %v7409_v40 = vmov 0   ;;  %v7059_v37 = vld [vmem:[#allocation8 + $0x110] sm:$0xff]  }
 0x3ed   :  { %v4281_v6 = vsel %vm3526_vm4, %v3293_v9, %v6862_v11  ;;  %v3285_v5 = vsel %vm3185_vm0, %v11684_v23, %v3284_v51  ;;  %4840 = vmatprep.subr.bf16.mxu1 %v7409_v40  ;;  %v3272_v44 = vsel %vm3187_vm1, %v11788_v31, %v3271_v48  ;;  %v6872_v20 = vunpack.i.h.bf16 %v6870_v15  ;;  %v7062_v9 = vld [vmem:[#allocation8 + $0x128] sm:$0xff]  }
 0x3ee   :  { %v4325_v33 = vpack.c.bf16 %v4281_v6, %v4280_v36  ;;  %v6865_v49 = vpop.permute.xlu1 %6864  ;;  %v3286_v46 = vsel %vm3187_vm1, %v11686_v52, %v3285_v5  ;;  %v6871_v0 = vunpack.i.l.bf16 %v6870_v15  ;;  %v6857_v17 = vunpack.i.h.bf16 %v6855_v4  ;;  %v7058_v15 = vld [vmem:[#allocation8 + $0x108] sm:$0xff]  }
 0x3ef   :  { %v4324_v54 = vpack.c.bf16 %v3286_v46, %v3272_v44  ;;  %v6856_v50 = vunpack.i.l.bf16 %v6855_v4  ;;  %v6867_v39 = vunpack.i.h.bf16 %v6865_v49  ;;  %v6866_v21 = vunpack.i.l.bf16 %v6865_v49  ;;  %v6900_v18 = vpop.permute.xlu0 %6899 }
 0x3f0   :  { %4766 = vmatprep.mubr.bf16.mxu1 %v4325_v33  ;;  %v11790_v12 = vunpack.i.l.bf16 %v11789_v22  ;;  %v11791_v7 = vunpack.i.h.bf16 %v11789_v22  ;;  %v6891_v61 = vunpack.i.l.bf16 %v6890_v16  ;;  %v6892_v56 = vunpack.i.h.bf16 %v6890_v16 }
 0x3f1   :  { %v3768_v35 = vsel %vm3767_vm5, %v6856_v50, %v6857_v17  ;;  %v3769_v30 = vsel %vm3767_vm5, %v6866_v21, %v6867_v39  ;;  %v6881_v25 = vunpack.i.l.bf16 %v10597_v57  ;;  %v6882_v58 = vunpack.i.h.bf16 %v10597_v57  ;;  %v7063_v57 = vld [vmem:[#allocation8 + $0x130] sm:$0xff]  }
 0x3f2   :  { %v3527_v62 = vsel %vm3526_vm4, %v11790_v12, %v6871_v0  ;;  %v3528_v52 = vsel %vm3526_vm4, %v11791_v7, %v6872_v20  ;;  %v3529_v43 = vsel %vm3526_vm4, %v6846_v14, %v6891_v61  ;;  %v3530_v60 = vsel %vm3526_vm4, %v6847_v55, %v6892_v56  ;;  %v7060_v14 = vld [vmem:[#allocation8 + $0x118] sm:$0xff]   ;;  %v7065_v12 = vld [vmem:[#allocation8 + $0x140] sm:$0xff]  }
 0x3f3   :  { %4767 = vmatmul.mubr.bf16.gmra.mrb[12].mxu1 %v4324_v54  ;;  %v4283_v27 = vsel %vm3767_vm5, %v3528_v52, %v6866_v21  ;;  %v4282_v38 = vsel %vm3767_vm5, %v3527_v62, %v6856_v50  ;;  %v4284_v41 = vsel %vm3767_vm5, %v3529_v43, %v6881_v25  ;;  %v6910_v3 = vpop.permute.xlu0 %6909  ;;  %v3770_v6 = vsel %vm3767_vm5, %v6881_v25, %v6882_v58  ;;  %v7064_v20 = vld [vmem:[#allocation8 + $0x138] sm:$0xff]   ;;  %v7066_v52 = vld [vmem:[#allocation8 + $0x148] sm:$0xff]  }
 0x3f4   :  { %v4308_v47 = vpack.c.bf16 %v4283_v27, %v4282_v38  ;;  %v6911_v49 = vunpack.i.l.bf16 %v6910_v3  ;;  %v6912_v31 = vunpack.i.h.bf16 %v6910_v3  ;;  %v6901_v0 = vunpack.i.l.bf16 %v6900_v18  ;;  %v7067_v38 = vld [vmem:[#allocation8 + $0x150] sm:$0xff]   ;;  %v7068_v43 = vld [vmem:[#allocation8 + $0x158] sm:$0xff]  }
 0x3f6   :  { %v10604_v23 = vpop.permute.xlu1 %6874  ;;  %v3531_v44 = vsel %vm3526_vm4, %v6851_v53, %v6911_v49  ;;  %v3532_v17 = vsel %vm3526_vm4, %v6852_v8, %v6912_v31  ;;  %v6902_v53 = vunpack.i.h.bf16 %v6900_v18 }
 0x3f7   :  { %v6877_v1 = vunpack.i.h.bf16 %v10604_v23  ;;  %v6876_v4 = vunpack.i.l.bf16 %v10604_v23  ;;  %v6920_v50 = vpop.permute.xlu0 %6919  ;;  %v4286_v39 = vsel %vm3767_vm5, %v3531_v44, %v6901_v0 }
 0x3f9   :  { %v4290_v24 = vsel %vm4008_vm7, %v3768_v35, %v6876_v4  ;;  %v4291_v34 = vsel %vm4008_vm7, %v3769_v30, %v6877_v1  ;;  %v3772_v35 = vsel %vm3767_vm5, %v6901_v0, %v6902_v53 }
 0x3fa   :  { %v4309_v29 = vpack.c.bf16 %v4291_v34, %v4290_v24 }
 0x3fb   :  { %v6925_v16 = vpop.permute.xlu0 %6924 }
 0x3fc   :  { %4807 = vmatprep.mubr.bf16.mxu1 %v4309_v29  ;;  %v6926_v34 = vunpack.i.l.bf16 %v6925_v16  ;;  %v6927_v29 = vunpack.i.h.bf16 %v6925_v16 }
 0x3fd   :  { %4808 = vmatmul.mubr.bf16.vlgmr.msra.gmra.mrb[16].mxu1 %v4308_v47 }
 0x3fe   :  { %v6885_v13 = vpop.permute.xlu1 %6884  ;;  %4841 = vmatpush1.bf16.msra.mxu1 %v7057_v45  ;;  %v3533_v47 = vsel %vm3526_vm4, %v6861_v63, %v6926_v34  ;;  %v3534_v25 = vsel %vm3526_vm4, %v6862_v11, %v6927_v29  ;;  %v6922_v63 = vunpack.i.h.bf16 %v6920_v50 }
 0x3ff   :  { %v6886_v19 = vunpack.i.l.bf16 %v6885_v13  ;;  %4842 = vmatprep.subr.bf16.mxu1 %v7409_v40  ;;  %v6887_v55 = vunpack.i.h.bf16 %v6885_v13  ;;  %v6940_v45 = vpop.permute.xlu0 %6939  ;;  %v6921_v13 = vunpack.i.l.bf16 %v6920_v50 }
 0x400   :  { %v6942_v3 = vunpack.i.h.bf16 %v6940_v45 }
 0x401   :  { %v4285_v59 = vsel %vm3767_vm5, %v3530_v60, %v6886_v19  ;;  %v3771_v51 = vsel %vm3767_vm5, %v6886_v19, %v6887_v55  ;;  %v4288_v19 = vsel %vm3767_vm5, %v3533_v47, %v6921_v13  ;;  %v3774_v11 = vsel %vm3767_vm5, %v6921_v13, %v6922_v63 }
 0x402   :  { %4843 = vmatpush1.bf16.msra.mxu1 %v7058_v15  ;;  %v4314_v42 = vpack.c.bf16 %v4285_v59, %v4284_v41  ;;  %v7069_v59 = vld [vmem:[#allocation8 + $0x160] sm:$0xff]  }
 0x403   :  { %4844 = vmatprep.subr.bf16.mxu1 %v7409_v40 }
 0x406   :  { %4845 = vmatpush1.bf16.msra.mxu1 %v7059_v37 }
 0x407   :  { %4846 = vmatprep.subr.bf16.mxu1 %v7409_v40 }
 0x40a   :  { %4847 = vmatpush1.bf16.msra.mxu1 %v7060_v14 }
 0x40b   :  { %4848 = vmatprep.subr.bf16.mxu1 %v7409_v40 }
 0x40e   :  { %4849 = vmatpush1.bf16.msra.mxu1 %v7061_v2 }
 0x40f   :  { %4850 = vmatprep.subr.bf16.mxu1 %v7409_v40 }
 0x411   :  { %v10638_v36 = vpop.permute.xlu1 %6894 }
 0x412   :  { %v6897_v28 = vunpack.i.h.bf16 %v10638_v36  ;;  %v6896_v32 = vunpack.i.l.bf16 %v10638_v36  ;;  %4851 = vmatpush1.bf16.msra.mxu1 %v7062_v9 }
 0x413   :  { %4852 = vmatprep.subr.bf16.mxu1 %v7409_v40 }
 0x414   :  { %v4292_v33 = vsel %vm4008_vm7, %v3770_v6, %v6896_v32  ;;  %v4293_v48 = vsel %vm4008_vm7, %v3771_v51, %v6897_v28  ;;  %v6941_v6 = vunpack.i.l.bf16 %v6940_v45 }
 0x415   :  { %v4315_v5 = vpack.c.bf16 %v4293_v48, %v4292_v33 }
 0x416   :  { %4853 = vmatpush1.bf16.msra.mxu1 %v7063_v57  ;;  %v4010_v57 = vsel %vm4008_vm7, %v6877_v1, %v6942_v3  ;;  %v4009_v31 = vsel %vm4008_vm7, %v6876_v4, %v6941_v6 }
 0x417   :  { %4815 = vmatprep.mubr.bf16.mxu1 %v4315_v5  ;;  %4854 = vmatprep.subr.bf16.mxu1 %v7409_v40 }
 0x418   :  { %4816 = vmatmul.mubr.bf16.gmra.mrb[20].mxu1 %v4314_v42  ;;  %v6950_v42 = vpop.permute.xlu0 %6949 }
 0x419   :  { %v6905_v46 = vpop.permute.xlu1 %6904  ;;  %v6952_v51 = vunpack.i.h.bf16 %v6950_v42  ;;  %v6951_v33 = vunpack.i.l.bf16 %v6950_v42 }
 0x41a   :  { %v6906_v54 = vunpack.i.l.bf16 %v6905_v46  ;;  %4855 = vmatpush1.bf16.msra.mxu1 %v7064_v20  ;;  %v6907_v62 = vunpack.i.h.bf16 %v6905_v46 }
 0x41b   :  { %4856 = vmatprep.subr.bf16.mxu1 %v7409_v40  ;;  %v4251_v46 = vsel %vm4249_vm8, %v6951_v33, %v6952_v51  ;;  %v4299_v20 = vsel %vm4249_vm8, %v4010_v57, %v6951_v33 }
 0x41c   :  { %v4287_v21 = vsel %vm3767_vm5, %v3532_v17, %v6906_v54  ;;  %v3773_v30 = vsel %vm3767_vm5, %v6906_v54, %v6907_v62  ;;  %v6960_v58 = vpop.permute.xlu0 %6959 }
 0x41d   :  { %v4320_v22 = vpack.c.bf16 %v4287_v21, %v4286_v39  ;;  %v6962_v21 = vunpack.i.h.bf16 %v6960_v58 }
 0x41e   :  { %4857 = vmatpush1.bf16.msra.mxu1 %v7065_v12 }
 0x41f   :  { %4858 = vmatprep.subr.bf16.mxu1 %v7409_v40 }
 0x420   :  { %v6970_v44 = vpop.permute.xlu0 %6969 }
 0x422   :  { %v10662_v7 = vpop.permute.xlu1 %6914  ;;  %4859 = vmatpush1.bf16.msra.mxu1 %v7066_v52 }
 0x423   :  { %v6917_v26 = vunpack.i.h.bf16 %v10662_v7  ;;  %v6916_v8 = vunpack.i.l.bf16 %v10662_v7  ;;  %4860 = vmatprep.subr.bf16.mxu1 %v7409_v40 }
 0x425   :  { %v4294_v27 = vsel %vm4008_vm7, %v3772_v35, %v6916_v8  ;;  %v4295_v24 = vsel %vm4008_vm7, %v3773_v30, %v6917_v26 }
 0x426   :  { %v4321_v61 = vpack.c.bf16 %v4295_v24, %v4294_v27  ;;  %4861 = vmatpush1.bf16.msra.mxu1 %v7067_v38 }
 0x427   :  { %4862 = vmatprep.subr.bf16.mxu1 %v7409_v40  ;;  %v6980_v23 = vpop.permute.xlu0 %6979 }
 0x428   :  { %4823 = vmatprep.mubr.bf16.mxu1 %v4321_v61  ;;  %v6982_v30 = vunpack.i.h.bf16 %v6980_v23  ;;  %v6981_v27 = vunpack.i.l.bf16 %v6980_v23 }
 0x429   :  { %4824 = vmatmul.mubr.bf16.gmra.mrb[24].mxu1 %v4320_v22  ;;  %v6961_v22 = vunpack.i.l.bf16 %v6960_v58 }
 0x42a   :  { %4863 = vmatpush1.bf16.msra.mxu1 %v7068_v43  ;;  %v6971_v43 = vunpack.i.l.bf16 %v6970_v44 }
 0x42b   :  { %v6930_v56 = vpop.permute.xlu1 %6929  ;;  %4864 = vmatprep.subr.bf16.mxu1 %v7409_v40  ;;  %v4252_v52 = vsel %vm4249_vm8, %v6961_v22, %v6962_v21 }
 0x42c   :  { %v6931_v15 = vunpack.i.l.bf16 %v6930_v56  ;;  %v6932_v37 = vunpack.i.h.bf16 %v6930_v56 }
 0x42e   :  { %v4289_v60 = vsel %vm3767_vm5, %v3534_v25, %v6931_v15  ;;  %4865 = vmatpush1.bf16.msra.mxu1 %v7069_v59  ;;  %v3775_v2 = vsel %vm3767_vm5, %v6931_v15, %v6932_v37  ;;  %v4013_v15 = vsel %vm4008_vm7, %v6916_v8, %v6971_v43 }
 0x42f   :  { %v4326_v41 = vpack.c.bf16 %v4289_v60, %v4288_v19 }
 0x431   :  { %v6985_v42 = vpop.permute.xlu0 %6984 }
 0x433   :  { %v10686_v14 = vpop.permute.xlu1 %6934 }
 0x434   :  { %v6937_v18 = vunpack.i.h.bf16 %v10686_v14  ;;  %v6936_v10 = vunpack.i.l.bf16 %v10686_v14 }
 0x436   :  { %v4296_v55 = vsel %vm4008_vm7, %v3774_v11, %v6936_v10  ;;  %v4297_v40 = vsel %vm4008_vm7, %v3775_v2, %v6937_v18  ;;  %v6987_v11 = vunpack.i.h.bf16 %v6985_v42  ;;  %v6986_v2 = vunpack.i.l.bf16 %v6985_v42 }
 0x437   :  { %v4327_v9 = vpack.c.bf16 %v4297_v40, %v4296_v55 }
 0x438   :  { %v4256_v40 = vsel %vm4249_vm8, %v6986_v2, %v6987_v11 }
 0x439   :  { %4831 = vmatprep.mubr.bf16.mxu1 %v4327_v9 }
 0x43a   :  { %v6945_v48 = vpop.permute.xlu1 %6944  ;;  %4832 = vmatmul.mubr.bf16.gmra.mrb[28].mxu1 %v4326_v41 }
 0x43b   :  { %v6947_v49 = vunpack.i.h.bf16 %v6945_v48  ;;  %v6946_v5 = vunpack.i.l.bf16 %v6945_v48 }
 0x43d   :  { %v4250_v0 = vsel %vm4249_vm8, %v6946_v5, %v6947_v49  ;;  %v4298_v54 = vsel %vm4249_vm8, %v4009_v31, %v6946_v5 }
 0x43e   :  { %v4310_v17 = vpack.c.bf16 %v4299_v20, %v4298_v54  ;;  %v4311_v50 = vpack.c.bf16 %v4251_v46, %v4250_v0  ;;  %v6955_v39 = vpop.permute.xlu1 %6954  ;;  %v7070_v54 = vld [vmem:[#allocation11 + $0x30] sm:$0xff]  }
 0x43f   :  { %v6957_v1 = vunpack.i.h.bf16 %v6955_v39  ;;  %v6956_v12 = vunpack.i.l.bf16 %v6955_v39 }
 0x440   :  { %6220 = vmatprep.mubr.msk.bf16.mxu1 %vm4697_vm9, %v4311_v50  ;;  %v7071_v50 = vld [vmem:[#allocation11 + $0x38] sm:$0xff]  }
 0x441   :  { %v4012_v16 = vsel %vm4008_vm7, %v6897_v28, %v6957_v1  ;;  %v4011_v35 = vsel %vm4008_vm7, %v6896_v32, %v6956_v12  ;;  %v4255_v28 = vsel %vm4249_vm8, %v6981_v27, %v6982_v30  ;;  %v6972_v32 = vunpack.i.h.bf16 %v6970_v44  ;;  %v7072_v12 = vld [vmem:[#allocation11 + $0x40] sm:$0xff]  }
 0x442   :  { %v6965_v4 = vpop.permute.xlu1 %6964  ;;  %4873 = vmatmul.mubr.bf16.vlgmr.msra.gmra.mrb[32].mxu1 %v4310_v17  ;;  %v4300_v47 = vsel %vm4249_vm8, %v4011_v35, %v6961_v22  ;;  %v7410_v17 = vmov 0.0  }
 0x443   :  { %v6967_v53 = vunpack.i.h.bf16 %v6965_v4  ;;  %v6966_v62 = vunpack.i.l.bf16 %v6965_v4  ;;  %v4014_v25 = vsel %vm4008_vm7, %v6917_v26, %v6972_v32  ;;  %6478 = vmatprep.subr.bf16.mxu0 %v7410_v17  ;;  %6462 = vmatprep.subr.bf16.mxu1 %v7410_v17 }
 0x444   :  { %v4303_v60 = vsel %vm4249_vm8, %v4014_v25, %v6981_v27  ;;  %6479 = vmatpush3.bf16.msra.mxu0 %v7070_v54  ;;  %v6174_v27 = vld [vmem:[#allocation10] ss:$0 sm:$0xff]  ;;  %6490 = vmatprep.mubr.msk.bf16.mxu0 %vm7412_vm10, %v7410_v17 }
 0x445   :  { %v4253_v24 = vsel %vm4249_vm8, %v6966_v62, %v6967_v53  ;;  %v4301_v34 = vsel %vm4249_vm8, %v4012_v16, %v6966_v62  ;;  %6480 = vmatprep.subr.bf16.mxu0 %v7410_v17 }
 0x446   :  { %v4317_v61 = vpack.c.bf16 %v4253_v24, %v4252_v52  ;;  %v4316_v56 = vpack.c.bf16 %v4301_v34, %v4300_v47 }
 0x447   :  { %v6975_v38 = vpop.permute.xlu1 %6974 }
 0x448   :  { %v6977_v29 = vunpack.i.h.bf16 %v6975_v38  ;;  %v6976_v45 = vunpack.i.l.bf16 %v6975_v38  ;;  %6221 = vmatprep.mubr.msk.bf16.mxu1 %vm4697_vm9, %v4317_v61  ;;  %6481 = vmatpush3.bf16.msra.mxu0 %v7071_v50 }
 0x449   :  { %6482 = vmatprep.subr.bf16.mxu0 %v7410_v17 }
 0x44a   :  { %v4254_v36 = vsel %vm4249_vm8, %v6976_v45, %v6977_v29  ;;  %4881 = vmatmul.mubr.bf16.gmra.mrb[36].mxu1 %v4316_v56  ;;  %v4302_v19 = vsel %vm4249_vm8, %v4013_v15, %v6976_v45 }
 0x44b   :  { %v4323_v13 = vpack.c.bf16 %v4255_v28, %v4254_v36  ;;  %v4322_v41 = vpack.c.bf16 %v4303_v60, %v4302_v19 }
 0x44c   :  { %6483 = vmatpush3.bf16.msra.mxu0 %v7072_v12 }
 0x44d   :  { %6222 = vmatprep.mubr.msk.bf16.mxu1 %vm4697_vm9, %v4323_v13  ;;  %6484 = vmatprep.subr.bf16.mxu0 %v7410_v17 }
 0x451   :  { %v6990_v59 = vpop.permute.xlu1 %6989 }
 0x452   :  { %4889 = vmatmul.mubr.bf16.gmra.mrb[40].mxu1 %v4322_v41  ;;  %v6991_v63 = vunpack.i.l.bf16 %v6990_v59  ;;  %v6992_v37 = vunpack.i.h.bf16 %v6990_v59 }
 0x454   :  { %v4015_v7 = vsel %vm4008_vm7, %v6936_v10, %v6991_v63  ;;  %v4016_v55 = vsel %vm4008_vm7, %v6937_v18, %v6992_v37 }
 0x455   :  { %v4304_v51 = vsel %vm4249_vm8, %v4015_v7, %v6986_v2 }
 0x457   :  { %v6995_v58 = vpop.permute.xlu1 %6994 }
 0x458   :  { %v6997_v26 = vunpack.i.h.bf16 %v6995_v58  ;;  %v6996_v8 = vunpack.i.l.bf16 %v6995_v58 }
 0x45a   :  { %v4257_v9 = vsel %vm4249_vm8, %v6996_v8, %v6997_v26  ;;  %v4305_v3 = vsel %vm4249_vm8, %v4016_v55, %v6996_v8 }
 0x45b   :  { %v4329_v6 = vpack.c.bf16 %v4257_v9, %v4256_v40  ;;  %v4328_v33 = vpack.c.bf16 %v4305_v3, %v4304_v51 }
 0x45d   :  { %6223 = vmatprep.mubr.msk.bf16.mxu1 %vm4697_vm9, %v4329_v6 }
 0x45e   :  { %4897 = vmatmul.mubr.bf16.gmra.mrb[44].mxu1 %v4328_v33 }
 0x45f   :  { %6474 = vmatprep.mubr.msk.bf16.mxu1 %vm7412_vm10, %v7410_v17 }
 0x46c   :  { %v6356_v10 = vpop.f32.mrb[0].mxu1 }
 0x46d   :  { %v6357_v48 = vpop.f32.mrb[1].mxu1 }
 0x46e   :  { %v6358_v49 = vadd.f32 %v6357_v48, %v6356_v10  ;;  %v6359_v5 = vpop.f32.mrb[2].mxu1 }
 0x46f   :  { %v6360_v14 = vpop.f32.mrb[3].mxu1 }
 0x470   :  { %v6361_v57 = vadd.f32 %v6360_v14, %v6359_v5  ;;  %v4745_v61 = vadd.f32 %v6358_v49, %v6174_v27 }
 0x472   :  { %v4748_v47 = vadd.f32 %v6361_v57, %v6174_v27 }
 0x4af   :  { %v6362_v18 = vpop.f32.mrb[4].mxu1 }
 0x4b0   :  { %v6363_v31 = vpop.f32.mrb[5].mxu1 }
 0x4b1   :  { %v6364_v44 = vadd.f32 %v6363_v31, %v6362_v18  ;;  %v6365_v46 = vpop.f32.mrb[6].mxu1 }
 0x4b2   :  { %v6366_v20 = vpop.f32.mrb[7].mxu1 }
 0x4b3   :  { %v6367_v0 = vadd.f32 %v6366_v20, %v6365_v46  ;;  %v4753_v13 = vadd.f32 %v6364_v44, %v6174_v27 }
 0x4b5   :  { %v4756_v60 = vadd.f32 %v6367_v0, %v6174_v27 }
 0x4be   :  { %v6368_v39 = vpop.f32.mrb[8].mxu1 }
 0x4bf   :  { %v6369_v21 = vpop.f32.mrb[9].mxu1 }
 0x4c0   :  { %v6370_v22 = vadd.f32 %v6369_v21, %v6368_v39  ;;  %v6371_v1 = vpop.f32.mrb[10].mxu1 }
 0x4c1   :  { %v6372_v23 = vpop.f32.mrb[11].mxu1 }
 0x4c2   :  { %v6373_v4 = vadd.f32 %v6372_v23, %v6371_v1  ;;  %v4761_v11 = vadd.f32 %v6370_v22, %v6174_v27 }
 0x4c4   :  { %v4764_v26 = vadd.f32 %v6373_v4, %v6174_v27  ;;  %v7073_v4 = vld [vmem:[#allocation11 + $0x48] sm:$0xff]  }
 0x4c5   :  { %6485 = vmatpush3.bf16.msra.mxu0 %v7073_v4 }
 0x4c6   :  { %v6374_v53 = vpop.f32.mrb[12].mxu1  ;;  %6486 = vmatprep.subr.bf16.mxu0 %v7410_v17 }
 0x4c7   :  { %v6375_v62 = vpop.f32.mrb[13].mxu1 }
 0x4c8   :  { %v6376_v52 = vadd.f32 %v6375_v62, %v6374_v53  ;;  %v6377_v16 = vpop.f32.mrb[14].mxu1 }
 0x4c9   :  { %v6378_v35 = vpop.f32.mrb[15].mxu1 }
 0x4ca   :  { %v6379_v30 = vadd.f32 %v6378_v35, %v6377_v16  ;;  %v4769_v6 = vadd.f32 %v6376_v52, %v6174_v27 }
 0x4cc   :  { %v4772_v48 = vadd.f32 %v6379_v30, %v6174_v27 }
 0x4d0   :  { %v6396_v24 = vpop.f32.mrb[16].mxu1 }
 0x4d1   :  { %v6397_v34 = vpop.f32.mrb[17].mxu1 }
 0x4d2   :  { %v6398_v38 = vadd.f32 %v6397_v34, %v6396_v24  ;;  %v6399_v29 = vpop.f32.mrb[18].mxu1 }
 0x4d3   :  { %v6400_v45 = vpop.f32.mrb[19].mxu1 }
 0x4d4   :  { %v6401_v56 = vadd.f32 %v6400_v45, %v6399_v29  ;;  %v4810_v28 = vadd.f32 %v6398_v38, %v4745_v61 }
 0x4d6   :  { %v4813_v36 = vadd.f32 %v6401_v56, %v4748_v47 }
 0x4eb   :  { %v6402_v32 = vpop.f32.mrb[20].mxu1 }
 0x4ec   :  { %v6403_v43 = vpop.f32.mrb[21].mxu1 }
 0x4ed   :  { %v6404_v15 = vadd.f32 %v6403_v43, %v6402_v32  ;;  %v6405_v25 = vpop.f32.mrb[22].mxu1  ;;  %v7074_v32 = vld [vmem:[#allocation11 + $0x50] sm:$0xff]   ;;  %v7075_v43 = vld [vmem:[#allocation11] sm:$0xff]  }
 0x4ee   :  { %v6406_v19 = vpop.f32.mrb[23].mxu1  ;;  %6487 = vmatpush3.bf16.msra.mxu0 %v7074_v32  ;;  %6463 = vmatpush3.bf16.msra.mxu1 %v7075_v43 }
 0x4ef   :  { %v6407_v41 = vadd.f32 %v6406_v19, %v6405_v25  ;;  %v4818_v59 = vadd.f32 %v6404_v15, %v4753_v13  ;;  %6488 = vmatprep.subr.bf16.mxu0 %v7410_v17  ;;  %6464 = vmatprep.subr.bf16.mxu1 %v7410_v17  ;;  %v7076_v13 = vld [vmem:[#allocation11 + $0x8] sm:$0xff]   ;;  %v7077_v15 = vld [vmem:[#allocation11 + $0x10] sm:$0xff]   ;;  %v7078_v25 = vld [vmem:[#allocation11 + $0x58] sm:$0xff]  }
 0x4f0   :  { %v7079_v19 = vld [vmem:[#allocation11 + $0x18] sm:$0xff]  }
 0x4f1   :  { %v4821_v42 = vadd.f32 %v6407_v41, %v4756_v60  ;;  %v7080_v60 = vld [vmem:[#allocation11 + $0x20] sm:$0xff]   ;;  %v7081_v41 = vld [vmem:[#allocation11 + $0x28] sm:$0xff]  }
 0x4f2   :  { %6465 = vmatpush3.bf16.msra.mxu1 %v7076_v13  ;;  %6489 = vmatpush3.bf16.msra.mxu0 %v7078_v25 }
 0x4f3   :  { %6466 = vmatprep.subr.bf16.mxu1 %v7410_v17  ;;  %6494 = vmatprep.subr.bf16.mxu0 %v7410_v17 }
 0x4f6   :  { %6467 = vmatpush3.bf16.msra.mxu1 %v7077_v15 }
 0x4f7   :  { %6468 = vmatprep.subr.bf16.mxu1 %v7410_v17 }
 0x4fa   :  { %6469 = vmatpush3.bf16.msra.mxu1 %v7079_v19 }
 0x4fb   :  { %6470 = vmatprep.subr.bf16.mxu1 %v7410_v17 }
 0x4fc   :  { %v6408_v63 = vpop.f32.mrb[24].mxu1 }
 0x4fd   :  { %v6409_v37 = vpop.f32.mrb[25].mxu1 }
 0x4fe   :  { %v6410_v2 = vadd.f32 %v6409_v37, %v6408_v63  ;;  %v6411_v58 = vpop.f32.mrb[26].mxu1  ;;  %6471 = vmatpush3.bf16.msra.mxu1 %v7080_v60 }
 0x4ff   :  { %v6412_v7 = vpop.f32.mrb[27].mxu1  ;;  %6472 = vmatprep.subr.bf16.mxu1 %v7410_v17 }
 0x500   :  { %v6413_v8 = vadd.f32 %v6412_v7, %v6411_v58  ;;  %v4826_v55 = vadd.f32 %v6410_v2, %v4761_v11 }
 0x502   :  { %v4829_v40 = vadd.f32 %v6413_v8, %v4764_v26  ;;  %6473 = vmatpush3.bf16.msra.mxu1 %v7081_v41 }
 0x503   :  { %6526 = vmatprep.subr.bf16.mxu1 %v7410_v17 }
 0x50d   :  { %v6414_v9 = vpop.f32.mrb[28].mxu1 }
 0x50e   :  { %v6415_v3 = vpop.f32.mrb[29].mxu1 }
 0x50f   :  { %v6416_v51 = vadd.f32 %v6415_v3, %v6414_v9  ;;  %v6417_v33 = vpop.f32.mrb[30].mxu1  ;;  %v11792_v3 = vld [vmem:[#allocation37_spill] sm:$0xff] }
 0x510   :  { %v6418_v10 = vpop.f32.mrb[31].mxu1 }
 0x511   :  { %v6419_v49 = vadd.f32 %v6418_v10, %v6417_v33  ;;  %v4834_v5 = vadd.f32 %v6416_v51, %v4769_v6 }
 0x513   :  { %v4837_v14 = vadd.f32 %v6419_v49, %v4772_v48 }
 0x515   :  { %v4874_v57 = vpop.f32.mrb[32].mxu1 }
 0x516   :  { %v4875_v18 = vadd.f32 %v4874_v57, %v4810_v28  ;;  %v4876_v31 = vpop.f32.mrb[33].mxu1 }
 0x517   :  { %v4877_v44 = vpop.f32.mrb[34].mxu1 }
 0x518   :  { %v10747_v46 = vmax.f32 %v4875_v18, 0.0  ;;  %v4878_v20 = vadd.f32 %v4877_v44, %v4813_v36  ;;  %v4879_v0 = vpop.f32.mrb[35].mxu1 }
 0x51a   :  { %v10749_v54 = vmax.f32 %v4878_v20, 0.0  ;;  %4921 = vrot.lane.b32.xlu0 %v10747_v46, %s7411_s18 }
 0x51c   :  { %4947 = vrot.lane.b32.xlu1 %v10749_v54, %s7400_s4 }
 0x51d   :  { %v4882_v50 = vpop.f32.mrb[36].mxu1 }
 0x51e   :  { %v4883_v39 = vadd.f32 %v4882_v50, %v4818_v59  ;;  %v4884_v21 = vpop.f32.mrb[37].mxu1  ;;  %4945 = vrot.lane.b32.xlu0 %v10747_v46, %s7400_s4 }
 0x51f   :  { %v4885_v22 = vpop.f32.mrb[38].mxu1 }
 0x520   :  { %v10757_v1 = vmax.f32 %v4883_v39, 0.0  ;;  %v4886_v12 = vadd.f32 %v4885_v22, %v4821_v42  ;;  %v4887_v23 = vpop.f32.mrb[39].mxu1 }
 0x522   :  { %4949 = vrot.lane.b32.xlu1 %v10757_v1, %s7400_s4  ;;  %4923 = vrot.lane.b32.xlu0 %v10749_v54, %s7411_s18  ;;  %v10763_v53 = vmax.f32 %v4886_v12, 0.0 }
 0x525   :  { %v4890_v62 = vpop.f32.mrb[40].mxu1 }
 0x526   :  { %v4891_v52 = vadd.f32 %v4890_v62, %v4826_v55  ;;  %v4892_v16 = vpop.f32.mrb[41].mxu1  ;;  %4927 = vrot.lane.b32.xlu1 %v10763_v53, %s7411_s18  ;;  %4925 = vrot.lane.b32.xlu0 %v10757_v1, %s7411_s18 }
 0x527   :  { %v4893_v35 = vpop.f32.mrb[42].mxu1 }
 0x528   :  { %v10770_v30 = vmax.f32 %v4891_v52, 0.0  ;;  %v4894_v27 = vadd.f32 %v4893_v35, %v4829_v40  ;;  %v4895_v24 = vpop.f32.mrb[43].mxu1 }
 0x52a   :  { %4951 = vrot.lane.b32.xlu1 %v10763_v53, %s7400_s4  ;;  %4929 = vrot.lane.b32.xlu0 %v10770_v30, %s7411_s18  ;;  %v10776_v34 = vmax.f32 %v4894_v27, 0.0 }
 0x52e   :  { %4953 = vrot.lane.b32.xlu1 %v10770_v30, %s7400_s4  ;;  %4931 = vrot.lane.b32.xlu0 %v10776_v34, %s7411_s18 }
 0x531   :  { %v4898_v61 = vpop.f32.mrb[44].mxu1 }
 0x532   :  { %v4899_v38 = vadd.f32 %v4898_v61, %v4834_v5  ;;  %v4900_v29 = vpop.f32.mrb[45].mxu1  ;;  %4955 = vrot.lane.b32.xlu1 %v10776_v34, %s7400_s4 }
 0x533   :  { %v4901_v45 = vpop.f32.mrb[46].mxu1 }
 0x534   :  { %v10784_v47 = vmax.f32 %v4899_v38, 0.0  ;;  %v4902_v56 = vadd.f32 %v4901_v45, %v4837_v14  ;;  %v4903_v28 = vpop.f32.mrb[47].mxu1 }
 0x536   :  { %4933 = vrot.lane.b32.xlu0 %v10784_v47, %s7411_s18  ;;  %4957 = vrot.lane.b32.xlu1 %v10784_v47, %s7400_s4  ;;  %v10790_v36 = vmax.f32 %v4902_v56, 0.0 }
 0x53a   :  { %4935 = vrot.lane.b32.xlu0 %v10790_v36, %s7411_s18  ;;  %4959 = vrot.lane.b32.xlu1 %v10790_v36, %s7400_s4 }
 0x58c   :  { %v4922_v59 = vpop.permute.xlu0 %4921 }
 0x58e   :  { %v4948_v42 = vpop.permute.xlu1 %4947 }
 0x590   :  { %v4946_v37 = vpop.permute.xlu0 %4945 }
 0x591   :  { %v4969_v26 = vsel %vm841_vm6, %v4922_v59, %v4946_v37 }
 0x592   :  { %v4977_v40 = vmax.f32 %v10747_v46, %v4969_v26 }
 0x594   :  { %v4950_v63 = vpop.permute.xlu1 %4949  ;;  %v4924_v2 = vpop.permute.xlu0 %4923  ;;  %v5000_v10 = vrot.slane %v4977_v40, %v11792_v3  ;;  %v4993_v27 = vcombine.high %v4977_v40, %v4977_v40 }
 0x595   :  { %v4970_v58 = vsel %vm841_vm6, %v4924_v2, %v4948_v42 }
 0x596   :  { %v4978_v55 = vmax.f32 %v10749_v54, %v4970_v58  ;;  %v6224_v31 = vrot.slane %v5000_v10, 9  ;;  %v5008_v46 = vcombine.high %v5000_v10, %v5000_v10  ;;  %v10843_v41 = vrot.slane %v4993_v27, %v11792_v3 }
 0x598   :  { %v4928_v11 = vpop.permute.xlu1 %4927  ;;  %v4926_v8 = vpop.permute.xlu0 %4925  ;;  %v5017_v6 = vrot.slane %v4978_v55, %v11792_v3  ;;  %v5257_v22 = vmax.f32 %v5000_v10, %v6224_v31  ;;  %v6225_v12 = vrot.slane %v5008_v46, 9  ;;  %v5010_v61 = vcombine.high %v4978_v55, %v4978_v55 }
 0x599   :  { %v4971_v9 = vsel %vm841_vm6, %v4926_v8, %v4950_v63 }
 0x59a   :  { %v10815_v33 = vmax.f32 %v10757_v1, %v4971_v9  ;;  %v5025_v5 = vcombine.high %v5017_v6, %v5017_v6  ;;  %v6228_v20 = vrot.slane %v5017_v6, 9  ;;  %v5297_v24 = vpack.c.bf16 %v5257_v22, %v5257_v22 }
 0x59b   :  { %v5258_v29 = vmax.f32 %v5008_v46, %v6225_v12  ;;  %v10846_v42 = vrot.slane %v5010_v61, %v11792_v3 }
 0x59c   :  { %v4952_v7 = vpop.permute.xlu1 %4951  ;;  %v4930_v49 = vpop.permute.xlu0 %4929  ;;  %v5034_v14 = vrot.slane %v10815_v33, %v11792_v3  ;;  %v6229_v0 = vrot.slane %v5025_v5, 9  ;;  %v5261_v4 = vmax.f32 %v5017_v6, %v6228_v20  ;;  %v5325_v59 = vunpack.c.l.b16 %v5297_v24 }
 0x59d   :  { %v4972_v48 = vsel %vm841_vm6, %v4928_v11, %v4952_v7  ;;  %v5429_v37 = vpack.c.bf16 %v5258_v29, %v5258_v29  ;;  %v5027_v11 = vcombine.high %v10815_v33, %v10815_v33  ;;  %v6230_v33 = vrot.slane %v10846_v42, 9 }
 0x59e   :  { %v10822_v57 = vmax.f32 %v10763_v53, %v4972_v48  ;;  %v5042_v39 = vcombine.high %v5034_v14, %v5034_v14  ;;  %v6232_v23 = vrot.slane %v5034_v14, 9  ;;  %v5262_v53 = vmax.f32 %v5025_v5, %v6229_v0 }
 0x59f   :  { %v5298_v32 = vpack.c.bf16 %v5261_v4, %v5261_v4 }
 0x5a0   :  { %v4954_v51 = vpop.permute.xlu1 %4953  ;;  %v4932_v50 = vpop.permute.xlu0 %4931  ;;  %v5051_v21 = vrot.slane %v10822_v57, %v11792_v3  ;;  %v6233_v16 = vrot.slane %v5042_v39, 9  ;;  %v5265_v45 = vmax.f32 %v5034_v14, %v6232_v23  ;;  %v5430_v43 = vpack.c.bf16 %v5262_v53, %v5262_v53 }
 0x5a1   :  { %v4973_v18 = vsel %vm841_vm6, %v4930_v49, %v4954_v51  ;;  %v5326_v26 = vunpack.c.l.b16 %v5298_v32 }
 0x5a2   :  { %v10826_v54 = vmax.f32 %v10770_v30, %v4973_v18  ;;  %v5059_v35 = vcombine.high %v5051_v21, %v5051_v21  ;;  %v6236_v13 = vrot.slane %v5051_v21, 9  ;;  %v5266_v25 = vmax.f32 %v5042_v39, %v6233_v16 }
 0x5a3   :  { %v5299_v2 = vpack.c.bf16 %v5265_v45, %v5265_v45  ;;  %v5459_v40 = vunpack.c.l.b16 %v5430_v43  ;;  %v10855_v18 = vrot.slane %v5027_v11, %v11792_v3  ;;  %v5333_v39 = vrot.slane %v5326_v26, 7 }
 0x5a4   :  { %v4956_v44 = vpop.permute.xlu1 %4955  ;;  %v5068_v62 = vrot.slane %v10826_v54, %v11792_v3  ;;  %v6237_v19 = vrot.slane %v5059_v35, 9  ;;  %v5269_v8 = vmax.f32 %v5051_v21, %v6236_v13  ;;  %v5431_v9 = vpack.c.bf16 %v5266_v25, %v5266_v25 }
 0x5a5   :  { %v4974_v1 = vsel %vm841_vm6, %v4932_v50, %v4956_v44  ;;  %v5327_v31 = vunpack.c.l.b16 %v5299_v2  ;;  %v5466_v12 = vrot.slane %v5459_v40, 7  ;;  %v5044_v16 = vcombine.high %v10822_v57, %v10822_v57 }
 0x5a6   :  { %v10834_v30 = vmax.f32 %v10776_v34, %v4974_v1  ;;  %v5076_v15 = vcombine.high %v5068_v62, %v5068_v62  ;;  %v6240_v63 = vrot.slane %v5068_v62, 9  ;;  %v5270_v6 = vmax.f32 %v5059_v35, %v6237_v19 }
 0x5a7   :  { %v5300_v46 = vpack.c.bf16 %v5269_v8, %v5269_v8  ;;  %v5460_v21 = vunpack.c.l.b16 %v5431_v9  ;;  %v5335_v27 = vrot.slane %v5327_v31, 6  ;;  %v5334_v29 = vsel %vm3175_vm11, %v5333_v39, %v5325_v59 }
 0x5a8   :  { %v4958_v52 = vpop.permute.xlu1 %4957  ;;  %v4934_v38 = vpop.permute.xlu0 %4933  ;;  %v5085_v56 = vrot.slane %v10834_v30, %v11792_v3  ;;  %v6241_v55 = vrot.slane %v5076_v15, 9  ;;  %v5273_v48 = vmax.f32 %v5068_v62, %v6240_v63  ;;  %v5432_v23 = vpack.c.bf16 %v5270_v6, %v5270_v6 }
 0x5a9   :  { %v4975_v28 = vsel %vm841_vm6, %v4934_v38, %v4958_v52  ;;  %v5458_v62 = vunpack.c.l.b16 %v5429_v37  ;;  %v6234_v52 = vrot.slane %v10855_v18, 9  ;;  %v5328_v24 = vunpack.c.l.b16 %v5300_v46 }
 0x5aa   :  { %v5093_v60 = vcombine.high %v5085_v56, %v5085_v56  ;;  %v10840_v34 = vmax.f32 %v10784_v47, %v4975_v28  ;;  %v6244_v58 = vrot.slane %v5085_v56, 9  ;;  %v5274_v20 = vmax.f32 %v5076_v15, %v6241_v55 }
 0x5ab   :  { %v5301_v4 = vpack.c.bf16 %v5273_v48, %v5273_v48  ;;  %v5468_v45 = vrot.slane %v5460_v21, 6  ;;  %v5467_v28 = vsel %vm3175_vm11, %v5466_v12, %v5458_v62  ;;  %v5461_v32 = vunpack.c.l.b16 %v5432_v23 }
 0x5ac   :  { %v4960_v7 = vpop.permute.xlu1 %4959  ;;  %v5102_v47 = vrot.slane %v10840_v34, %v11792_v3  ;;  %v6245_v51 = vrot.slane %v5093_v60, 9  ;;  %v4936_v10 = vpop.permute.xlu0 %4935  ;;  %v5277_v44 = vmax.f32 %v5085_v56, %v6244_v58  ;;  %v5433_v61 = vpack.c.bf16 %v5274_v20, %v5274_v20 }
 0x5ad   :  { %v4976_v14 = vsel %vm841_vm6, %v4936_v10, %v4960_v7  ;;  %v5329_v43 = vunpack.c.l.b16 %v5301_v4  ;;  %v10868_v15 = vrot.slane %v5044_v16, %v11792_v3  ;;  %v5337_v63 = vrot.slane %v5328_v24, 5 }
 0x5ae   :  { %v5110_v49 = vcombine.high %v5102_v47, %v5102_v47  ;;  %v6248_v5 = vrot.slane %v5102_v47, 9  ;;  %v5278_v22 = vmax.f32 %v5093_v60, %v6245_v51  ;;  %v10858_v1 = vmax.f32 %v10790_v36, %v4976_v14 }
 0x5af   :  { %v5302_v35 = vpack.c.bf16 %v5277_v44, %v5277_v44  ;;  %v5336_v60 = vsel %vm3177_vm12, %v5335_v27, %v5334_v29  ;;  %v5462_v59 = vunpack.c.l.b16 %v5433_v61  ;;  %v5469_v11 = vsel %vm3177_vm12, %v5468_v45, %v5467_v28  ;;  %v7082_v45 = vld [vmem:[#allocation11 + $0x60] sm:$0xff]  }
 0x5b0   :  { %v6249_v0 = vrot.slane %v5110_v49, 9  ;;  %v5281_v50 = vmax.f32 %v5102_v47, %v6248_v5  ;;  %v5434_v36 = vpack.c.bf16 %v5278_v22, %v5278_v22  ;;  %v5119_v56 = vrot.slane %v10858_v1, %v11792_v3 }
 0x5b1   :  { %v5330_v57 = vunpack.c.l.b16 %v5302_v35  ;;  %vm5384_vm6 = vcmask 785408   ;;  %v5470_v26 = vrot.slane %v5461_v32, 5  ;;  %v5061_v8 = vcombine.high %v10826_v54, %v10826_v54 }
 0x5b2   :  { %v5282_v53 = vmax.f32 %v5110_v49, %v6249_v0  ;;  %v5303_v38 = vpack.c.bf16 %v5281_v50, %v5281_v50  ;;  %v5127_v25 = vcombine.high %v5119_v56, %v5119_v56  ;;  %v6252_v19 = vrot.slane %v5119_v56, 9 }
 0x5b3   :  { %v5463_v2 = vunpack.c.l.b16 %v5434_v36  ;;  %v5339_v55 = vrot.slane %v5329_v43, 4  ;;  %v5078_v40 = vcombine.high %v10834_v30, %v10834_v30  ;;  %v5341_v9 = vrot.slane %v5330_v57, 3  ;;  %v7083_v57 = vld [vmem:[#allocation11 + $0x68] sm:$0xff]  }
 0x5b4   :  { %v5435_v13 = vpack.c.bf16 %v5282_v53, %v5282_v53  ;;  %v5331_v37 = vunpack.c.l.b16 %v5303_v38  ;;  %v6253_v58 = vrot.slane %v5127_v25, 9  ;;  %v5285_v7 = vmax.f32 %v5119_v56, %v6252_v19 }
 0x5b5   :  { %v5338_v10 = vsel %vm3179_vm13, %v5337_v63, %v5336_v60  ;;  %v5472_v48 = vrot.slane %v5462_v59, 4  ;;  %v5095_v49 = vcombine.high %v10840_v34, %v10840_v34  ;;  %v5474_v14 = vrot.slane %v5463_v2, 3 }
 0x5b6   :  { %v5464_v47 = vunpack.c.l.b16 %v5435_v13  ;;  %v5286_v6 = vmax.f32 %v5127_v25, %v6253_v58  ;;  %v5304_v51 = vpack.c.bf16 %v5285_v7, %v5285_v7  ;;  %v5343_v5 = vrot.slane %v5331_v37, 2  ;;  %v7084_v58 = vld [vmem:[#allocation11 + $0x70] sm:$0xff]  }
 0x5b7   :  { %v5112_v31 = vcombine.high %v10858_v1, %v10858_v1  ;;  %v5471_v46 = vsel %vm3179_vm13, %v5470_v26, %v5469_v11  ;;  %v10883_v30 = vrot.slane %v5061_v8, %v11792_v3  ;;  %v5340_v20 = vsel %vm3181_vm14, %v5339_v55, %v5338_v10 }
 0x5b8   :  { %v5332_v54 = vunpack.c.l.b16 %v5304_v51  ;;  %v5436_v44 = vpack.c.bf16 %v5286_v6, %v5286_v6  ;;  %v5476_v0 = vrot.slane %v5464_v47, 2  ;;  %v10887_v50 = vrot.slane %v5078_v40, %v11792_v3  ;;  %v7085_v51 = vld [vmem:[#allocation11 + $0x78] sm:$0xff]  }
 0x5b9   :  { %v5342_v34 = vsel %vm3183_vm15, %v5341_v9, %v5340_v20  ;;  %v6238_v22 = vrot.slane %v10868_v15, 9  ;;  %v5473_v1 = vsel %vm3181_vm14, %v5472_v48, %v5471_v46  ;;  %v10893_v12 = vrot.slane %v5095_v49, %v11792_v3  ;;  %v7086_v20 = vld [vmem:[#allocation11 + $0x80] sm:$0xff]  }
 0x5ba   :  { %v5345_v39 = vrot.slane %v5332_v54, 1  ;;  %v5465_v21 = vunpack.c.l.b16 %v5436_v44  ;;  %v5344_v23 = vsel %vm3185_vm0, %v5343_v5, %v5342_v34  ;;  %v5475_v4 = vsel %vm3183_vm15, %v5474_v14, %v5473_v1 }
 0x5bb   :  { %v10898_v53 = vrot.slane %v5112_v31, %v11792_v3  ;;  %v6242_v35 = vrot.slane %v10883_v30, 9  ;;  %v5477_v27 = vsel %vm3185_vm0, %v5476_v0, %v5475_v4  ;;  %v5263_v61 = vmax.f32 %v10846_v42, %v6230_v33 }
 0x5bc   :  { %v5346_v62 = vsel %vm3187_vm1, %v5345_v39, %v5344_v23  ;;  %v5478_v16 = vrot.slane %v5465_v21, 1  ;;  %v6246_v38 = vrot.slane %v10887_v50, 9  ;;  %v5267_v3 = vmax.f32 %v10855_v18, %v6234_v52 }
 0x5bd   :  { %v5347_v24 = vpack.c.b16 %v5346_v62, %v5346_v62  ;;  %v6250_v36 = vrot.slane %v10893_v12, 9  ;;  %v6226_v28 = vrot.slane %v10843_v41, 9  ;;  %v5271_v32 = vmax.f32 %v10868_v15, %v6238_v22  ;;  %v7087_v62 = vld [vmem:[#allocation11 + $0x88] sm:$0xff]  }
 0x5be   :  { %v5479_v29 = vsel %vm3187_vm1, %v5478_v16, %v5477_v27  ;;  %v6254_v33 = vrot.slane %v10898_v53, 9  ;;  %v5275_v43 = vmax.f32 %v10883_v30, %v6242_v35  ;;  %v5562_v13 = vpack.c.bf16 %v5263_v61, %v5263_v61 }
 0x5bf   :  { %6475 = vmatmul.mubr.msk.bf16.vlgmr.msra.gmra.mrb[48].mxu1 %vm5384_vm6, %v5347_v24  ;;  %v5480_v56 = vpack.c.b16 %v5479_v29, %v5479_v29  ;;  %v5279_v52 = vmax.f32 %v10887_v50, %v6246_v38  ;;  %v5563_v25 = vpack.c.bf16 %v5267_v3, %v5267_v3  ;;  %v5283_v19 = vmax.f32 %v10893_v12, %v6250_v36  ;;  %v7088_v3 = vld [vmem:[#allocation11 + $0x90] sm:$0xff]  }
 0x5c0   :  { %6542 = vmatprep.mubr.msk.bf16.mxu1 %vm7412_vm10, %v7410_v17  ;;  %v5259_v60 = vmax.f32 %v10843_v41, %v6226_v28  ;;  %v5564_v63 = vpack.c.bf16 %v5271_v32, %v5271_v32  ;;  %v5287_v59 = vmax.f32 %v10898_v53, %v6254_v33  ;;  %v5565_v37 = vpack.c.bf16 %v5275_v43, %v5275_v43 }
 0x5c1   :  { %6491 = vmatmul.mubr.msk.bf16.vlgmr.msra.gmra.mrb[48].mxu0 %vm5384_vm6, %v5480_v56  ;;  %v5591_v11 = vunpack.c.l.b16 %v5562_v13  ;;  %v5566_v2 = vpack.c.bf16 %v5279_v52, %v5279_v52  ;;  %v5592_v7 = vunpack.c.l.b16 %v5563_v25  ;;  %v5567_v26 = vpack.c.bf16 %v5283_v19, %v5283_v19  ;;  %v7089_v13 = vld [vmem:[#allocation11 + $0x98] sm:$0xff]  }
 0x5c2   :  { %6495 = vmatpush3.bf16.msra.mxu0 %v7082_v45  ;;  %6506 = vmatprep.mubr.msk.bf16.mxu0 %vm7412_vm10, %v7410_v17  ;;  %v5561_v8 = vpack.c.bf16 %v5259_v60, %v5259_v60  ;;  %v5593_v55 = vunpack.c.l.b16 %v5564_v63  ;;  %v5568_v47 = vpack.c.bf16 %v5287_v59, %v5287_v59  ;;  %v5594_v40 = vunpack.c.l.b16 %v5565_v37 }
 0x5c3   :  { %6496 = vmatprep.subr.bf16.mxu0 %v7410_v17  ;;  %v5598_v9 = vrot.slane %v5591_v11, 7  ;;  %v5595_v6 = vunpack.c.l.b16 %v5566_v2  ;;  %v5600_v10 = vrot.slane %v5592_v7, 6  ;;  %v5596_v48 = vunpack.c.l.b16 %v5567_v26  ;;  %v7090_v11 = vld [vmem:[#allocation11 + $0xa0] sm:$0xff]  }
 0x5c4   :  { %v5590_v49 = vunpack.c.l.b16 %v5561_v8  ;;  %v5602_v5 = vrot.slane %v5593_v55, 5  ;;  %v5597_v14 = vunpack.c.l.b16 %v5568_v47  ;;  %v5604_v31 = vrot.slane %v5594_v40, 4 }
 0x5c5   :  { %v5026_v54 = vcombine.high %v10846_v42, %v10846_v42  ;;  %v5606_v46 = vrot.slane %v5595_v6, 3  ;;  %v5043_v0 = vcombine.high %v10855_v18, %v10855_v18  ;;  %v5608_v39 = vrot.slane %v5596_v48, 2 }
 0x5c6   :  { %6497 = vmatpush3.bf16.msra.mxu0 %v7083_v57  ;;  %v5599_v44 = vsel %vm3175_vm11, %v5598_v9, %v5590_v49  ;;  %v5060_v21 = vcombine.high %v10868_v15, %v10868_v15  ;;  %v5610_v1 = vrot.slane %v5597_v14, 1  ;;  %v5077_v42 = vcombine.high %v10883_v30, %v10883_v30  ;;  %v7091_v9 = vld [vmem:[#allocation11 + $0xa8] sm:$0xff]  }
 0x5c7   :  { %6498 = vmatprep.subr.bf16.mxu0 %v7410_v17  ;;  %v5601_v34 = vsel %vm3177_vm12, %v5600_v10, %v5599_v44  ;;  %v6231_v4 = vrot.slane %v5026_v54, 9  ;;  %v5094_v18 = vcombine.high %v10887_v50, %v10887_v50  ;;  %v6235_v35 = vrot.slane %v5043_v0, 9 }
 0x5c8   :  { %v5603_v22 = vsel %vm3179_vm13, %v5602_v5, %v5601_v34  ;;  %v5111_v15 = vcombine.high %v10893_v12, %v10893_v12  ;;  %v5009_v30 = vcombine.high %v10843_v41, %v10843_v41  ;;  %v6239_v24 = vrot.slane %v5060_v21, 9 }
 0x5c9   :  { %v5605_v23 = vsel %vm3181_vm14, %v5604_v31, %v5603_v22  ;;  %v5128_v61 = vcombine.high %v10898_v53, %v10898_v53  ;;  %v6243_v38 = vrot.slane %v5077_v42, 9  ;;  %v5264_v29 = vmax.f32 %v5026_v54, %v6231_v4  ;;  %v7092_v54 = vld [vmem:[#allocation11 + $0xb0] sm:$0xff]  }
 0x5ca   :  { %6499 = vmatpush3.bf16.msra.mxu0 %v7084_v58  ;;  %v5607_v16 = vsel %vm3183_vm15, %v5606_v46, %v5605_v23  ;;  %v6247_v45 = vrot.slane %v5094_v18, 9  ;;  %v5268_v36 = vmax.f32 %v5043_v0, %v6235_v35  ;;  %v6251_v12 = vrot.slane %v5111_v15, 9  ;;  %v7094_v23 = vld [vmem:[#allocation14] sm:$0xff]   ;;  %v7095_v4 = vld [vmem:[#allocation14 + $0x8] sm:$0xff]  }
 0x5cb   :  { %6500 = vmatprep.subr.bf16.mxu0 %v7410_v17  ;;  %v5609_v27 = vsel %vm3185_vm0, %v5608_v39, %v5607_v16  ;;  %v6227_v28 = vrot.slane %v5009_v30, 9  ;;  %v5272_v32 = vmax.f32 %v5060_v21, %v6239_v24  ;;  %v6255_v33 = vrot.slane %v5128_v61, 9  ;;  %v7093_v39 = vld [vmem:[#allocation11 + $0xb8] sm:$0xff]   ;;  %6527 = vmatpush3.bf16.msra.mxu1 %v7094_v23  ;;  %v7098_v16 = vld [vmem:[#allocation14 + $0x20] sm:$0xff]   ;;  %v7099_v35 = vld [vmem:[#allocation14 + $0x28] sm:$0xff]  }
 0x5cc   :  { %v5611_v50 = vsel %vm3187_vm1, %v5610_v1, %v5609_v27  ;;  %v5276_v41 = vmax.f32 %v5077_v42, %v6243_v38  ;;  %v5694_v43 = vpack.c.bf16 %v5264_v29, %v5264_v29  ;;  %v5280_v53 = vmax.f32 %v5094_v18, %v6247_v45  ;;  %6528 = vmatprep.subr.bf16.mxu1 %v7410_v17  ;;  %v7096_v18 = vld [vmem:[#allocation14 + $0x10] sm:$0xff]   ;;  %v7101_v27 = vld [vmem:[#allocation14 + $0x38] ss:$0 sps:$4 sm:$0xff]   ;;  %v6256_v29 = vld [vmem:[#allocation13] ss:$0 sm:$0xff] }
 0x5cd   :  { %v5612_v56 = vpack.c.b16 %v5611_v50, %v5611_v50  ;;  %v5695_v52 = vpack.c.bf16 %v5268_v36, %v5268_v36  ;;  %v5284_v57 = vmax.f32 %v5111_v15, %v6251_v12  ;;  %v5260_v25 = vmax.f32 %v5009_v30, %v6227_v28  ;;  %v7100_v15 = vld [vmem:[#allocation14 + $0x30] sm:$0xff]   ;;  %v7102_v28 = vld [vmem:[#allocation17] sm:$0xff]  }
 0x5ce   :  { %6501 = vmatpush3.bf16.msra.mxu0 %v7085_v51  ;;  %v5696_v19 = vpack.c.bf16 %v5272_v32, %v5272_v32  ;;  %v5288_v60 = vmax.f32 %v5128_v61, %v6255_v33  ;;  %v5697_v63 = vpack.c.bf16 %v5276_v41, %v5276_v41  ;;  %v5723_v59 = vunpack.c.l.b16 %v5694_v43  ;;  %v7103_v41 = vld [vmem:[#allocation17 + $0x8] sm:$0xff]   ;;  %v7104_v43 = vld [vmem:[#allocation17 + $0x10] sm:$0xff]  }
 0x5cf   :  { %6502 = vmatprep.subr.bf16.mxu0 %v7410_v17  ;;  %v5698_v37 = vpack.c.bf16 %v5280_v53, %v5280_v53  ;;  %v5724_v2 = vunpack.c.l.b16 %v5695_v52  ;;  %v5699_v58 = vpack.c.bf16 %v5284_v57, %v5284_v57  ;;  %v5693_v7 = vpack.c.bf16 %v5260_v25, %v5260_v25  ;;  %6529 = vmatpush3.bf16.msra.mxu1 %v7095_v4  ;;  %v7105_v53 = vld [vmem:[#allocation17 + $0x18] sm:$0x3f]   ;;  %v6285_v52 = vld [vmem:[#allocation16] ss:$0 sm:$0xff] }
 0x5d0   :  { %v5725_v26 = vunpack.c.l.b16 %v5696_v19  ;;  %v5700_v8 = vpack.c.bf16 %v5288_v60, %v5288_v60  ;;  %v5726_v55 = vunpack.c.l.b16 %v5697_v63  ;;  %v5730_v47 = vrot.slane %v5723_v59, 7  ;;  %6530 = vmatprep.subr.bf16.mxu1 %v7410_v17 }
 0x5d1   :  { %v5727_v40 = vunpack.c.l.b16 %v5698_v37  ;;  %v5732_v6 = vrot.slane %v5724_v2, 6  ;;  %v5728_v51 = vunpack.c.l.b16 %v5699_v58  ;;  %v5722_v10 = vunpack.c.l.b16 %v5693_v7  ;;  %v6295_v37 = vld [vmem:[#allocation19] ss:$0 sm:$0xff] }
 0x5d2   :  { %6503 = vmatpush3.bf16.msra.mxu0 %v7086_v20  ;;  %v5734_v48 = vrot.slane %v5725_v26, 5  ;;  %v5729_v49 = vunpack.c.l.b16 %v5700_v8  ;;  %v5736_v5 = vrot.slane %v5726_v55, 4  ;;  %v5898_v30 = vsel %vm662_vm3, %v7101_v27, 0 }
 0x5d3   :  { %6504 = vmatprep.subr.bf16.mxu0 %v7410_v17  ;;  %v5731_v14 = vsel %vm3175_vm11, %v5730_v47, %v5722_v10  ;;  %v5738_v31 = vrot.slane %v5727_v40, 3  ;;  %v5740_v46 = vrot.slane %v5728_v51, 2  ;;  %6531 = vmatpush3.bf16.msra.mxu1 %v7096_v18  ;;  %vm5893_vm11 = vcmask 982016  }
 0x5d4   :  { %v5733_v44 = vsel %vm3177_vm12, %v5732_v6, %v5731_v14  ;;  %v5742_v0 = vrot.slane %v5729_v49, 1  ;;  %6532 = vmatprep.subr.bf16.mxu1 %v7410_v17  ;;  %vm5979_vm3 = vcmask 490496  }
 0x5d5   :  { %v5735_v20 = vsel %vm3179_vm13, %v5734_v48, %v5733_v44 }
 0x5d6   :  { %6505 = vmatpush3.bf16.msra.mxu0 %v7087_v62  ;;  %v5737_v34 = vsel %vm3181_vm14, %v5736_v5, %v5735_v20  ;;  %v7097_v62 = vld [vmem:[#allocation14 + $0x18] sm:$0xff]  }
 0x5d7   :  { %6510 = vmatprep.subr.bf16.mxu0 %v7410_v17  ;;  %v5739_v21 = vsel %vm3183_vm15, %v5738_v31, %v5737_v34  ;;  %6533 = vmatpush3.bf16.msra.mxu1 %v7097_v62 }
 0x5d8   :  { %v5741_v22 = vsel %vm3185_vm0, %v5740_v46, %v5739_v21  ;;  %6534 = vmatprep.subr.bf16.mxu1 %v7410_v17 }
 0x5d9   :  { %6507 = vmatmul.mubr.msk.bf16.vlgmr.msra.gmra.mrb[48].mxu0 %vm5384_vm6, %v5612_v56  ;;  %v5743_v1 = vsel %vm3187_vm1, %v5742_v0, %v5741_v22 }
 0x5da   :  { %6511 = vmatpush3.bf16.msra.mxu0 %v7088_v3  ;;  %6522 = vmatprep.mubr.msk.bf16.mxu0 %vm7412_vm10, %v7410_v17  ;;  %v5744_v42 = vpack.c.b16 %v5743_v1, %v5743_v1 }
 0x5db   :  { %6512 = vmatprep.subr.bf16.mxu0 %v7410_v17  ;;  %6535 = vmatpush3.bf16.msra.mxu1 %v7098_v16 }
 0x5dc   :  { %6536 = vmatprep.subr.bf16.mxu1 %v7410_v17 }
 0x5de   :  { %6513 = vmatpush3.bf16.msra.mxu0 %v7089_v13  ;;  %v5984_v13 = vsel %vm404_vm2, %v7105_v53, 0 }
 0x5df   :  { %6514 = vmatprep.subr.bf16.mxu0 %v7410_v17  ;;  %6537 = vmatpush3.bf16.msra.mxu1 %v7099_v35 }
 0x5e0   :  { %6538 = vmatprep.subr.bf16.mxu1 %v7410_v17 }
 0x5e2   :  { %6515 = vmatpush3.bf16.msra.mxu0 %v7090_v11 }
 0x5e3   :  { %6516 = vmatprep.subr.bf16.mxu0 %v7410_v17  ;;  %6539 = vmatpush3.bf16.msra.mxu1 %v7100_v15 }
 0x5e4   :  { %6540 = vmatprep.subr.bf16.mxu1 %v7410_v17 }
 0x5e6   :  { %6517 = vmatpush3.bf16.msra.mxu0 %v7091_v9 }
 0x5e7   :  { %6518 = vmatprep.subr.bf16.mxu0 %v7410_v17  ;;  %6541 = vmatpush3.bf16.msra.mxu1 %v5898_v30 }
 0x5e8   :  { %6546 = vmatprep.subr.bf16.mxu1 %v7410_v17 }
 0x5ea   :  { %6519 = vmatpush3.bf16.msra.mxu0 %v7092_v54 }
 0x5eb   :  { %6520 = vmatprep.subr.bf16.mxu0 %v7410_v17 }
 0x5ee   :  { %6521 = vmatpush3.bf16.msra.mxu0 %v7093_v39 }
 0x5f1   :  { %6523 = vmatmul.mubr.msk.bf16.vlgmr.msra.gmra.mrb[48].mxu0 %vm5384_vm6, %v5744_v42 }
 0x692   :  { %v5422_v24 = vpop.f32.mrb[48].mxu1 }
 0x693   :  { %v6476_v61 = vpop.f32.mrb[49].mxu1  ;;  %v5428_v45 = vadd.f32 %v6256_v29, %v5422_v24 }
 0x694   :  { %v5425_v50 = vpop.f32.mrb[50].mxu1 }
 0x695   :  { %v6477_v38 = vpop.f32.mrb[51].mxu1 }
 0x6c4   :  { %v5818_v3 = vpop.f32.mrb[48].mxu0 }
 0x6c5   :  { %v6559_v36 = vadd.f32 %v5818_v3, %v5428_v45  ;;  %v6524_v12 = vpop.f32.mrb[49].mxu0 }
 0x6c6   :  { %v5821_v56 = vpop.f32.mrb[50].mxu0 }
 0x6c7   :  { %v5825_v32 = vpack.c.bf16 %v6559_v36, %v6559_v36  ;;  %v6525_v33 = vpop.f32.mrb[51].mxu0 }
 0x6c9   :  { %6543 = vmatmul.mubr.msk.bf16.vlgmr.msra.gmra.mrb[52].mxu1 %vm5893_vm11, %v5825_v32 }
 0x6ca   :  { %6547 = vmatpush3.bf16.msra.mxu1 %v7102_v28  ;;  %6554 = vmatprep.mubr.msk.bf16.mxu1 %vm7412_vm10, %v7410_v17 }
 0x6cb   :  { %6548 = vmatprep.subr.bf16.mxu1 %v7410_v17 }
 0x6ce   :  { %6549 = vmatpush3.bf16.msra.mxu1 %v7103_v41 }
 0x6cf   :  { %6550 = vmatprep.subr.bf16.mxu1 %v7410_v17 }
 0x6d2   :  { %6551 = vmatpush3.bf16.msra.mxu1 %v7104_v43 }
 0x6d3   :  { %6552 = vmatprep.subr.bf16.mxu1 %v7410_v17 }
 0x6d6   :  { %6553 = vmatpush3.bf16.msra.mxu1 %v5984_v13 }
 0x79c   :  { %v5934_v57 = vpop.f32.mrb[52].mxu1 }
 0x79d   :  { %v5935_v25 = vadd.f32 %v6285_v52, %v5934_v57  ;;  %v6544_v19 = vpop.f32.mrb[53].mxu1 }
 0x79e   :  { %v5937_v60 = vpop.f32.mrb[54].mxu1 }
 0x79f   :  { %v5940_v63 = vpack.c.bf16 %v5935_v25, %v5935_v25  ;;  %v6545_v59 = vpop.f32.mrb[55].mxu1 }
 0x7a1   :  { %6555 = vmatmul.mubr.msk.bf16.vlgmr.msra.gmra.mrb[56].mxu1 %vm5979_vm3, %v5940_v63 }
 0x874   :  { %v6020_v11 = vpop.f32.mrb[56].mxu1 }
 0x875   :  { %v6021_v2 = vadd.f32 %v6295_v37, %v6020_v11  ;;  %v6556_v58 = vpop.f32.mrb[57].mxu1 }
 0x876   :  { %v6023_v17 = vpop.f32.mrb[58].mxu1 }
 0x877   :  { %6026 = vst [vmem:[#allocation20] sm:$0xff] %v6021_v2  ;;  %v6557_v7 = vpop.f32.mrb[59].mxu1 }
 0x878   :  { %7359 = shalt.err (!%p7356_p8)
}
 0x879   :  { %s7360_s6 = scalar_lea.hbm %s11009_s11, 128 }
 0x87a   :  { %p7361_p9 = scmp.ne.s32.totalorder %s11009_s11, %s7360_s6  ;;  %p7364_p10 = scmp.lt.u32.totalorder %s7360_s6, %s11009_s11 }
 0x87c   :  { %p7366_p11 = pnand %p7364_p10, %p7361_p9 }
 0x87e   :  { %7369 = shalt.err (!%p7366_p11)
}
 0x87f   :  { %6036 = dma.vmem_to_hbm [thread:$0]  %s6034_s30, 128, %s11009_s11, [#allocation4]  }
 0x880   :  { %7382 = dma.done.wait [#allocation4], 128  }
 0x881   :  { %7383 = vsyncadd [#allocation4], 4294967168 }
 0x882   :  { %6040 = vsyncpa [#allocation3], 1 }
 0x883   :  { %6041 = vsyncpa [#allocation6], 1 }
 0x884   :  { %6042 = vsyncpa [#allocation9], 1 }
 0x885   :  { %6043 = vsyncpa [#allocation12], 1 }
 0x886   :  { %6044 = vsyncpa [#allocation15], 1 }
 0x887   :  { %6045 = vsyncpa [#allocation18], 1 }
 0x888   :  { %6046 = vsyncpa [#allocation4], 1 }

</bundles_post_ra>
